<compile_context>
chip_gen: v7x
topology: tpu7x:2x2x1
jax: 0.10.0
libtpu: 0.0.40
codegen_flags: <defaults>
</compile_context>

<pallas_src>
import functools
import math

import jax
import jax.numpy as jnp
from jax.experimental import pallas as pl
from jax.experimental.pallas import tpu as pltpu

_VMEM = pl.BlockSpec(memory_space=pltpu.MemorySpace.VMEM)


# ----------------------------------------------------------------------------- kernel

def _ln_over_features(z, gamma, beta, eps):
    """LayerNorm over word_dim = axis 0 (sublanes) in the transposed layout."""
    mu = jnp.mean(z, axis=0, keepdims=True)
    zc = z - mu
    var = jnp.mean(zc * zc, axis=0, keepdims=True)
    return zc * jax.lax.rsqrt(var + eps) * gamma + beta


def _fpe_kernel(x_ref, wa_ref, w2_ref, vec_ref, wlin_ref, out_ref, *,
                num_layers, batch, seq, d, n_heads, ffn, eps):
    """Fused: all transformer encoder layers + sum(word_dim) + final linear.

    Layout: activations are (word_dim, B*S) — word_dim on sublanes, positions on lanes.
    """
    hd = d // n_heads
    scale = 1.0 / math.sqrt(hd)

    # 0/1 head-grouping matrices built once per call from iota (no extra operand DMAs).
    h_r = jax.lax.broadcasted_iota(jnp.int32, (n_heads, d), 0)
    d_c = jax.lax.broadcasted_iota(jnp.int32, (n_heads, d), 1)
    g_score = ((d_c >= h_r * hd) & (d_c < (h_r + 1) * hd)).astype(jnp.float32) * scale  # (H, D)
    d_r = jax.lax.broadcasted_iota(jnp.int32, (d, n_heads), 0)
    h_c = jax.lax.broadcasted_iota(jnp.int32, (d, n_heads), 1)
    g_expand = ((d_r >= h_c * hd) & (d_r < (h_c + 1) * hd)).astype(jnp.float32)         # (D, H)

    x = x_ref[...]                                       # (D, B*S), PE already added

    for li in range(num_layers):
        wa = wa_ref[li]                                  # (4D+ffn, D): [wq; wk; wv; wo; w1]
        w_2 = w2_ref[li]                                 # (D, ffn)
        vec = vec_ref[li]                                # (V, 1): packed biases + LN params

        w_qkv = wa[0:3 * d, :]                           # (3D, D) fused Q/K/V weight
        w_o = wa[3 * d:4 * d, :]                         # (D, D)
        w_1 = wa[4 * d:4 * d + ffn, :]                   # (ffn, D)

        off = 0
        b_qkv = vec[off:off + 3 * d, :]; off += 3 * d
        b_o = vec[off:off + d, :]; off += d
        g1 = vec[off:off + d, :]; off += d
        be1 = vec[off:off + d, :]; off += d
        b_1 = vec[off:off + ffn, :]; off += ffn
        b_2 = vec[off:off + d, :]; off += d
        g2 = vec[off:off + d, :]; off += d
        be2 = vec[off:off + d, :]; off += d

        # Fused Q/K/V projection: one MXU matmul over the whole stacked batch.
        qkv = jnp.dot(w_qkv, x, preferred_element_type=jnp.float32) + b_qkv   # (3D, B*S)
        q = qkv[0:d, :]
        k = qkv[d:2 * d, :]
        v = qkv[2 * d:3 * d, :]

        # Per-batch lane slices (offsets b*S are multiples of 128 -> tile-aligned).
        q_b = [q[:, bi * seq:(bi + 1) * seq] for bi in range(batch)]
        k_b = [k[:, bj * seq:(bj + 1) * seq] for bj in range(batch)]
        v_b = [v[:, bj * seq:(bj + 1) * seq] for bj in range(batch)]

        attn_b = []
        for bi in range(batch):
            # Per-head scores of query row bi against key row bj: (H, S) each.
            scores = [jnp.dot(g_score, q_b[bi] * k_b[bj],
                              preferred_element_type=jnp.float32)
                      for bj in range(batch)]
            if batch == 1:
                probs = [jnp.ones_like(scores[0])]
            elif batch == 2:
                # softmax over two logits == sigmoid of their difference:
                # one exp + one EUP approx reciprocal per (H, S) pair.
                p0 = pl.reciprocal(1.0 + jnp.exp(scores[1] - scores[0]), approx=True)
                probs = [p0, 1.0 - p0]
            else:
                m = scores[0]
                for s in scores[1:]:
                    m = jnp.maximum(m, s)
                ex = [jnp.exp(s - m) for s in scores]
                den = ex[0]
                for e in ex[1:]:
                    den = den + e
                inv = pl.reciprocal(den, approx=True)
                probs = [e * inv for e in ex]

            acc = None
            for bj in range(batch):
                # Broadcast per-head prob across its head_dim sublanes via 0/1 matmul.
                w_full = jnp.dot(g_expand, probs[bj],
                                 preferred_element_type=jnp.float32)           # (D, S)
                term = w_full * v_b[bj]
                acc = term if acc is None else acc + term
            attn_b.append(acc)

        attn = jnp.concatenate(attn_b, axis=1) if batch > 1 else attn_b[0]     # (D, B*S)
        attn = jnp.dot(w_o, attn, preferred_element_type=jnp.float32) + b_o

        y = _ln_over_features(x + attn, g1, be1, eps)
        h = jnp.maximum(jnp.dot(w_1, y, preferred_element_type=jnp.float32) + b_1, 0.0)
        f = jnp.dot(w_2, h, preferred_element_type=jnp.float32) + b_2
        x = _ln_over_features(y + f, g2, be2, eps)

    # output.sum(word_dim) followed by Linear(1024, out_dim): one MXU matmul with K=S.
    sums = [jnp.sum(x[:, bi * seq:(bi + 1) * seq], axis=0, keepdims=True)
            for bi in range(batch)]                                            # B x (1, S)
    feat = jnp.concatenate(sums, axis=0) if batch > 1 else sums[0]             # (B, S)
    w_lin = wlin_ref[0:seq, :]                                                 # (S, out_dim)
    b_lin = wlin_ref[seq:seq + 1, :]                                           # (1, out_dim)
    out = jnp.dot(feat, w_lin, preferred_element_type=jnp.float32) + b_lin
    out_ref[...] = out.astype(out_ref.dtype)


# ----------------------------------------------------------------------------- params

def init_fpe_params(key, word_dim, out_dim, num_head=8, num_layer=1,
                    vocab=2048, max_len=1024):
    assert word_dim % num_head == 0

    def uniform(k, shape, bound):
        return jax.random.uniform(k, shape, jnp.float32, -bound, bound)

    key, k_emb = jax.random.split(key)
    emb = jax.random.normal(k_emb, (vocab, word_dim), jnp.float32)

    # Sinusoidal positional-encoding table — identical to the PyTorch buffer.
    pos = jnp.arange(max_len, dtype=jnp.float32)[:, None]
    div = jnp.exp(jnp.arange(0, word_dim, 2, dtype=jnp.float32)
                  * (-math.log(10000.0) / word_dim))
    pe = jnp.zeros((max_len, word_dim), jnp.float32)
    pe = pe.at[:, 0::2].set(jnp.sin(pos * div))
    pe = pe.at[:, 1::2].set(jnp.cos(pos * div))

    layers = []
    bd = 1.0 / math.sqrt(word_dim)
    bf = 1.0 / math.sqrt(out_dim)
    for _ in range(num_layer):
        key, *ks = jax.random.split(key, 17)
        layers.append(dict(
            # PyTorch layout: Linear weight is (out_features, in_features); biases 1-D.
            wq=uniform(ks[0], (word_dim, word_dim), bd), bq=uniform(ks[1], (word_dim,), bd),
            wk=uniform(ks[2], (word_dim, word_dim), bd), bk=uniform(ks[3], (word_dim,), bd),
            wv=uniform(ks[4], (word_dim, word_dim), bd), bv=uniform(ks[5], (word_dim,), bd),
            wo=uniform(ks[6], (word_dim, word_dim), bd), bo=uniform(ks[7], (word_dim,), bd),
            # LayerNorm affine params randomized (non-identity) so the end-to-end test is
            # sensitive: with gamma=1/beta=0 the final sum-over-word_dim collapses to ~0.
            ln1_g=1.0 + uniform(ks[8], (word_dim,), 0.5), ln1_b=uniform(ks[9], (word_dim,), 0.5),
            w1=uniform(ks[10], (out_dim, word_dim), bd), b1=uniform(ks[11], (out_dim,), bd),
            w2=uniform(ks[12], (word_dim, out_dim), bf), b2=uniform(ks[13], (word_dim,), bf),
            ln2_g=1.0 + uniform(ks[14], (word_dim,), 0.5), ln2_b=uniform(ks[15], (word_dim,), 0.5),
        ))

    key, kw, kb = jax.random.split(key, 3)
    bl = 1.0 / math.sqrt(max_len)
    w_lin = uniform(kw, (out_dim, max_len), bl)          # Linear(1024, out_dim), PyTorch layout
    b_lin = uniform(kb, (out_dim,), bl)

    return dict(emb=emb, pe=pe, layers=layers, w_lin=w_lin, b_lin=b_lin)


def _pack_params(params):
    """Pack all weights into the 4 weight operands the kernel expects."""
    layers = params["layers"]
    wa = jnp.stack([jnp.concatenate(
        [lp["wq"], lp["wk"], lp["wv"], lp["wo"], lp["w1"]], axis=0) for lp in layers])
    w2 = jnp.stack([lp["w2"] for lp in layers])
    vec = jnp.stack([jnp.concatenate(
        [lp["bq"], lp["bk"], lp["bv"], lp["bo"], lp["ln1_g"], lp["ln1_b"],
         lp["b1"], lp["b2"], lp["ln2_g"], lp["ln2_b"]], axis=0)[:, None] for lp in layers])
    wlin = jnp.concatenate([params["w_lin"].T, params["b_lin"][None, :]], axis=0)
    return wa, w2, vec, wlin


# ----------------------------------------------------------------------------- forward

@functools.partial(jax.jit, static_argnames=("num_head",))
def fpe_forward(params, tokens, *, num_head):
    emb = params["emb"]
    pe = params["pe"]
    b_sz, s_len = tokens.shape
    d = emb.shape[1]
    out_dim = params["w_lin"].shape[0]
    ffn = params["layers"][0]["w1"].shape[0]
    num_layers = len(params["layers"])

    # TODO(synk): embedding gather is data-dependent HBM access; left to XLA (jnp.take)
    #             rather than per-row manual DMA inside the kernel.
    x = jnp.take(emb, tokens, axis=0) + pe[None, :s_len, :]            # (B, S, D)
    # Lane-dense transposed layout: word_dim on sublanes, B*S on lanes.
    x_t = jnp.transpose(x, (2, 0, 1)).reshape(d, b_sz * s_len)         # (D, B*S)

    wa, w2, vec, wlin = _pack_params(params)

    flops = num_layers * (
        2 * (3 * d) * d * (b_sz * s_len)            # fused QKV projection
        + 2 * d * d * (b_sz * s_len)                # output projection
        + 2 * num_head * d * (b_sz * s_len) * b_sz  # per-head score matmuls
        + 2 * d * num_head * (b_sz * s_len) * b_sz  # per-head prob expansion matmuls
        + 2 * ffn * d * (b_sz * s_len) * 2)         # FFN
    flops += 2 * b_sz * s_len * out_dim             # final linear
    transcendentals = num_layers * b_sz * s_len * num_head * max(b_sz - 1, 1)
    bytes_accessed = 4 * (x_t.size + wa.size + w2.size + vec.size + wlin.size
                          + b_sz * out_dim)

    kernel = functools.partial(
        _fpe_kernel, num_layers=num_layers, batch=b_sz, seq=s_len, d=d,
        n_heads=num_head, ffn=ffn, eps=1e-5)

    return pl.pallas_call(
        kernel,
        out_shape=jax.ShapeDtypeStruct((b_sz, out_dim), jnp.float32),
        in_specs=[_VMEM] * 5,
        out_specs=_VMEM,
        cost_estimate=pl.CostEstimate(flops=flops,
                                      transcendentals=transcendentals,
                                      bytes_accessed=bytes_accessed),
    )(x_t, wa, w2, vec, wlin)


# ----------------------------------------------------------------------------- reference

def ref_forward(params, tokens, num_head, eps=1e-5):
    """Pure-JAX reference implementing the exact PyTorch eval-mode semantics."""
    x = jnp.take(params["emb"], tokens, axis=0) + params["pe"][None, :tokens.shape[1], :]
    b, s, d = x.shape
    hd = d // num_head

    def ln(z, g, bta):
        mu = jnp.mean(z, axis=-1, keepdims=True)
        var = jnp.mean((z - mu) ** 2, axis=-1, keepdims=True)
        return (z - mu) * jax.lax.rsqrt(var + eps) * g + bta

    for lp in params["layers"]:
        q = x @ lp["wq"].T + lp["bq"]
        k = x @ lp["wk"].T + lp["bk"]
        v = x @ lp["wv"].T + lp["bv"]
        qh = q.reshape(b, s, num_head, hd)
        kh = k.reshape(b, s, num_head, hd)
        vh = v.reshape(b, s, num_head, hd)
        # attention over the batch axis (PyTorch batch_first=False receives (B, S, D))
        scores = jnp.einsum("ishd,jshd->shij", qh, kh) / jnp.sqrt(jnp.float32(hd))
        p = jax.nn.softmax(scores, axis=-1)
        o = jnp.einsum("shij,jshd->ishd", p, vh).reshape(b, s, d)
        o = o @ lp["wo"].T + lp["bo"]
        x = ln(x + o, lp["ln1_g"], lp["ln1_b"])
        f = jnp.maximum(x @ lp["w1"].T + lp["b1"], 0.0) @ lp["w2"].T + lp["b2"]
        x = ln(x + f, lp["ln2_g"], lp["ln2_b"])

    return jnp.sum(x, axis=2) @ params["w_lin"].T + params["b_lin"]


# ----------------------------------------------------------------------------- main

if __name__ == "__main__":
    key = jax.random.PRNGKey(0)
    k_param, k_tok = jax.random.split(key)

    batch = 2
    word_dim, out_dim, num_head, num_layer = 16, 32, 8, 1
    seq = 1024      # forced by the module's hard-coded nn.Linear(1024, out_dim)

    params = init_fpe_params(k_param, word_dim, out_dim, num_head, num_layer,
                             vocab=2048, max_len=seq)
    tokens = jax.random.randint(k_tok, (batch, seq), 0, 2048, dtype=jnp.int32)

    out = fpe_forward(params, tokens, num_head=num_head)
    jax.block_until_ready(out)

    ref = ref_forward(params, tokens, num_head)
    assert out.shape == (batch, out_dim)
    # Randomized (non-identity) LayerNorm affine params keep the check sensitive.
    assert float(jnp.std(ref)) > 1e-3
    err = float(jnp.max(jnp.abs(out - ref)))
    assert jnp.allclose(out, ref, atol=5e-2, rtol=5e-2), err

    print("KERNEL_OK")
</pallas_src>

<mosaic_0001>
module attributes {stable_mosaic.version = 11 : i64} {
  func.func private @main(%arg0: i32) attributes {dimension_semantics = [#tpu.dimension_semantics<core_parallel>], iteration_bounds = array<i64: 2>, tpu.core_type = #tpu.core_type<sc_scalar_subcore>, window_params = []} {
    return
  }
}

module attributes {stable_mosaic.version = 11 : i64} {
  func.func private @main(%arg0: i32) attributes {dimension_semantics = [#tpu.dimension_semantics<core_parallel>], iteration_bounds = array<i64: 2>, tpu.core_type = #tpu.core_type<sc_scalar_subcore>, window_params = []} {
    return
  }
}

module attributes {stable_mosaic.version = 11 : i64} {
  func.func @_fpe_kernel(%arg0: memref<16x2048xf32, #tpu.memory_space<vmem>>, %arg1: memref<1x96x16xf32, #tpu.memory_space<vmem>>, %arg2: memref<1x16x32xf32, #tpu.memory_space<vmem>>, %arg3: memref<1x176x1xf32, #tpu.memory_space<vmem>>, %arg4: memref<1025x32xf32, #tpu.memory_space<vmem>>, %arg5: memref<2x32xf32, #tpu.memory_space<vmem>>) attributes {dimension_semantics = [], scalar_prefetch = 0 : i64, scratch_operands = 0 : i64, tpu.core_type = #tpu.core_type<tc>} {
    %0 = tpu.iota {dimensions = array<i32: 0>} : vector<8x16xi32>
    %1 = tpu.iota {dimensions = array<i32: 1>} : vector<8x16xi32>
    %c2_i32 = arith.constant 2 : i32
    %2 = vector.broadcast %c2_i32 : i32 to vector<8x16xi32>
    %3 = arith.muli %0, %2 : vector<8x16xi32>
    %4 = arith.cmpi sge, %1, %3 : vector<8x16xi32>
    %c1_i32 = arith.constant 1 : i32
    %5 = vector.broadcast %c1_i32 : i32 to vector<8x16xi32>
    %6 = arith.addi %0, %5 : vector<8x16xi32>
    %c2_i32_0 = arith.constant 2 : i32
    %7 = vector.broadcast %c2_i32_0 : i32 to vector<8x16xi32>
    %8 = arith.muli %6, %7 : vector<8x16xi32>
    %9 = arith.cmpi slt, %1, %8 : vector<8x16xi32>
    %10 = arith.andi %4, %9 : vector<8x16xi1>
    %11 = arith.extui %10 : vector<8x16xi1> to vector<8x16xi32>
    %12 = arith.sitofp %11 : vector<8x16xi32> to vector<8x16xf32>
    %cst = arith.constant 0.707106769 : f32
    %13 = vector.broadcast %cst : f32 to vector<8x16xf32>
    %14 = arith.mulf %12, %13 : vector<8x16xf32>
    %15 = tpu.iota {dimensions = array<i32: 0>} : vector<16x8xi32>
    %16 = tpu.iota {dimensions = array<i32: 1>} : vector<16x8xi32>
    %c2_i32_1 = arith.constant 2 : i32
    %17 = vector.broadcast %c2_i32_1 : i32 to vector<16x8xi32>
    %18 = arith.muli %16, %17 : vector<16x8xi32>
    %19 = arith.cmpi sge, %15, %18 : vector<16x8xi32>
    %c1_i32_2 = arith.constant 1 : i32
    %20 = vector.broadcast %c1_i32_2 : i32 to vector<16x8xi32>
    %21 = arith.addi %16, %20 : vector<16x8xi32>
    %c2_i32_3 = arith.constant 2 : i32
    %22 = vector.broadcast %c2_i32_3 : i32 to vector<16x8xi32>
    %23 = arith.muli %21, %22 : vector<16x8xi32>
    %24 = arith.cmpi slt, %15, %23 : vector<16x8xi32>
    %25 = arith.andi %19, %24 : vector<16x8xi1>
    %26 = arith.extui %25 : vector<16x8xi1> to vector<16x8xi32>
    %27 = arith.sitofp %26 : vector<16x8xi32> to vector<16x8xf32>
    %c0 = arith.constant 0 : index
    %c0_4 = arith.constant 0 : index
    %28 = vector.load %arg0[%c0, %c0_4] : memref<16x2048xf32, #tpu.memory_space<vmem>>, vector<16x2048xf32>
    %c0_5 = arith.constant 0 : index
    %c0_6 = arith.constant 0 : index
    %c0_7 = arith.constant 0 : index
    %29 = vector.load %arg1[%c0_5, %c0_6, %c0_7] : memref<1x96x16xf32, #tpu.memory_space<vmem>>, vector<1x96x16xf32>
    %30 = vector.shape_cast %29 : vector<1x96x16xf32> to vector<96x16xf32>
    %c0_8 = arith.constant 0 : index
    %c0_9 = arith.constant 0 : index
    %c0_10 = arith.constant 0 : index
    %31 = vector.load %arg2[%c0_8, %c0_9, %c0_10] : memref<1x16x32xf32, #tpu.memory_space<vmem>>, vector<1x16x32xf32>
    %32 = vector.shape_cast %31 : vector<1x16x32xf32> to vector<16x32xf32>
    %c0_11 = arith.constant 0 : index
    %c0_12 = arith.constant 0 : index
    %c0_13 = arith.constant 0 : index
    %33 = vector.load %arg3[%c0_11, %c0_12, %c0_13] : memref<1x176x1xf32, #tpu.memory_space<vmem>>, vector<1x176x1xf32>
    %34 = vector.shape_cast %33 : vector<1x176x1xf32> to vector<176x1xf32>
    %35 = vector.extract_strided_slice %30 {offsets = [0, 0], sizes = [48, 16], strides = [1, 1]} : vector<96x16xf32> to vector<48x16xf32>
    %36 = vector.extract_strided_slice %30 {offsets = [48, 0], sizes = [16, 16], strides = [1, 1]} : vector<96x16xf32> to vector<16x16xf32>
    %37 = vector.extract_strided_slice %30 {offsets = [64, 0], sizes = [32, 16], strides = [1, 1]} : vector<96x16xf32> to vector<32x16xf32>
    %38 = vector.extract_strided_slice %34 {offsets = [0, 0], sizes = [48, 1], strides = [1, 1]} : vector<176x1xf32> to vector<48x1xf32>
    %39 = vector.extract_strided_slice %34 {offsets = [48, 0], sizes = [16, 1], strides = [1, 1]} : vector<176x1xf32> to vector<16x1xf32>
    %40 = vector.extract_strided_slice %34 {offsets = [64, 0], sizes = [16, 1], strides = [1, 1]} : vector<176x1xf32> to vector<16x1xf32>
    %41 = vector.extract_strided_slice %34 {offsets = [80, 0], sizes = [16, 1], strides = [1, 1]} : vector<176x1xf32> to vector<16x1xf32>
    %42 = vector.extract_strided_slice %34 {offsets = [96, 0], sizes = [32, 1], strides = [1, 1]} : vector<176x1xf32> to vector<32x1xf32>
    %43 = vector.extract_strided_slice %34 {offsets = [128, 0], sizes = [16, 1], strides = [1, 1]} : vector<176x1xf32> to vector<16x1xf32>
    %44 = vector.extract_strided_slice %34 {offsets = [144, 0], sizes = [16, 1], strides = [1, 1]} : vector<176x1xf32> to vector<16x1xf32>
    %45 = vector.extract_strided_slice %34 {offsets = [160, 0], sizes = [16, 1], strides = [1, 1]} : vector<176x1xf32> to vector<16x1xf32>
    %cst_14 = arith.constant dense<0.000000e+00> : vector<48x2048xf32>
    %46 = tpu.matmul %35, %28, %cst_14 {dimension_numbers = #tpu.dot_dimension_numbers<[1], [0], [0], [1], [0, 0, 1, 1], [], []>} : vector<48x16xf32>, vector<16x2048xf32>, vector<48x2048xf32> -> vector<48x2048xf32>
    %47 = vector.broadcast %38 : vector<48x1xf32> to vector<48x2048xf32>
    %48 = arith.addf %46, %47 : vector<48x2048xf32>
    %49 = vector.extract_strided_slice %48 {offsets = [0, 0], sizes = [16, 2048], strides = [1, 1]} : vector<48x2048xf32> to vector<16x2048xf32>
    %50 = vector.extract_strided_slice %48 {offsets = [16, 0], sizes = [16, 2048], strides = [1, 1]} : vector<48x2048xf32> to vector<16x2048xf32>
    %51 = vector.extract_strided_slice %48 {offsets = [32, 0], sizes = [16, 2048], strides = [1, 1]} : vector<48x2048xf32> to vector<16x2048xf32>
    %52 = vector.extract_strided_slice %49 {offsets = [0, 0], sizes = [16, 1024], strides = [1, 1]} : vector<16x2048xf32> to vector<16x1024xf32>
    %53 = vector.extract_strided_slice %49 {offsets = [0, 1024], sizes = [16, 1024], strides = [1, 1]} : vector<16x2048xf32> to vector<16x1024xf32>
    %54 = vector.extract_strided_slice %50 {offsets = [0, 0], sizes = [16, 1024], strides = [1, 1]} : vector<16x2048xf32> to vector<16x1024xf32>
    %55 = vector.extract_strided_slice %50 {offsets = [0, 1024], sizes = [16, 1024], strides = [1, 1]} : vector<16x2048xf32> to vector<16x1024xf32>
    %56 = vector.extract_strided_slice %51 {offsets = [0, 0], sizes = [16, 1024], strides = [1, 1]} : vector<16x2048xf32> to vector<16x1024xf32>
    %57 = vector.extract_strided_slice %51 {offsets = [0, 1024], sizes = [16, 1024], strides = [1, 1]} : vector<16x2048xf32> to vector<16x1024xf32>
    %58 = arith.mulf %52, %54 : vector<16x1024xf32>
    %cst_15 = arith.constant dense<0.000000e+00> : vector<8x1024xf32>
    %59 = tpu.matmul %14, %58, %cst_15 {dimension_numbers = #tpu.dot_dimension_numbers<[1], [0], [0], [1], [0, 0, 1, 1], [], []>} : vector<8x16xf32>, vector<16x1024xf32>, vector<8x1024xf32> -> vector<8x1024xf32>
    %60 = arith.mulf %52, %55 : vector<16x1024xf32>
    %cst_16 = arith.constant dense<0.000000e+00> : vector<8x1024xf32>
    %61 = tpu.matmul %14, %60, %cst_16 {dimension_numbers = #tpu.dot_dimension_numbers<[1], [0], [0], [1], [0, 0, 1, 1], [], []>} : vector<8x16xf32>, vector<16x1024xf32>, vector<8x1024xf32> -> vector<8x1024xf32>
    %62 = arith.subf %61, %59 : vector<8x1024xf32>
    %63 = math.exp %62 : vector<8x1024xf32>
    %cst_17 = arith.constant 1.000000e+00 : f32
    %64 = vector.broadcast %cst_17 : f32 to vector<8x1024xf32>
    %65 = arith.addf %64, %63 : vector<8x1024xf32>
    %66 = tpu.reciprocal %65 {approx = true} : vector<8x1024xf32> -> vector<8x1024xf32>
    %cst_18 = arith.constant 1.000000e+00 : f32
    %67 = vector.broadcast %cst_18 : f32 to vector<8x1024xf32>
    %68 = arith.subf %67, %66 : vector<8x1024xf32>
    %cst_19 = arith.constant dense<0.000000e+00> : vector<16x1024xf32>
    %69 = tpu.matmul %27, %66, %cst_19 {dimension_numbers = #tpu.dot_dimension_numbers<[1], [0], [0], [1], [0, 0, 1, 1], [], []>} : vector<16x8xf32>, vector<8x1024xf32>, vector<16x1024xf32> -> vector<16x1024xf32>
    %70 = arith.mulf %69, %56 : vector<16x1024xf32>
    %cst_20 = arith.constant dense<0.000000e+00> : vector<16x1024xf32>
    %71 = tpu.matmul %27, %68, %cst_20 {dimension_numbers = #tpu.dot_dimension_numbers<[1], [0], [0], [1], [0, 0, 1, 1], [], []>} : vector<16x8xf32>, vector<8x1024xf32>, vector<16x1024xf32> -> vector<16x1024xf32>
    %72 = arith.mulf %71, %57 : vector<16x1024xf32>
    %73 = arith.addf %70, %72 : vector<16x1024xf32>
    %74 = arith.mulf %53, %54 : vector<16x1024xf32>
    %cst_21 = arith.constant dense<0.000000e+00> : vector<8x1024xf32>
    %75 = tpu.matmul %14, %74, %cst_21 {dimension_numbers = #tpu.dot_dimension_numbers<[1], [0], [0], [1], [0, 0, 1, 1], [], []>} : vector<8x16xf32>, vector<16x1024xf32>, vector<8x1024xf32> -> vector<8x1024xf32>
    %76 = arith.mulf %53, %55 : vector<16x1024xf32>
    %cst_22 = arith.constant dense<0.000000e+00> : vector<8x1024xf32>
    %77 = tpu.matmul %14, %76, %cst_22 {dimension_numbers = #tpu.dot_dimension_numbers<[1], [0], [0], [1], [0, 0, 1, 1], [], []>} : vector<8x16xf32>, vector<16x1024xf32>, vector<8x1024xf32> -> vector<8x1024xf32>
    %78 = arith.subf %77, %75 : vector<8x1024xf32>
    %79 = math.exp %78 : vector<8x1024xf32>
    %cst_23 = arith.constant 1.000000e+00 : f32
    %80 = vector.broadcast %cst_23 : f32 to vector<8x1024xf32>
    %81 = arith.addf %80, %79 : vector<8x1024xf32>
    %82 = tpu.reciprocal %81 {approx = true} : vector<8x1024xf32> -> vector<8x1024xf32>
    %cst_24 = arith.constant 1.000000e+00 : f32
    %83 = vector.broadcast %cst_24 : f32 to vector<8x1024xf32>
    %84 = arith.subf %83, %82 : vector<8x1024xf32>
    %cst_25 = arith.constant dense<0.000000e+00> : vector<16x1024xf32>
    %85 = tpu.matmul %27, %82, %cst_25 {dimension_numbers = #tpu.dot_dimension_numbers<[1], [0], [0], [1], [0, 0, 1, 1], [], []>} : vector<16x8xf32>, vector<8x1024xf32>, vector<16x1024xf32> -> vector<16x1024xf32>
    %86 = arith.mulf %85, %56 : vector<16x1024xf32>
    %cst_26 = arith.constant dense<0.000000e+00> : vector<16x1024xf32>
    %87 = tpu.matmul %27, %84, %cst_26 {dimension_numbers = #tpu.dot_dimension_numbers<[1], [0], [0], [1], [0, 0, 1, 1], [], []>} : vector<16x8xf32>, vector<8x1024xf32>, vector<16x1024xf32> -> vector<16x1024xf32>
    %88 = arith.mulf %87, %57 : vector<16x1024xf32>
    %89 = arith.addf %86, %88 : vector<16x1024xf32>
    %90 = tpu.concatenate %73, %89 in 1 : vector<16x1024xf32>, vector<16x1024xf32> -> vector<16x2048xf32>
    %cst_27 = arith.constant dense<0.000000e+00> : vector<16x2048xf32>
    %91 = tpu.matmul %36, %90, %cst_27 {dimension_numbers = #tpu.dot_dimension_numbers<[1], [0], [0], [1], [0, 0, 1, 1], [], []>} : vector<16x16xf32>, vector<16x2048xf32>, vector<16x2048xf32> -> vector<16x2048xf32>
    %92 = vector.broadcast %39 : vector<16x1xf32> to vector<16x2048xf32>
    %93 = arith.addf %91, %92 : vector<16x2048xf32>
    %94 = arith.addf %28, %93 : vector<16x2048xf32>
    %cst_28 = arith.constant dense<0.000000e+00> : vector<2048xf32>
    %95 = vector.multi_reduction <add>, %94, %cst_28 [0] : vector<16x2048xf32> to vector<2048xf32>
    %96 = vector.shape_cast %95 : vector<2048xf32> to vector<1x2048xf32>
    %cst_29 = arith.constant 1.600000e+01 : f32
    %97 = vector.broadcast %cst_29 : f32 to vector<1x2048xf32>
    %98 = arith.divf %96, %97 : vector<1x2048xf32>
    %99 = vector.broadcast %98 : vector<1x2048xf32> to vector<16x2048xf32>
    %100 = arith.subf %94, %99 : vector<16x2048xf32>
    %101 = arith.mulf %100, %100 : vector<16x2048xf32>
    %cst_30 = arith.constant dense<0.000000e+00> : vector<2048xf32>
    %102 = vector.multi_reduction <add>, %101, %cst_30 [0] : vector<16x2048xf32> to vector<2048xf32>
    %103 = vector.shape_cast %102 : vector<2048xf32> to vector<1x2048xf32>
    %cst_31 = arith.constant 1.600000e+01 : f32
    %104 = vector.broadcast %cst_31 : f32 to vector<1x2048xf32>
    %105 = arith.divf %103, %104 : vector<1x2048xf32>
    %cst_32 = arith.constant 9.99999974E-6 : f32
    %106 = vector.broadcast %cst_32 : f32 to vector<1x2048xf32>
    %107 = arith.addf %105, %106 : vector<1x2048xf32>
    %108 = math.rsqrt %107 : vector<1x2048xf32>
    %109 = vector.broadcast %108 : vector<1x2048xf32> to vector<16x2048xf32>
    %110 = arith.mulf %100, %109 : vector<16x2048xf32>
    %111 = vector.broadcast %40 : vector<16x1xf32> to vector<16x2048xf32>
    %112 = arith.mulf %110, %111 : vector<16x2048xf32>
    %113 = vector.broadcast %41 : vector<16x1xf32> to vector<16x2048xf32>
    %114 = arith.addf %112, %113 : vector<16x2048xf32>
    %cst_33 = arith.constant dense<0.000000e+00> : vector<32x2048xf32>
    %115 = tpu.matmul %37, %114, %cst_33 {dimension_numbers = #tpu.dot_dimension_numbers<[1], [0], [0], [1], [0, 0, 1, 1], [], []>} : vector<32x16xf32>, vector<16x2048xf32>, vector<32x2048xf32> -> vector<32x2048xf32>
    %116 = vector.broadcast %42 : vector<32x1xf32> to vector<32x2048xf32>
    %117 = arith.addf %115, %116 : vector<32x2048xf32>
    %cst_34 = arith.constant 0.000000e+00 : f32
    %118 = vector.broadcast %cst_34 : f32 to vector<32x2048xf32>
    %119 = arith.maximumf %117, %118 : vector<32x2048xf32>
    %cst_35 = arith.constant dense<0.000000e+00> : vector<16x2048xf32>
    %120 = tpu.matmul %32, %119, %cst_35 {dimension_numbers = #tpu.dot_dimension_numbers<[1], [0], [0], [1], [0, 0, 1, 1], [], []>} : vector<16x32xf32>, vector<32x2048xf32>, vector<16x2048xf32> -> vector<16x2048xf32>
    %121 = vector.broadcast %43 : vector<16x1xf32> to vector<16x2048xf32>
    %122 = arith.addf %120, %121 : vector<16x2048xf32>
    %123 = arith.addf %114, %122 : vector<16x2048xf32>
    %cst_36 = arith.constant dense<0.000000e+00> : vector<2048xf32>
    %124 = vector.multi_reduction <add>, %123, %cst_36 [0] : vector<16x2048xf32> to vector<2048xf32>
    %125 = vector.shape_cast %124 : vector<2048xf32> to vector<1x2048xf32>
    %cst_37 = arith.constant 1.600000e+01 : f32
    %126 = vector.broadcast %cst_37 : f32 to vector<1x2048xf32>
    %127 = arith.divf %125, %126 : vector<1x2048xf32>
    %128 = vector.broadcast %127 : vector<1x2048xf32> to vector<16x2048xf32>
    %129 = arith.subf %123, %128 : vector<16x2048xf32>
    %130 = arith.mulf %129, %129 : vector<16x2048xf32>
    %cst_38 = arith.constant dense<0.000000e+00> : vector<2048xf32>
    %131 = vector.multi_reduction <add>, %130, %cst_38 [0] : vector<16x2048xf32> to vector<2048xf32>
    %132 = vector.shape_cast %131 : vector<2048xf32> to vector<1x2048xf32>
    %cst_39 = arith.constant 1.600000e+01 : f32
    %133 = vector.broadcast %cst_39 : f32 to vector<1x2048xf32>
    %134 = arith.divf %132, %133 : vector<1x2048xf32>
    %cst_40 = arith.constant 9.99999974E-6 : f32
    %135 = vector.broadcast %cst_40 : f32 to vector<1x2048xf32>
    %136 = arith.addf %134, %135 : vector<1x2048xf32>
    %137 = math.rsqrt %136 : vector<1x2048xf32>
    %138 = vector.broadcast %137 : vector<1x2048xf32> to vector<16x2048xf32>
    %139 = arith.mulf %129, %138 : vector<16x2048xf32>
    %140 = vector.broadcast %44 : vector<16x1xf32> to vector<16x2048xf32>
    %141 = arith.mulf %139, %140 : vector<16x2048xf32>
    %142 = vector.broadcast %45 : vector<16x1xf32> to vector<16x2048xf32>
    %143 = arith.addf %141, %142 : vector<16x2048xf32>
    %144 = vector.extract_strided_slice %143 {offsets = [0, 0], sizes = [16, 1024], strides = [1, 1]} : vector<16x2048xf32> to vector<16x1024xf32>
    %cst_41 = arith.constant dense<0.000000e+00> : vector<1024xf32>
    %145 = vector.multi_reduction <add>, %144, %cst_41 [0] : vector<16x1024xf32> to vector<1024xf32>
    %146 = vector.shape_cast %145 : vector<1024xf32> to vector<1x1024xf32>
    %147 = vector.extract_strided_slice %143 {offsets = [0, 1024], sizes = [16, 1024], strides = [1, 1]} : vector<16x2048xf32> to vector<16x1024xf32>
    %cst_42 = arith.constant dense<0.000000e+00> : vector<1024xf32>
    %148 = vector.multi_reduction <add>, %147, %cst_42 [0] : vector<16x1024xf32> to vector<1024xf32>
    %149 = vector.shape_cast %148 : vector<1024xf32> to vector<1x1024xf32>
    %150 = tpu.concatenate %146, %149 in 0 : vector<1x1024xf32>, vector<1x1024xf32> -> vector<2x1024xf32>
    %c0_43 = arith.constant 0 : index
    %c0_44 = arith.constant 0 : index
    %151 = vector.load %arg4[%c0_43, %c0_44] : memref<1025x32xf32, #tpu.memory_space<vmem>>, vector<1024x32xf32>
    %c1024 = arith.constant 1024 : index
    %c0_45 = arith.constant 0 : index
    %152 = vector.load %arg4[%c1024, %c0_45] : memref<1025x32xf32, #tpu.memory_space<vmem>>, vector<1x32xf32>
    %cst_46 = arith.constant dense<0.000000e+00> : vector<2x32xf32>
    %153 = tpu.matmul %150, %151, %cst_46 {dimension_numbers = #tpu.dot_dimension_numbers<[1], [0], [0], [1], [0, 0, 1, 1], [], []>} : vector<2x1024xf32>, vector<1024x32xf32>, vector<2x32xf32> -> vector<2x32xf32>
    %154 = vector.broadcast %152 : vector<1x32xf32> to vector<2x32xf32>
    %155 = arith.addf %153, %154 : vector<2x32xf32>
    %c0_47 = arith.constant 0 : index
    %c0_48 = arith.constant 0 : index
    %156 = vector.load %arg5[%c0_47, %c0_48] : memref<2x32xf32, #tpu.memory_space<vmem>>, vector<2x32xf32>
    tpu.vector_store %arg5[%c0_47, %c0_48], %155 {strides = array<i32>} : memref<2x32xf32, #tpu.memory_space<vmem>>, vector<2x32xf32>,
    return
  }
}

</mosaic_0001>

<bundles_post_ra>
// kernel: fpe_forward.1
= control target key start
LH: loop header
LB: loop body
LE: loop exit
PB: predicated region body
PF: predicated region fallthrough
CT: control target
= control target key end

     0   :  { %v11169_v7 = vmov 0.0   ;;  %v8077_v12 = vmov 0   ;;  %vm146_vm0 = vcmask 130048   ;;  %s11163_s0 = inlined_call_operand.vmem [shape: f32[16,2048], index: 0, kind: input, shape index: {}]   ;;  %s11164_s1 = inlined_call_operand.vmem [shape: f32[1,96,16], index: 1, kind: input, shape index: {}]   ;;  %s11165_s2 = inlined_call_operand.vmem [shape: f32[1,16,32], index: 2, kind: input, shape index: {}]   ;;  %s11166_s3 = inlined_call_operand.vmem [shape: f32[1,176,1], index: 3, kind: input, shape index: {}]   ;;  %s11167_s4 = inlined_call_operand.vmem [shape: f32[1025,32], index: 4, kind: input, shape index: {}]   ;;  %s11168_s5 = inlined_call_operand.hbm [shape: f32[2,32], index: 5, kind: output, shape index: {}]  }
   0x1   :  { %v49_v0 = vld [vmem:[%s11163_s0 + $0x8] sm:$0xff]  ;;  %v51_v2 = vld [vmem:[%s11163_s0 + $0x18] sm:$0xff]  ;;  %v48_v5 = vld [vmem:[%s11163_s0] sm:$0xff]  ;;  %229 = vmatprep.mubr.f32.mxu0 %v11169_v7  ;;  %330 = vmatprep.mubr.f32.mxu1 %v11169_v7 }
   0x2   :  { %v65_v1 = vld [vmem:[%s11163_s0 + $0x88] sm:$0xff]  ;;  %v67_v4 = vld [vmem:[%s11163_s0 + $0x98] sm:$0xff]  ;;  %v64_v6 = vld [vmem:[%s11163_s0 + $0x80] sm:$0xff]  ;;  %7890 = vset.pattern.permute.xlu0 %v8077_v12  ;;  %7891 = vset.pattern.permute.xlu1 %v8077_v12 }
   0x3   :  { %v7535_v3 = vpack.c.bf16 %v65_v1, %v49_v0  ;;  %v7539_v8 = vpack.c.bf16 %v67_v4, %v51_v2  ;;  %v7537_v9 = vpack.c.bf16 %v64_v6, %v48_v5  ;;  %v50_v10 = vld [vmem:[%s11163_s0 + $0x10] sm:$0xff]  ;;  %v8138_v14 = vld [vmem:[%s11164_s1] sm:$0xff]  ;;  %v53_v15 = vld [vmem:[%s11163_s0 + $0x28] sm:$0xff] }
   0x4   :  { %v66_v11 = vld [vmem:[%s11163_s0 + $0x90] sm:$0xff]  ;;  %v69_v16 = vld [vmem:[%s11163_s0 + $0xa8] sm:$0xff]  ;;  %v52_v17 = vld [vmem:[%s11163_s0 + $0x20] sm:$0xff] }
   0x5   :  { %7536 = vmatprep.subr.bf16.mxu0 %v7535_v3  ;;  %v7541_v13 = vpack.c.bf16 %v66_v11, %v50_v10  ;;  %7540 = vmatprep.subr.bf16.mxu1 %v7539_v8  ;;  %v7543_v18 = vpack.c.bf16 %v69_v16, %v53_v15  ;;  %v68_v19 = vld [vmem:[%s11163_s0 + $0xa0] sm:$0xff]  ;;  %v55_v20 = vld [vmem:[%s11163_s0 + $0x38] sm:$0xff]  ;;  %v54_v24 = vld [vmem:[%s11163_s0 + $0x30] sm:$0xff] }
   0x6   :  { %7538 = vmatpush1.bf16.msra.mxu0 %v7537_v9  ;;  %v71_v21 = vld [vmem:[%s11163_s0 + $0xb8] sm:$0xff]  ;;  %v7545_v22 = vpack.c.bf16 %v68_v19, %v52_v17  ;;  %v70_v25 = vld [vmem:[%s11163_s0 + $0xb0] sm:$0xff]  ;;  %v57_v27 = vld [vmem:[%s11163_s0 + $0x48] sm:$0xff] }
   0x7   :  { %7542 = vmatpush1.bf16.msra.mxu1 %v7541_v13  ;;  %v7547_v23 = vpack.c.bf16 %v71_v21, %v55_v20  ;;  %7544 = vmatprep.subr.bf16.mxu0 %v7543_v18  ;;  %v7549_v26 = vpack.c.bf16 %v70_v25, %v54_v24  ;;  %v73_v28 = vld [vmem:[%s11163_s0 + $0xc8] sm:$0xff]  ;;  %v59_v31 = vld [vmem:[%s11163_s0 + $0x58] sm:$0xff]  ;;  %v8195_v34 = vld [vmem:[%s11164_s1 + $0x10] sm:$0xff] }
   0x8   :  { %v8178_v29 = vld [vmem:[%s11164_s1 + $0x8] sm:$0xff]  ;;  %v7551_v30 = vpack.c.bf16 %v73_v28, %v57_v27  ;;  %v75_v32 = vld [vmem:[%s11163_s0 + $0xd8] sm:$0xff]  ;;  %v94_v35 = vld [vmem:[%s11166_s3] sm:$0xff] }
   0x9   :  { %7234 = vmatmul.mubr.msk.f32.vlgmr.msra.gmra.mrb[0].mxu0 %vm146_vm0, %v8138_v14  ;;  %7548 = vmatprep.subr.bf16.mxu1 %v7547_v23  ;;  %v7555_v33 = vpack.c.bf16 %v75_v32, %v59_v31  ;;  %v96_v36 = vld [vmem:[%s11166_s3 + $0x10] sm:$0xff]  ;;  %v95_v37 = vld [vmem:[%s11166_s3 + $0x8] sm:$0xff]  ;;  %v97_v38 = vld [vmem:[%s11166_s3 + $0x18] sm:$0xff] }
   0xa   :  { %7240 = vmatmul.mubr.msk.f32.vlgmr.msra.gmra.mrb[0].mxu1 %vm146_vm0, %v8138_v14  ;;  %235 = vmatprep.mubr.f32.mxu0 %v11169_v7  ;;  %v8218_v39 = vld [vmem:[%s11164_s1 + $0x18] sm:$0xff]  ;;  %v98_v40 = vld [vmem:[%s11166_s3 + $0x20] sm:$0xff]  ;;  %v99_v41 = vld [vmem:[%s11166_s3 + $0x28] sm:$0xff] }
   0xb   :  { %336 = vmatprep.mubr.f32.mxu1 %v11169_v7  ;;  %7546 = vmatpush1.bf16.msra.mxu0 %v7545_v22  ;;  %v8235_v42 = vld [vmem:[%s11164_s1 + $0x20] sm:$0xff] }
   0xc   :  { %7552 = vmatprep.subr.bf16.mxu0 %v7551_v30  ;;  %7550 = vmatpush1.bf16.msra.mxu1 %v7549_v26 }
   0xd   :  { %7235 = vmatmul.mubr.msk.f32.gmra.mrb[2].mxu0 %vm146_vm0, %v8178_v29  ;;  %7556 = vmatprep.subr.bf16.mxu1 %v7555_v33 }
   0xe   :  { %7241 = vmatmul.mubr.msk.f32.gmra.mrb[2].mxu1 %vm146_vm0, %v8178_v29  ;;  %241 = vmatprep.mubr.f32.mxu0 %v11169_v7 }
   0xf   :  { %342 = vmatprep.mubr.f32.mxu1 %v11169_v7  ;;  %118 = vperm.xlu0 %7890, %v94_v35  }
  0x10   :  { %128 = vperm.xlu1 %7891, %v96_v36  }
  0x11   :  { %7236 = vmatmul.mubr.msk.f32.gmra.mrb[4].mxu0 %vm146_vm0, %v8195_v34 }
  0x12   :  { %7242 = vmatmul.mubr.msk.f32.gmra.mrb[4].mxu1 %vm146_vm0, %v8195_v34  ;;  %247 = vmatprep.mubr.f32.mxu0 %v11169_v7 }
  0x13   :  { %348 = vmatprep.mubr.f32.mxu1 %v11169_v7  ;;  %123 = vperm.xlu0 %7890, %v95_v37  }
  0x14   :  { %133 = vperm.xlu1 %7891, %v97_v38  }
  0x15   :  { %7237 = vmatmul.mubr.msk.f32.gmra.mrb[6].mxu0 %vm146_vm0, %v8218_v39 }
  0x16   :  { %7243 = vmatmul.mubr.msk.f32.gmra.mrb[6].mxu1 %vm146_vm0, %v8218_v39  ;;  %253 = vmatprep.mubr.f32.mxu0 %v11169_v7 }
  0x17   :  { %10 = vsyncpa [#allocation3], 0  ;;  %354 = vmatprep.mubr.f32.mxu1 %v11169_v7  ;;  %138 = vperm.xlu0 %7890, %v98_v40   ;;  %v101_v43 = vld [vmem:[%s11166_s3 + $0x38] sm:$0xff]  ;;  %v100_v44 = vld [vmem:[%s11166_s3 + $0x30] sm:$0xff]  ;;  %vm1624_vm9 = vcmask 64512   ;;  %vm5558_vm11 = vcmask 261120  }
  0x18   :  { %143 = vperm.xlu1 %7891, %v99_v41   ;;  %v8252_v45 = vld [vmem:[%s11164_s1 + $0x28] sm:$0xff]  ;;  %v56_v46 = vld [vmem:[%s11163_s0 + $0x40] sm:$0xff]  ;;  %v58_v48 = vld [vmem:[%s11163_s0 + $0x50] sm:$0xff]  ;;  %vm6793_vm12 = vcmask 1040384   ;;  %s8078_s9 = smov [#allocation2]   ;;  %vm7215_vm13 = vcmask 254976  }
  0x19   :  { %7238 = vmatmul.mubr.msk.f32.gmra.mrb[8].mxu0 %vm146_vm0, %v8235_v42  ;;  %v72_v47 = vld [vmem:[%s11163_s0 + $0xc0] sm:$0xff]  ;;  %v74_v49 = vld [vmem:[%s11163_s0 + $0xd0] sm:$0xff]  ;;  %v61_v50 = vld [vmem:[%s11163_s0 + $0x68] sm:$0xff]  ;;  %s7223_s10 = sshll.u32 %s8078_s9, 4  ;;  %s7224_s10 = int_to_ptr.vmem [resolvable:$true] %s7223_s10 }
  0x1a   :  { %7244 = vmatmul.mubr.msk.f32.gmra.mrb[8].mxu1 %vm146_vm0, %v8235_v42  ;;  %259 = vmatprep.mubr.f32.mxu0 %v11169_v7  ;;  %v77_v51 = vld [vmem:[%s11163_s0 + $0xe8] sm:$0xff]  ;;  %v102_v53 = vld [vmem:[%s11166_s3 + $0x40] sm:$0xff]  ;;  %v63_v54 = vld [vmem:[%s11163_s0 + $0x78] sm:$0xff]  ;;  %v7553_v56 = vpack.c.bf16 %v72_v47, %v56_v46  ;;  %v7557_v57 = vpack.c.bf16 %v74_v49, %v58_v48  ;;  %p8057_p1 = scmp.lt.s32.totalorder %s7224_s10, %s7224_s10 }
  0x1b   :  { %360 = vmatprep.mubr.f32.mxu1 %v11169_v7  ;;  %3609 = vperm.xlu0 %7890, %v100_v44   ;;  %v103_v52 = vld [vmem:[%s11166_s3 + $0x48] sm:$0xff]  ;;  %v79_v55 = vld [vmem:[%s11163_s0 + $0xf8] sm:$0xff]  ;;  %v7559_v58 = vpack.c.bf16 %v77_v51, %v61_v50  ;;  %v104_v61 = vld [vmem:[%s11166_s3 + $0x50] sm:$0xff] }
  0x1c   :  { %3614 = vperm.xlu1 %7891, %v101_v43   ;;  %v7563_v59 = vpack.c.bf16 %v79_v55, %v63_v54  ;;  %v105_v60 = vld [vmem:[%s11166_s3 + $0x58] sm:$0xff]  ;;  %v107_v62 = vld [vmem:[%s11166_s3 + $0x68] sm:$0xff]  ;;  %v106_v63 = vld [vmem:[%s11166_s3 + $0x60] sm:$0xff] }
  0x1d   :  { %7239 = vmatmul.mubr.msk.f32.gmra.mrb[10].mxu0 %vm146_vm0, %v8252_v45  ;;  %v109_v0 = vld [vmem:[%s11166_s3 + $0x78] sm:$0xff]  ;;  %v108_v1 = vld [vmem:[%s11166_s3 + $0x70] sm:$0xff]  ;;  %v111_v2 = vld [vmem:[%s11166_s3 + $0x88] sm:$0xff] }
  0x1e   :  { %7245 = vmatmul.mubr.msk.f32.gmra.mrb[10].mxu1 %vm146_vm0, %v8252_v45  ;;  %431 = vmatprep.mubr.f32.mxu0 %v11169_v7  ;;  %v110_v3 = vld [vmem:[%s11166_s3 + $0x80] sm:$0xff]  ;;  %v113_v6 = vld [vmem:[%s11166_s3 + $0x98] sm:$0xff]  ;;  %v62_v8 = vld [vmem:[%s11163_s0 + $0x70] sm:$0xff] }
  0x1f   :  { %532 = vmatprep.mubr.f32.mxu1 %v11169_v7  ;;  %4658 = vperm.xlu0 %7890, %v102_v53   ;;  %v60_v4 = vld [vmem:[%s11163_s0 + $0x60] sm:$0xff]  ;;  %v78_v9 = vld [vmem:[%s11163_s0 + $0xf0] sm:$0xff]  ;;  %v115_v13 = vld [vmem:[%s11166_s3 + $0xa8] sm:$0xff] }
  0x20   :  { %4663 = vperm.xlu1 %7891, %v103_v52   ;;  %v76_v5 = vld [vmem:[%s11163_s0 + $0xe0] sm:$0xff]  ;;  %v112_v10 = vld [vmem:[%s11166_s3 + $0x90] sm:$0xff]  ;;  %v7565_v12 = vpack.c.bf16 %v78_v9, %v62_v8 }
  0x21   :  { %7246 = vmatmul.mubr.msk.f32.vlgmr.msra.gmra.mrb[12].mxu0 %vm146_vm0, %v8138_v14  ;;  %v7561_v11 = vpack.c.bf16 %v76_v5, %v60_v4  ;;  %v114_v15 = vld [vmem:[%s11166_s3 + $0xa0] sm:$0xff] }
  0x22   :  { %7252 = vmatmul.mubr.msk.f32.vlgmr.msra.gmra.mrb[12].mxu1 %vm146_vm0, %v8138_v14  ;;  %437 = vmatprep.mubr.f32.mxu0 %v11169_v7 }
  0x23   :  { %538 = vmatprep.mubr.f32.mxu1 %v11169_v7  ;;  %7554 = vmatpush1.bf16.msra.mxu0 %v7553_v56 }
  0x24   :  { %7558 = vmatpush1.bf16.msra.mxu1 %v7557_v57  ;;  %7560 = vmatprep.subr.bf16.mxu0 %v7559_v58 }
  0x25   :  { %7247 = vmatmul.mubr.msk.f32.gmra.mrb[14].mxu0 %vm146_vm0, %v8178_v29  ;;  %7564 = vmatprep.subr.bf16.mxu1 %v7563_v59 }
  0x26   :  { %7253 = vmatmul.mubr.msk.f32.gmra.mrb[14].mxu1 %vm146_vm0, %v8178_v29  ;;  %443 = vmatprep.mubr.f32.mxu0 %v11169_v7 }
  0x27   :  { %544 = vmatprep.mubr.f32.mxu1 %v11169_v7  ;;  %4705 = vperm.xlu1 %7891, %v105_v60  }
  0x28   :  { %4700 = vperm.xlu0 %7890, %v104_v61  }
  0x29   :  { %7248 = vmatmul.mubr.msk.f32.gmra.mrb[16].mxu0 %vm146_vm0, %v8195_v34 }
  0x2a   :  { %7254 = vmatmul.mubr.msk.f32.gmra.mrb[16].mxu1 %vm146_vm0, %v8195_v34  ;;  %449 = vmatprep.mubr.f32.mxu0 %v11169_v7 }
  0x2b   :  { %550 = vmatprep.mubr.f32.mxu1 %v11169_v7  ;;  %4747 = vperm.xlu1 %7891, %v107_v62  }
  0x2c   :  { %4742 = vperm.xlu0 %7890, %v106_v63  }
  0x2d   :  { %7249 = vmatmul.mubr.msk.f32.gmra.mrb[18].mxu0 %vm146_vm0, %v8218_v39 }
  0x2e   :  { %7255 = vmatmul.mubr.msk.f32.gmra.mrb[18].mxu1 %vm146_vm0, %v8218_v39  ;;  %455 = vmatprep.mubr.f32.mxu0 %v11169_v7 }
  0x2f   :  { %556 = vmatprep.mubr.f32.mxu1 %v11169_v7  ;;  %4757 = vperm.xlu1 %7891, %v109_v0  }
  0x30   :  { %4752 = vperm.xlu0 %7890, %v108_v1  }
  0x31   :  { %7250 = vmatmul.mubr.msk.f32.gmra.mrb[20].mxu0 %vm146_vm0, %v8235_v42 }
  0x32   :  { %7256 = vmatmul.mubr.msk.f32.gmra.mrb[20].mxu1 %vm146_vm0, %v8235_v42  ;;  %461 = vmatprep.mubr.f32.mxu0 %v11169_v7 }
  0x33   :  { %562 = vmatprep.mubr.f32.mxu1 %v11169_v7  ;;  %5555 = vperm.xlu1 %7891, %v111_v2  }
  0x34   :  { %5550 = vperm.xlu0 %7890, %v110_v3  }
  0x35   :  { %7251 = vmatmul.mubr.msk.f32.gmra.mrb[22].mxu0 %vm146_vm0, %v8252_v45 }
  0x36   :  { %7257 = vmatmul.mubr.msk.f32.gmra.mrb[22].mxu1 %vm146_vm0, %v8252_v45  ;;  %633 = vmatprep.mubr.f32.mxu0 %v11169_v7 }
  0x37   :  { %734 = vmatprep.mubr.f32.mxu1 %v11169_v7  ;;  %6604 = vperm.xlu1 %7891, %v113_v6  }
  0x38   :  { %6599 = vperm.xlu0 %7890, %v112_v10  }
  0x39   :  { %7258 = vmatmul.mubr.msk.f32.vlgmr.msra.gmra.mrb[24].mxu0 %vm146_vm0, %v8138_v14 }
  0x3a   :  { %7264 = vmatmul.mubr.msk.f32.vlgmr.msra.gmra.mrb[24].mxu1 %vm146_vm0, %v8138_v14  ;;  %639 = vmatprep.mubr.f32.mxu0 %v11169_v7 }
  0x3b   :  { %740 = vmatprep.mubr.f32.mxu1 %v11169_v7  ;;  %7562 = vmatpush1.bf16.msra.mxu0 %v7561_v11 }
  0x3c   :  { %7566 = vmatpush1.bf16.msra.mxu1 %v7565_v12  ;;  %6646 = vperm.xlu1 %7891, %v115_v13  }
  0x3d   :  { %7259 = vmatmul.mubr.msk.f32.gmra.mrb[26].mxu0 %vm146_vm0, %v8178_v29  ;;  %6641 = vperm.xlu0 %7890, %v114_v15  }
  0x3e   :  { %7265 = vmatmul.mubr.msk.f32.gmra.mrb[26].mxu1 %vm146_vm0, %v8178_v29  ;;  %645 = vmatprep.mubr.f32.mxu0 %v11169_v7 }
  0x3f   :  { %746 = vmatprep.mubr.f32.mxu1 %v11169_v7 }
  0x41   :  { %7260 = vmatmul.mubr.msk.f32.gmra.mrb[28].mxu0 %vm146_vm0, %v8195_v34 }
  0x42   :  { %7266 = vmatmul.mubr.msk.f32.gmra.mrb[28].mxu1 %vm146_vm0, %v8195_v34  ;;  %651 = vmatprep.mubr.f32.mxu0 %v11169_v7 }
  0x43   :  { %752 = vmatprep.mubr.f32.mxu1 %v11169_v7 }
  0x45   :  { %7261 = vmatmul.mubr.msk.f32.gmra.mrb[30].mxu0 %vm146_vm0, %v8218_v39 }
  0x46   :  { %7267 = vmatmul.mubr.msk.f32.gmra.mrb[30].mxu1 %vm146_vm0, %v8218_v39  ;;  %657 = vmatprep.mubr.f32.mxu0 %v11169_v7 }
  0x47   :  { %758 = vmatprep.mubr.f32.mxu1 %v11169_v7 }
  0x49   :  { %7262 = vmatmul.mubr.msk.f32.gmra.mrb[32].mxu0 %vm146_vm0, %v8235_v42 }
  0x4a   :  { %7268 = vmatmul.mubr.msk.f32.gmra.mrb[32].mxu1 %vm146_vm0, %v8235_v42  ;;  %663 = vmatprep.mubr.f32.mxu0 %v11169_v7 }
  0x4b   :  { %764 = vmatprep.mubr.f32.mxu1 %v11169_v7 }
  0x4d   :  { %7263 = vmatmul.mubr.msk.f32.gmra.mrb[34].mxu0 %vm146_vm0, %v8252_v45 }
  0x4e   :  { %7269 = vmatmul.mubr.msk.f32.gmra.mrb[34].mxu1 %vm146_vm0, %v8252_v45  ;;  %835 = vmatprep.mubr.f32.mxu0 %v11169_v7 }
  0x4f   :  { %936 = vmatprep.mubr.f32.mxu1 %v11169_v7 }
  0x51   :  { %7270 = vmatmul.mubr.msk.f32.vlgmr.msra.gmra.mrb[36].mxu0 %vm146_vm0, %v8138_v14 }
  0x52   :  { %7276 = vmatmul.mubr.msk.f32.vlgmr.msra.gmra.mrb[36].mxu1 %vm146_vm0, %v8138_v14  ;;  %841 = vmatprep.mubr.f32.mxu0 %v11169_v7  ;;  %v21_v14 = vlaneseq }
  0x53   :  { %942 = vmatprep.mubr.f32.mxu1 %v11169_v7 }
  0x54   :  { %v8447_v16 = vshrl.u32 %v21_v14, 7  ;;  %v8454_v27 = vand.u32 127, %v21_v14 }
  0x55   :  { %7271 = vmatmul.mubr.msk.f32.gmra.mrb[38].mxu0 %vm146_vm0, %v8178_v29 }
  0x56   :  { %7277 = vmatmul.mubr.msk.f32.gmra.mrb[38].mxu1 %vm146_vm0, %v8178_v29  ;;  %847 = vmatprep.mubr.f32.mxu0 %v11169_v7  ;;  %v27_v22 = vadd.s32 1, %v8447_v16  ;;  %v25_v28 = vmul.u32 2, %v8447_v16 }
  0x57   :  { %948 = vmatprep.mubr.f32.mxu1 %v11169_v7 }
  0x58   :  { %v28_v30 = vmul.u32 2, %v27_v22  ;;  %vm8466_vm1 = vcmp.ge.s32.totalorder %v8454_v27, %v25_v28 }
  0x59   :  { %7272 = vmatmul.mubr.msk.f32.gmra.mrb[40].mxu0 %vm146_vm0, %v8195_v34 }
  0x5a   :  { %7278 = vmatmul.mubr.msk.f32.gmra.mrb[40].mxu1 %vm146_vm0, %v8195_v34  ;;  %853 = vmatprep.mubr.f32.mxu0 %v11169_v7  ;;  %vm8493_vm2 = vcmp.lt.s32.totalorder %v8454_v27, %v28_v30 }
  0x5b   :  { %954 = vmatprep.mubr.f32.mxu1 %v11169_v7  ;;  %vm30_vm3 = vmand %vm8466_vm1, %vm8493_vm2 }
  0x5c   :  { %v7231_v8 = vsel %vm30_vm3, 1.0, %v11169_v7 }
  0x5d   :  { %7273 = vmatmul.mubr.msk.f32.gmra.mrb[42].mxu0 %vm146_vm0, %v8218_v39  ;;  %v8550_v15 = vmul.f32 0.70710677, %v7231_v8 }
  0x5e   :  { %7279 = vmatmul.mubr.msk.f32.gmra.mrb[42].mxu1 %vm146_vm0, %v8218_v39  ;;  %859 = vmatprep.mubr.f32.mxu0 %v11169_v7 }
  0x5f   :  { %960 = vmatprep.mubr.f32.mxu1 %v11169_v7 }
  0x61   :  { %7274 = vmatmul.mubr.msk.f32.gmra.mrb[44].mxu0 %vm146_vm0, %v8235_v42 }
  0x62   :  { %7280 = vmatmul.mubr.msk.f32.gmra.mrb[44].mxu1 %vm146_vm0, %v8235_v42  ;;  %865 = vmatprep.mubr.f32.mxu0 %v11169_v7 }
  0x63   :  { %966 = vmatprep.mubr.f32.mxu1 %v11169_v7 }
  0x65   :  { %7275 = vmatmul.mubr.msk.f32.gmra.mrb[46].mxu0 %vm146_vm0, %v8252_v45 }
  0x66   :  { %7281 = vmatmul.mubr.msk.f32.gmra.mrb[46].mxu1 %vm146_vm0, %v8252_v45  ;;  %1056 = vmatprep.mubr.f32.mxu0 %v11169_v7 }
  0x67   :  { %1127 = vmatprep.mubr.f32.mxu1 %v11169_v7 }
  0x8e   :  { %v8449_v20 = vpop.permute.xlu0 %118 }
  0x8f   :  { %v8452_v24 = vpop.permute.xlu1 %128 }
  0x92   :  { %v8457_v31 = vpop.permute.xlu0 %123 }
  0x93   :  { %v8482_v43 = vpop.permute.xlu1 %133 }
  0xdc   :  { %v231_v17 = vpop.f32.mrb[0].mxu0 }
  0xdd   :  { %v233_v18 = vpop.f32.mrb[1].mxu0  ;;  %v332_v19 = vpop.f32.mrb[0].mxu1  ;;  %v8460_v33 = vadd.f32 %v231_v17, %v8449_v20 }
  0xde   :  { %v334_v21 = vpop.f32.mrb[1].mxu1  ;;  %v8471_v38 = vadd.f32 %v233_v18, %v8449_v20  ;;  %v8474_v39 = vadd.f32 %v332_v19, %v8449_v20 }
  0xdf   :  { %v8485_v44 = vadd.f32 %v334_v21, %v8449_v20 }
  0xe0   :  { %v237_v23 = vpop.f32.mrb[2].mxu0 }
  0xe1   :  { %v239_v25 = vpop.f32.mrb[3].mxu0  ;;  %v338_v26 = vpop.f32.mrb[2].mxu1  ;;  %v8502_v51 = vadd.f32 %v237_v23, %v8457_v31 }
  0xe2   :  { %v340_v29 = vpop.f32.mrb[3].mxu1  ;;  %v8510_v56 = vadd.f32 %v239_v25, %v8457_v31  ;;  %v8513_v57 = vadd.f32 %v338_v26, %v8457_v31 }
  0xe3   :  { %v8526_v61 = vadd.f32 %v340_v29, %v8457_v31 }
  0xe4   :  { %v243_v32 = vpop.f32.mrb[4].mxu0 }
  0xe5   :  { %v8463_v34 = vadd.f32 %v243_v32, %v8452_v24  ;;  %v344_v35 = vpop.f32.mrb[4].mxu1  ;;  %v245_v36 = vpop.f32.mrb[5].mxu0 }
  0xe6   :  { %v8477_v40 = vadd.f32 %v344_v35, %v8452_v24  ;;  %v8480_v41 = vadd.f32 %v245_v36, %v8452_v24  ;;  %v346_v42 = vpop.f32.mrb[5].mxu1 }
  0xe7   :  { %v973_v45 = vmul.f32 %v8463_v34, %v8460_v33  ;;  %v8490_v46 = vadd.f32 %v346_v42, %v8452_v24 }
  0xe8   :  { %v975_v48 = vmul.f32 %v8477_v40, %v8474_v39  ;;  %v974_v49 = vmul.f32 %v8480_v41, %v8471_v38  ;;  %v249_v50 = vpop.f32.mrb[6].mxu0 }
  0xe9   :  { %v976_v52 = vmul.f32 %v8490_v46, %v8485_v44  ;;  %v8507_v53 = vadd.f32 %v249_v50, %v8482_v43  ;;  %v350_v54 = vpop.f32.mrb[6].mxu1  ;;  %v251_v55 = vpop.f32.mrb[7].mxu0 }
  0xea   :  { %v8516_v58 = vadd.f32 %v350_v54, %v8482_v43  ;;  %v8519_v59 = vadd.f32 %v251_v55, %v8482_v43  ;;  %v352_v60 = vpop.f32.mrb[7].mxu1 }
  0xeb   :  { %v981_v62 = vmul.f32 %v8507_v53, %v8502_v51  ;;  %v8531_v63 = vadd.f32 %v352_v60, %v8482_v43 }
  0xec   :  { %v983_v0 = vmul.f32 %v8516_v58, %v8513_v57  ;;  %v982_v1 = vmul.f32 %v8519_v59, %v8510_v56  ;;  %v8537_v2 = vpop.f32.mrb[8].mxu0 }
  0xed   :  { %v7569_v3 = vpack.c.bf16 %v981_v62, %v973_v45  ;;  %v984_v4 = vmul.f32 %v8531_v63, %v8526_v61  ;;  %v8541_v5 = vpop.f32.mrb[9].mxu0  ;;  %v8543_v6 = vpop.f32.mrb[8].mxu1 }
  0xee   :  { %11202 = vst [vmem:[#allocation5_spill] sm:$0xff] %v8541_v5  ;;  %11203 = vst [vmem:[#allocation6_spill] sm:$0xff] %v8543_v6  ;;  %v7573_v9 = vpack.c.bf16 %v983_v0, %v975_v48  ;;  %v8546_v10 = vpop.f32.mrb[9].mxu1  ;;  %v7567_v11 = vpack.c.bf16 %v982_v1, %v974_v49 }
  0xef   :  { %11204 = vst [vmem:[#allocation7_spill] sm:$0xff] %v8546_v10  ;;  %v7571_v12 = vpack.c.bf16 %v984_v4, %v976_v52 }
  0xf0   :  { %v8548_v13 = vpop.f32.mrb[10].mxu0  ;;  %7568 = vmatprep.subr.bf16.mxu0 %v7567_v11 }
  0xf1   :  { %11205 = vst [vmem:[#allocation8_spill] sm:$0xff] %v8548_v13  ;;  %7572 = vmatprep.subr.bf16.mxu1 %v7571_v12  ;;  %v8552_v14 = vpop.f32.mrb[11].mxu0  ;;  %v8554_v17 = vpop.f32.mrb[10].mxu1  ;;  %7570 = vmatpush1.bf16.msra.mxu0 %v7569_v3 }
  0xf2   :  { %11206 = vst [vmem:[#allocation9_spill] sm:$0xff] %v8552_v14  ;;  %11207 = vst [vmem:[#allocation10_spill] sm:$0xff] %v8554_v17  ;;  %7574 = vmatpush1.bf16.msra.mxu1 %v7573_v9  ;;  %v8556_v18 = vpop.f32.mrb[11].mxu1 }
  0xf3   :  { %11208 = vst [vmem:[#allocation11_spill] sm:$0xff] %v8556_v18 }
  0xf4   :  { %v433_v19 = vpop.f32.mrb[12].mxu0  ;;  %7282 = vmatmul.mubr.msk.f32.vlgmr.msra.gmra.mrb[48].mxu0 %vm146_vm0, %v8550_v15 }
  0xf5   :  { %v435_v21 = vpop.f32.mrb[13].mxu0  ;;  %v534_v22 = vpop.f32.mrb[12].mxu1  ;;  %7283 = vmatmul.mubr.msk.f32.vlgmr.msra.gmra.mrb[48].mxu1 %vm146_vm0, %v8550_v15  ;;  %1198 = vmatprep.mubr.f32.mxu0 %v11169_v7  ;;  %v8565_v32 = vadd.f32 %v433_v19, %v8449_v20 }
  0xf6   :  { %v536_v23 = vpop.f32.mrb[13].mxu1  ;;  %1269 = vmatprep.mubr.f32.mxu1 %v11169_v7  ;;  %v8571_v42 = vadd.f32 %v435_v21, %v8449_v20  ;;  %v8574_v45 = vadd.f32 %v534_v22, %v8449_v20 }
  0xf7   :  { %v8583_v50 = vadd.f32 %v536_v23, %v8449_v20 }
  0xf8   :  { %v439_v25 = vpop.f32.mrb[14].mxu0 }
  0xf9   :  { %v441_v26 = vpop.f32.mrb[15].mxu0  ;;  %v540_v28 = vpop.f32.mrb[14].mxu1  ;;  %v8595_v0 = vadd.f32 %v439_v25, %v8457_v31 }
  0xfa   :  { %v542_v29 = vpop.f32.mrb[15].mxu1  ;;  %v8603_v9 = vadd.f32 %v441_v26, %v8457_v31  ;;  %v8606_v11 = vadd.f32 %v540_v28, %v8457_v31 }
  0xfb   :  { %v8615_v22 = vadd.f32 %v542_v29, %v8457_v31 }
  0xfc   :  { %v445_v30 = vpop.f32.mrb[16].mxu0 }
  0xfd   :  { %v8568_v35 = vadd.f32 %v445_v30, %v8452_v24  ;;  %v546_v36 = vpop.f32.mrb[16].mxu1  ;;  %v447_v37 = vpop.f32.mrb[17].mxu0 }
  0xfe   :  { %v8577_v47 = vadd.f32 %v546_v36, %v8452_v24  ;;  %v8580_v48 = vadd.f32 %v447_v37, %v8452_v24  ;;  %v548_v49 = vpop.f32.mrb[17].mxu1 }
  0xff   :  { %v977_v52 = vmul.f32 %v8568_v35, %v8565_v32  ;;  %v8588_v54 = vadd.f32 %v548_v49, %v8452_v24 }
 0x100   :  { %v979_v55 = vmul.f32 %v8577_v47, %v8574_v45  ;;  %v978_v60 = vmul.f32 %v8580_v48, %v8571_v42  ;;  %v451_v62 = vpop.f32.mrb[18].mxu0 }
 0x101   :  { %v980_v1 = vmul.f32 %v8588_v54, %v8583_v50  ;;  %v8600_v3 = vadd.f32 %v451_v62, %v8482_v43  ;;  %v552_v4 = vpop.f32.mrb[18].mxu1  ;;  %v453_v8 = vpop.f32.mrb[19].mxu0 }
 0x102   :  { %v8609_v12 = vadd.f32 %v552_v4, %v8482_v43  ;;  %v8612_v19 = vadd.f32 %v453_v8, %v8482_v43  ;;  %v554_v21 = vpop.f32.mrb[19].mxu1 }
 0x103   :  { %v985_v23 = vmul.f32 %v8600_v3, %v8595_v0  ;;  %v8620_v25 = vadd.f32 %v554_v21, %v8482_v43 }
 0x104   :  { %v987_v26 = vmul.f32 %v8609_v12, %v8606_v11  ;;  %v986_v28 = vmul.f32 %v8612_v19, %v8603_v9  ;;  %v8626_v30 = vpop.f32.mrb[20].mxu0 }
 0x105   :  { %11209 = vst [vmem:[#allocation12_spill] sm:$0xff] %v8626_v30  ;;  %v7577_v36 = vpack.c.bf16 %v985_v23, %v977_v52  ;;  %v988_v37 = vmul.f32 %v8620_v25, %v8615_v22  ;;  %v8630_v29 = vpop.f32.mrb[21].mxu0  ;;  %v8632_v49 = vpop.f32.mrb[20].mxu1 }
 0x106   :  { %11210 = vst [vmem:[#allocation13_spill] sm:$0xff] %v8630_v29  ;;  %11211 = vst [vmem:[#allocation14_spill] sm:$0xff] %v8632_v49  ;;  %v7581_v62 = vpack.c.bf16 %v987_v26, %v979_v55  ;;  %v8634_v4 = vpop.f32.mrb[21].mxu1  ;;  %v7575_v8 = vpack.c.bf16 %v986_v28, %v978_v60  ;;  %v11217_v26 = vmov 0.0  }
 0x107   :  { %11212 = vst [vmem:[#allocation15_spill] sm:$0xff] %v8634_v4  ;;  %v7579_v21 = vpack.c.bf16 %v988_v37, %v980_v1 }
 0x108   :  { %v8636_v7 = vpop.f32.mrb[22].mxu0  ;;  %7576 = vmatprep.subr.bf16.mxu0 %v7575_v8 }
 0x109   :  { %11213 = vst [vmem:[#allocation16_spill] sm:$0xff] %v8636_v7  ;;  %7580 = vmatprep.subr.bf16.mxu1 %v7579_v21  ;;  %v8638_v18 = vpop.f32.mrb[23].mxu0  ;;  %v8640_v30 = vpop.f32.mrb[22].mxu1  ;;  %7578 = vmatpush1.bf16.msra.mxu0 %v7577_v36 }
 0x10a   :  { %11214 = vst [vmem:[#allocation17_spill] sm:$0xff] %v8638_v18  ;;  %11215 = vst [vmem:[#allocation18_spill] sm:$0xff] %v8640_v30  ;;  %7582 = vmatpush1.bf16.msra.mxu1 %v7581_v62  ;;  %v8642_v52 = vpop.f32.mrb[23].mxu1 }
 0x10b   :  { %11216 = vst [vmem:[#allocation19_spill] sm:$0xff] %v8642_v52 }
 0x10c   :  { %v635_v23 = vpop.f32.mrb[24].mxu0  ;;  %7284 = vmatmul.mubr.msk.f32.vlgmr.msra.gmra.mrb[50].mxu0 %vm146_vm0, %v8550_v15 }
 0x10d   :  { %v636_v55 = vadd.f32 %v635_v23, %v8449_v20  ;;  %v736_v60 = vpop.f32.mrb[24].mxu1  ;;  %v637_v1 = vpop.f32.mrb[25].mxu0  ;;  %7285 = vmatmul.mubr.msk.f32.vlgmr.msra.gmra.mrb[50].mxu1 %vm146_vm0, %v8550_v15  ;;  %1356 = vmatprep.mubr.f32.mxu0 %v11217_v26 }
 0x10e   :  { %v737_v28 = vadd.f32 %v736_v60, %v8449_v20  ;;  %v638_v36 = vadd.f32 %v637_v1, %v8449_v20  ;;  %v738_v37 = vpop.f32.mrb[25].mxu1  ;;  %1427 = vmatprep.mubr.f32.mxu1 %v11217_v26 }
 0x10f   :  { %v8654_v62 = vmul.f32 %v636_v55, %v8463_v34  ;;  %v739_v8 = vadd.f32 %v738_v37, %v8449_v20 }
 0x110   :  { %v8658_v21 = vmul.f32 %v737_v28, %v8477_v40  ;;  %v8661_v23 = vmul.f32 %v638_v36, %v8480_v41  ;;  %v641_v52 = vpop.f32.mrb[26].mxu0 }
 0x111   :  { %v8664_v30 = vmul.f32 %v739_v8, %v8490_v46  ;;  %v642_v60 = vadd.f32 %v641_v52, %v8457_v31  ;;  %v742_v1 = vpop.f32.mrb[26].mxu1  ;;  %v643_v18 = vpop.f32.mrb[27].mxu0 }
 0x112   :  { %v743_v7 = vadd.f32 %v742_v1, %v8457_v31  ;;  %v644_v34 = vadd.f32 %v643_v18, %v8457_v31  ;;  %v744_v4 = vpop.f32.mrb[27].mxu1 }
 0x113   :  { %v8670_v37 = vmul.f32 %v642_v60, %v8507_v53  ;;  %v745_v40 = vadd.f32 %v744_v4, %v8457_v31 }
 0x114   :  { %v8674_v41 = vmul.f32 %v743_v7, %v8516_v58  ;;  %v8677_v46 = vmul.f32 %v644_v34, %v8519_v59  ;;  %v647_v49 = vpop.f32.mrb[28].mxu0 }
 0x115   :  { %v8682_v1 = vmul.f32 %v745_v40, %v8531_v63  ;;  %v648_v18 = vadd.f32 %v647_v49, %v8452_v24  ;;  %v748_v29 = vpop.f32.mrb[28].mxu1  ;;  %v649_v53 = vpop.f32.mrb[29].mxu0 }
 0x116   :  { %v749_v58 = vadd.f32 %v748_v29, %v8452_v24  ;;  %v650_v17 = vadd.f32 %v649_v53, %v8452_v24  ;;  %v750_v59 = vpop.f32.mrb[29].mxu1 }
 0x117   :  { %v1276_v52 = vmul.f32 %v648_v18, %v8460_v33  ;;  %v8692_v13 = vmul.f32 %v648_v18, %v636_v55  ;;  %v751_v63 = vadd.f32 %v750_v59, %v8452_v24 }
 0x118   :  { %v1278_v10 = vmul.f32 %v749_v58, %v8474_v39  ;;  %v8698_v4 = vmul.f32 %v749_v58, %v737_v28  ;;  %v1277_v29 = vmul.f32 %v650_v17, %v8471_v38  ;;  %v8701_v53 = vmul.f32 %v650_v17, %v638_v36  ;;  %v653_v6 = vpop.f32.mrb[30].mxu0 }
 0x119   :  { %v1279_v14 = vmul.f32 %v751_v63, %v8485_v44  ;;  %v8704_v5 = vmul.f32 %v751_v63, %v739_v8  ;;  %v654_v33 = vadd.f32 %v653_v6, %v8482_v43  ;;  %v754_v55 = vpop.f32.mrb[30].mxu1  ;;  %v655_v18 = vpop.f32.mrb[31].mxu0 }
 0x11a   :  { %v755_v59 = vadd.f32 %v754_v55, %v8482_v43  ;;  %v656_v49 = vadd.f32 %v655_v18, %v8482_v43  ;;  %v756_v39 = vpop.f32.mrb[31].mxu1 }
 0x11b   :  { %v1284_v28 = vmul.f32 %v654_v33, %v8502_v51  ;;  %v8710_v58 = vmul.f32 %v654_v33, %v642_v60  ;;  %v757_v38 = vadd.f32 %v756_v39, %v8482_v43 }
 0x11c   :  { %v1286_v17 = vmul.f32 %v755_v59, %v8513_v57  ;;  %v8714_v44 = vmul.f32 %v755_v59, %v743_v7  ;;  %v1285_v36 = vmul.f32 %v656_v49, %v8510_v56  ;;  %v8717_v6 = vmul.f32 %v656_v49, %v644_v34  ;;  %v8719_v8 = vpop.f32.mrb[32].mxu0 }
 0x11d   :  { %v7585_v63 = vpack.c.bf16 %v1284_v28, %v1276_v52  ;;  %v1287_v51 = vmul.f32 %v757_v38, %v8526_v61  ;;  %v8724_v60 = vmul.f32 %v757_v38, %v745_v40  ;;  %v8726_v33 = vpop.f32.mrb[32].mxu1  ;;  %v8728_v18 = vpop.f32.mrb[33].mxu0 }
 0x11e   :  { %11218 = vst [vmem:[#allocation20_spill] sm:$0xff] %v8728_v18  ;;  %v7589_v7 = vpack.c.bf16 %v1286_v17, %v1278_v10  ;;  %v8732_v57 = vpop.f32.mrb[33].mxu1  ;;  %v7583_v34 = vpack.c.bf16 %v1285_v36, %v1277_v29 }
 0x11f   :  { %11219 = vst [vmem:[#allocation21_spill] sm:$0xff] %v8732_v57  ;;  %v7587_v49 = vpack.c.bf16 %v1287_v51, %v1279_v14 }
 0x120   :  { %v8734_v52 = vpop.f32.mrb[34].mxu0  ;;  %7584 = vmatprep.subr.bf16.mxu0 %v7583_v34 }
 0x121   :  { %11220 = vst [vmem:[#allocation22_spill] sm:$0xff] %v8734_v52  ;;  %v8740_v40 = vpop.f32.mrb[34].mxu1  ;;  %7588 = vmatprep.subr.bf16.mxu1 %v7587_v49  ;;  %v8742_v10 = vpop.f32.mrb[35].mxu0  ;;  %7586 = vmatpush1.bf16.msra.mxu0 %v7585_v63 }
 0x122   :  { %11221 = vst [vmem:[#allocation23_spill] sm:$0xff] %v8740_v40  ;;  %11222 = vst [vmem:[#allocation24_spill] sm:$0xff] %v8742_v10  ;;  %v8744_v39 = vpop.f32.mrb[35].mxu1  ;;  %7590 = vmatpush1.bf16.msra.mxu1 %v7589_v7 }
 0x123   :  { %11223 = vst [vmem:[#allocation25_spill] sm:$0xff] %v8744_v39 }
 0x124   :  { %v837_v29 = vpop.f32.mrb[36].mxu0  ;;  %7286 = vmatmul.mubr.msk.f32.vlgmr.msra.gmra.mrb[52].mxu0 %vm146_vm0, %v8550_v15 }
 0x125   :  { %v838_v14 = vadd.f32 %v837_v29, %v8449_v20  ;;  %v938_v28 = vpop.f32.mrb[36].mxu1  ;;  %7287 = vmatmul.mubr.msk.f32.vlgmr.msra.gmra.mrb[52].mxu1 %vm146_vm0, %v8550_v15  ;;  %v839_v38 = vpop.f32.mrb[37].mxu0  ;;  %1498 = vmatprep.mubr.f32.mxu0 %v11217_v26 }
 0x126   :  { %v939_v17 = vadd.f32 %v938_v28, %v8449_v20  ;;  %v840_v36 = vadd.f32 %v839_v38, %v8449_v20  ;;  %v940_v51 = vpop.f32.mrb[37].mxu1  ;;  %1569 = vmatprep.mubr.f32.mxu1 %v11217_v26 }
 0x127   :  { %v8756_v63 = vmul.f32 %v838_v14, %v8568_v35  ;;  %v941_v7 = vadd.f32 %v940_v51, %v8449_v20 }
 0x128   :  { %v8760_v34 = vmul.f32 %v939_v17, %v8577_v47  ;;  %v8763_v49 = vmul.f32 %v840_v36, %v8580_v48  ;;  %v843_v29 = vpop.f32.mrb[38].mxu0 }
 0x129   :  { %v8766_v28 = vmul.f32 %v941_v7, %v8588_v54  ;;  %v844_v38 = vadd.f32 %v843_v29, %v8457_v31  ;;  %v944_v56 = vpop.f32.mrb[38].mxu1  ;;  %v845_v55 = vpop.f32.mrb[39].mxu0 }
 0x12a   :  { %v945_v61 = vadd.f32 %v944_v56, %v8457_v31  ;;  %v846_v35 = vadd.f32 %v845_v55, %v8457_v31  ;;  %v946_v59 = vpop.f32.mrb[39].mxu1 }
 0x12b   :  { %v8772_v20 = vmul.f32 %v844_v38, %v8600_v3  ;;  %v947_v47 = vadd.f32 %v946_v59, %v8457_v31 }
 0x12c   :  { %v8776_v48 = vmul.f32 %v945_v61, %v8609_v12  ;;  %v8779_v54 = vmul.f32 %v846_v35, %v8612_v19  ;;  %v849_v51 = vpop.f32.mrb[40].mxu0 }
 0x12d   :  { %v8784_v56 = vmul.f32 %v947_v47, %v8620_v25  ;;  %v850_v55 = vadd.f32 %v849_v51, %v8452_v24  ;;  %v950_v39 = vpop.f32.mrb[40].mxu1  ;;  %v851_v3 = vpop.f32.mrb[41].mxu0 }
 0x12e   :  { %v951_v12 = vadd.f32 %v950_v39, %v8452_v24  ;;  %v852_v59 = vadd.f32 %v851_v3, %v8452_v24  ;;  %v952_v19 = vpop.f32.mrb[41].mxu1 }
 0x12f   :  { %v1280_v29 = vmul.f32 %v850_v55, %v8565_v32  ;;  %v8794_v40 = vmul.f32 %v850_v55, %v838_v14  ;;  %v953_v25 = vadd.f32 %v952_v19, %v8452_v24 }
 0x130   :  { %v1282_v52 = vmul.f32 %v951_v12, %v8574_v45  ;;  %v8800_v31 = vmul.f32 %v951_v12, %v939_v17  ;;  %v1281_v39 = vmul.f32 %v852_v59, %v8571_v42  ;;  %v8803_v3 = vmul.f32 %v852_v59, %v840_v36  ;;  %v855_v57 = vpop.f32.mrb[42].mxu0 }
 0x131   :  { %v1283_v10 = vmul.f32 %v953_v25, %v8583_v50  ;;  %v8806_v18 = vmul.f32 %v953_v25, %v941_v7  ;;  %v856_v32 = vadd.f32 %v855_v57, %v8482_v43  ;;  %v956_v14 = vpop.f32.mrb[42].mxu1  ;;  %v857_v24 = vpop.f32.mrb[43].mxu0 }
 0x132   :  { %v957_v55 = vadd.f32 %v956_v14, %v8482_v43  ;;  %v858_v19 = vadd.f32 %v857_v24, %v8482_v43  ;;  %v958_v45 = vpop.f32.mrb[43].mxu1 }
 0x133   :  { %v1288_v17 = vmul.f32 %v856_v32, %v8595_v0  ;;  %v8812_v12 = vmul.f32 %v856_v32, %v844_v38  ;;  %v959_v42 = vadd.f32 %v958_v45, %v8482_v43 }
 0x134   :  { %v1290_v36 = vmul.f32 %v957_v55, %v8606_v11  ;;  %v8816_v50 = vmul.f32 %v957_v55, %v945_v61  ;;  %v1289_v7 = vmul.f32 %v858_v19, %v8603_v9  ;;  %v8819_v57 = vmul.f32 %v858_v19, %v846_v35  ;;  %v8821_v59 = vpop.f32.mrb[44].mxu0 }
 0x135   :  { %11224 = vst [vmem:[#allocation26_spill] sm:$0xff] %v8821_v59  ;;  %v7593_v25 = vpack.c.bf16 %v1288_v17, %v1280_v29  ;;  %v1291_v0 = vmul.f32 %v959_v42, %v8615_v22  ;;  %v8826_v38 = vmul.f32 %v959_v42, %v947_v47  ;;  %v8828_v32 = vpop.f32.mrb[44].mxu1  ;;  %v8830_v43 = vpop.f32.mrb[45].mxu0 }
 0x136   :  { %11225 = vst [vmem:[#allocation27_spill] sm:$0xff] %v8828_v32  ;;  %11226 = vst [vmem:[#allocation28_spill] sm:$0xff] %v8830_v43  ;;  %v7597_v11 = vpack.c.bf16 %v1290_v36, %v1282_v52  ;;  %v8834_v61 = vpop.f32.mrb[45].mxu1  ;;  %v7591_v35 = vpack.c.bf16 %v1289_v7, %v1281_v39  ;;  %v38_v32 = vadd.s32 1, %v8454_v27 }
 0x137   :  { %11227 = vst [vmem:[#allocation29_spill] sm:$0xff] %v8834_v61  ;;  %v7595_v24 = vpack.c.bf16 %v1291_v0, %v1283_v10 }
 0x138   :  { %v8836_v29 = vpop.f32.mrb[46].mxu0  ;;  %7592 = vmatprep.subr.bf16.mxu0 %v7591_v35 }
 0x139   :  { %11228 = vst [vmem:[#allocation30_spill] sm:$0xff] %v8836_v29  ;;  %v8842_v47 = vpop.f32.mrb[46].mxu1  ;;  %7596 = vmatprep.subr.bf16.mxu1 %v7595_v24  ;;  %v8844_v52 = vpop.f32.mrb[47].mxu0  ;;  %7594 = vmatpush1.bf16.msra.mxu0 %v7593_v25 }
 0x13a   :  { %11229 = vst [vmem:[#allocation31_spill] sm:$0xff] %v8842_v47  ;;  %11230 = vst [vmem:[#allocation32_spill] sm:$0xff] %v8844_v52  ;;  %v8846_v19 = vpop.f32.mrb[47].mxu1  ;;  %7598 = vmatpush1.bf16.msra.mxu1 %v7597_v11 }
 0x13b   :  { %11231 = vst [vmem:[#allocation33_spill] sm:$0xff] %v8846_v19 }
 0x13c   :  { %7288 = vmatmul.mubr.msk.f32.vlgmr.msra.gmra.mrb[54].mxu0 %vm146_vm0, %v8550_v15 }
 0x13d   :  { %7289 = vmatmul.mubr.msk.f32.vlgmr.msra.gmra.mrb[54].mxu1 %vm146_vm0, %v8550_v15  ;;  %1695 = vmatprep.mubr.f32.mxu0 %v11217_v26 }
 0x13e   :  { %1772 = vmatprep.mubr.f32.mxu1 %v11217_v26 }
 0x1c7   :  { %v1058_v10 = vpop.f32.mrb[48].mxu0 }
 0x1c8   :  { %v1129_v39 = vpop.f32.mrb[48].mxu1  ;;  %v1060_v45 = vpop.f32.mrb[49].mxu0 }
 0x1c9   :  { %v1131_v17 = vpop.f32.mrb[49].mxu1 }
 0x1df   :  { %v1200_v42 = vpop.f32.mrb[50].mxu0 }
 0x1e0   :  { %v1271_v36 = vpop.f32.mrb[50].mxu1  ;;  %v1202_v7 = vpop.f32.mrb[51].mxu0 }
 0x1e1   :  { %v1273_v0 = vpop.f32.mrb[51].mxu1 }
 0x1f7   :  { %v1358_v25 = vpop.f32.mrb[52].mxu0 }
 0x1f8   :  { %v1429_v11 = vpop.f32.mrb[52].mxu1  ;;  %v1576_v35 = vsub.f32 %v1358_v25, %v1058_v10  ;;  %v1360_v9 = vpop.f32.mrb[53].mxu0 }
 0x1f9   :  { %v1578_v24 = vsub.f32 %v1429_v11, %v1129_v39  ;;  %v1431_v14 = vpop.f32.mrb[53].mxu1  ;;  %v1577_v22 = vsub.f32 %v1360_v9, %v1060_v45  ;;  %v35_v9 = vmul.u32 2, %v8454_v27 }
 0x1fa   :  { %v1579_v55 = vsub.f32 %v1431_v14, %v1131_v17  ;;  %v1584_v51 = vmul.f32 1.442695, %v1576_v35 }
 0x1fb   :  { %v1588_v19 = vmul.f32 1.442695, %v1578_v24  ;;  %v1586_v52 = vmul.f32 1.442695, %v1577_v22  ;;  %vm8857_vm4 = vcmp.ge.s32.totalorder %v8447_v16, %v35_v9 }
 0x1fc   :  { %v1590_v47 = vmul.f32 1.442695, %v1579_v55  ;;  %7892 = vpow2.f32 %v1584_v51  ;;  %v39_v55 = vmul.u32 2, %v38_v32 }
 0x1fd   :  { %7894 = vpow2.f32 %v1588_v19 }
 0x1fe   :  { %7896 = vpow2.f32 %v1586_v52  ;;  %vm8862_vm5 = vcmp.lt.s32.totalorder %v8447_v16, %v39_v55 }
 0x1ff   :  { %7898 = vpow2.f32 %v1590_v47  ;;  %vm42_vm6 = vmand %vm8857_vm4, %vm8862_vm5 }
 0x206   :  { %v7893_v29 = vpop.eup %7892 }
 0x207   :  { %v7895_v61 = vpop.eup %7894  ;;  %v1600_v43 = vadd.f32 1.0, %v7893_v29 }
 0x208   :  { %v7897_v59 = vpop.eup %7896  ;;  %v1602_v10 = vadd.f32 1.0, %v7895_v61 }
 0x209   :  { %v7899_v39 = vpop.eup %7898  ;;  %7900 = vrcp.f32 %v1600_v43  ;;  %v1601_v25 = vadd.f32 1.0, %v7897_v59  ;;  %v34_v59 = vadd.s32 8, %v8447_v16  ;;  %v11241_v16 = vpack.c.bf16 %v8682_v1, %v8664_v30 }
 0x20a   :  { %7902 = vrcp.f32 %v1602_v10  ;;  %v1603_v14 = vadd.f32 1.0, %v7899_v39  ;;  %v11240_v10 = vpack.c.bf16 %v8677_v46, %v8661_v23  ;;  %v11242_v30 = vpack.c.bf16 %v8670_v37, %v8654_v62 }
 0x20b   :  { %7904 = vrcp.f32 %v1601_v25  ;;  %vm8871_vm7 = vcmp.ge.s32.totalorder %v34_v59, %v35_v9  ;;  %vm8875_vm8 = vcmp.lt.s32.totalorder %v34_v59, %v39_v55  ;;  %v11243_v23 = vpack.c.bf16 %v8674_v41, %v8658_v21 }
 0x20c   :  { %7906 = vrcp.f32 %v1603_v14  ;;  %vm43_vm10 = vmand %vm8871_vm7, %vm8875_vm8  ;;  %v11244_v46 = vpack.c.bf16 %v8779_v54, %v8763_v49  ;;  %v11245_v1 = vpack.c.bf16 %v8784_v56, %v8766_v28  ;;  %v11246_v62 = vpack.c.bf16 %v8772_v20, %v8756_v63  ;;  %v139_v20 = vpop.permute.xlu0 %138 }
 0x20d   :  { %v8892_v39 = vsel %vm43_vm10, 1.0, %v11217_v26  ;;  %v11247_v21 = vpack.c.bf16 %v8776_v48, %v8760_v34  ;;  %v11248_v37 = vpack.c.bf16 %v8717_v6, %v8701_v53  ;;  %v11249_v41 = vpack.c.bf16 %v8724_v60, %v8704_v5 }
 0x20e   :  { %v11250_v63 = vpack.c.bf16 %v8710_v58, %v8692_v13  ;;  %v11251_v53 = vpack.c.bf16 %v8714_v44, %v8698_v4  ;;  %v11252_v5 = vpack.c.bf16 %v8819_v57, %v8803_v3  ;;  %v11253_v6 = vpack.c.bf16 %v8826_v38, %v8806_v18  ;;  %v11257_v57 = vld [vmem:[#allocation6_spill] sm:$0xff] }
 0x20f   :  { %v1500_v51 = vpop.f32.mrb[54].mxu0  ;;  %v11254_v13 = vpack.c.bf16 %v8812_v12, %v8794_v40  ;;  %v11255_v4 = vpack.c.bf16 %v8816_v50, %v8800_v31  ;;  %v9022_v3 = vadd.f32 %v8537_v2, %v139_v20  ;;  %v11256_v12 = vld [vmem:[#allocation5_spill] sm:$0xff]  ;;  %v9028_v38 = vadd.f32 %v11257_v57, %v139_v20  ;;  %v11261_v2 = vld [vmem:[#allocation10_spill] sm:$0xff] }
 0x210   :  { %v1571_v22 = vpop.f32.mrb[54].mxu1  ;;  %v1580_v43 = vsub.f32 %v1500_v51, %v1200_v42  ;;  %v1502_v52 = vpop.f32.mrb[55].mxu0  ;;  %v9025_v50 = vadd.f32 %v11256_v12, %v139_v20 }
 0x211   :  { %v1582_v29 = vsub.f32 %v1571_v22, %v1271_v36  ;;  %v1573_v27 = vpop.f32.mrb[55].mxu1  ;;  %v1581_v32 = vsub.f32 %v1502_v52, %v1202_v7  ;;  %v8880_v7 = vsel %vm42_vm6, 1.0, %v11217_v26 }
 0x212   :  { %v1583_v19 = vsub.f32 %v1573_v27, %v1273_v0  ;;  %v1592_v45 = vmul.f32 1.442695, %v1580_v43 }
 0x213   :  { %v1596_v17 = vmul.f32 1.442695, %v1582_v29  ;;  %v7901_v11 = vpop.eup %7900  ;;  %v1594_v35 = vmul.f32 1.442695, %v1581_v32 }
 0x214   :  { %v1598_v24 = vmul.f32 1.442695, %v1583_v19  ;;  %v7903_v42 = vpop.eup %7902  ;;  %7908 = vpow2.f32 %v1592_v45  ;;  %v1616_v19 = vsub.f32 1.0, %v7901_v11 }
 0x215   :  { %v7905_v36 = vpop.eup %7904  ;;  %7910 = vpow2.f32 %v1596_v17  ;;  %v1618_v45 = vsub.f32 1.0, %v7903_v42 }
 0x216   :  { %v7907_v0 = vpop.eup %7906  ;;  %7912 = vpow2.f32 %v1594_v35  ;;  %1631 = vmatprep.subr.mxu0 %v7905_v36  ;;  %v1617_v27 = vsub.f32 1.0, %v7905_v36 }
 0x217   :  { %7914 = vpow2.f32 %v1598_v24  ;;  %1708 = vmatprep.subr.mxu1 %v7907_v0  ;;  %1632 = vmatpush1.msra.mxu0 %v7901_v11  ;;  %v1619_v32 = vsub.f32 1.0, %v7907_v0  ;;  %v11259_v0 = vld [vmem:[#allocation8_spill] sm:$0xff] }
 0x218   :  { %1709 = vmatpush1.msra.mxu1 %v7903_v42  ;;  %7290 = vmatmul.mubr.msk.f32.vlgmr.msra.gmra.mrb[56].mxu0 %vm1624_vm9, %v8880_v7  ;;  %v11258_v42 = vld [vmem:[#allocation7_spill] sm:$0xff] }
 0x219   :  { %7292 = vmatmul.mubr.msk.f32.vlgmr.msra.gmra.mrb[56].mxu1 %vm1624_vm9, %v8880_v7  ;;  %1701 = vmatprep.mubr.f32.mxu0 %v11217_v26  ;;  %v9031_v36 = vadd.f32 %v11258_v42, %v139_v20 }
 0x21a   :  { %1778 = vmatprep.mubr.f32.mxu1 %v11217_v26 }
 0x21c   :  { %7291 = vmatmul.mubr.msk.f32.gmra.mrb[58].mxu0 %vm1624_vm9, %v8892_v39 }
 0x21d   :  { %7293 = vmatmul.mubr.msk.f32.gmra.mrb[58].mxu1 %vm1624_vm9, %v8892_v39  ;;  %1849 = vmatprep.mubr.f32.mxu0 %v11217_v26 }
 0x21e   :  { %v7909_v25 = vpop.eup %7908  ;;  %1926 = vmatprep.mubr.f32.mxu1 %v11217_v26 }
 0x21f   :  { %v7911_v14 = vpop.eup %7910  ;;  %v1604_v9 = vadd.f32 1.0, %v7909_v25 }
 0x220   :  { %v7913_v55 = vpop.eup %7912  ;;  %v1606_v22 = vadd.f32 1.0, %v7911_v14  ;;  %v11260_v14 = vld [vmem:[#allocation9_spill] sm:$0xff] }
 0x221   :  { %v7915_v51 = vpop.eup %7914  ;;  %v1605_v47 = vadd.f32 1.0, %v7913_v55  ;;  %7916 = vrcp.f32 %v1604_v9 }
 0x222   :  { %v1607_v61 = vadd.f32 1.0, %v7915_v51 }
 0x223   :  { %7918 = vrcp.f32 %v1605_v47 }
 0x224   :  { %7920 = vrcp.f32 %v1607_v61  ;;  %v11263_v61 = vld [vmem:[#allocation12_spill] sm:$0xff] }
 0x225   :  { %7922 = vrcp.f32 %v1606_v22  ;;  %v11262_v22 = vld [vmem:[#allocation11_spill] sm:$0xff] }
 0x22b   :  { %v7917_v59 = vpop.eup %7916 }
 0x22c   :  { %v1620_v11 = vsub.f32 1.0, %v7917_v59 }
 0x22d   :  { %v7919_v43 = vpop.eup %7918 }
 0x22e   :  { %v7921_v29 = vpop.eup %7920  ;;  %1785 = vmatprep.subr.mxu0 %v7919_v43  ;;  %v1621_v17 = vsub.f32 1.0, %v7919_v43  ;;  %v11264_v43 = vld [vmem:[#allocation13_spill] sm:$0xff] }
 0x22f   :  { %v7923_v52 = vpop.eup %7922  ;;  %1862 = vmatprep.subr.mxu1 %v7921_v29  ;;  %1786 = vmatpush1.msra.mxu0 %v7917_v59  ;;  %v1623_v35 = vsub.f32 1.0, %v7921_v29  ;;  %v9052_v59 = vadd.f32 %v11263_v61, %v139_v20  ;;  %v9055_v29 = vadd.f32 %v11264_v43, %v139_v20 }
 0x230   :  { %1863 = vmatpush1.msra.mxu1 %v7923_v52  ;;  %7294 = vmatmul.mubr.msk.f32.vlgmr.msra.gmra.mrb[60].mxu0 %vm1624_vm9, %v8880_v7  ;;  %v1622_v24 = vsub.f32 1.0, %v7923_v52 }
 0x231   :  { %7296 = vmatmul.mubr.msk.f32.vlgmr.msra.gmra.mrb[60].mxu1 %vm1624_vm9, %v8880_v7  ;;  %1955 = vmatprep.subr.mxu0 %v1617_v27  ;;  %11265 = vst [vmem:[#allocation5_spill] sm:$0xff] %v9055_v29 }
 0x232   :  { %2032 = vmatprep.subr.mxu1 %v1619_v32  ;;  %1956 = vmatpush1.msra.mxu0 %v1616_v19  ;;  %v11266_v32 = vld [vmem:[#allocation14_spill] sm:$0xff] }
 0x233   :  { %2033 = vmatpush1.msra.mxu1 %v1618_v45  ;;  %2109 = vmatprep.subr.mxu0 %v1621_v17  ;;  %v9062_v19 = vadd.f32 %v11266_v32, %v139_v20  ;;  %v11267_v45 = vld [vmem:[#allocation15_spill] sm:$0xff] }
 0x234   :  { %2186 = vmatprep.subr.mxu1 %v1623_v35  ;;  %1855 = vmatprep.mubr.f32.mxu0 %v11217_v26  ;;  %v9065_v17 = vadd.f32 %v11267_v45, %v139_v20  ;;  %v11269_v35 = vld [vmem:[#allocation16_spill] sm:$0xff] }
 0x235   :  { %1932 = vmatprep.mubr.f32.mxu1 %v11217_v26  ;;  %7295 = vmatmul.mubr.msk.f32.gmra.mrb[62].mxu0 %vm1624_vm9, %v8892_v39 }
 0x236   :  { %7297 = vmatmul.mubr.msk.f32.gmra.mrb[62].mxu1 %vm1624_vm9, %v8892_v39  ;;  %2019 = vmatprep.mubr.f32.mxu0 %v11217_v26  ;;  %11268 = vst [vmem:[#allocation6_spill] sm:$0xff] %v9065_v17 }
 0x237   :  { %2096 = vmatprep.mubr.f32.mxu1 %v11217_v26 }
 0x239   :  { %7298 = vmatmul.mubr.msk.f32.vlgmr.msra.gmra.mrb[64].mxu0 %vm1624_vm9, %v8880_v7 }
 0x23a   :  { %7300 = vmatmul.mubr.msk.f32.vlgmr.msra.gmra.mrb[64].mxu1 %vm1624_vm9, %v8880_v7  ;;  %2110 = vmatpush1.msra.mxu0 %v1620_v11 }
 0x23b   :  { %2187 = vmatpush1.msra.mxu1 %v1622_v24  ;;  %7600 = vmatprep.subr.bf16.mxu0 %v11240_v10  ;;  %v11271_v24 = vld [vmem:[#allocation17_spill] sm:$0xff] }
 0x23c   :  { %7604 = vmatprep.subr.bf16.mxu1 %v11241_v16  ;;  %2025 = vmatprep.mubr.f32.mxu0 %v11217_v26 }
 0x23d   :  { %2102 = vmatprep.mubr.f32.mxu1 %v11217_v26  ;;  %7299 = vmatmul.mubr.msk.f32.gmra.mrb[66].mxu0 %vm1624_vm9, %v8892_v39 }
 0x23e   :  { %7301 = vmatmul.mubr.msk.f32.gmra.mrb[66].mxu1 %vm1624_vm9, %v8892_v39  ;;  %2173 = vmatprep.mubr.f32.mxu0 %v11217_v26 }
 0x23f   :  { %2250 = vmatprep.mubr.f32.mxu1 %v11217_v26 }
 0x241   :  { %7302 = vmatmul.mubr.msk.f32.vlgmr.msra.gmra.mrb[68].mxu0 %vm1624_vm9, %v8880_v7 }
 0x242   :  { %7304 = vmatmul.mubr.msk.f32.vlgmr.msra.gmra.mrb[68].mxu1 %vm1624_vm9, %v8880_v7  ;;  %7602 = vmatpush1.bf16.msra.mxu0 %v11242_v30  ;;  %v11273_v30 = vld [vmem:[#allocation18_spill] sm:$0xff] }
 0x243   :  { %7606 = vmatpush1.bf16.msra.mxu1 %v11243_v23  ;;  %7608 = vmatprep.subr.bf16.mxu0 %v11244_v46  ;;  %v11275_v46 = vld [vmem:[#allocation19_spill] sm:$0xff] }
 0x244   :  { %7612 = vmatprep.subr.bf16.mxu1 %v11245_v1  ;;  %2179 = vmatprep.mubr.f32.mxu0 %v11217_v26 }
 0x245   :  { %2256 = vmatprep.mubr.f32.mxu1 %v11217_v26  ;;  %7303 = vmatmul.mubr.msk.f32.gmra.mrb[70].mxu0 %vm1624_vm9, %v8892_v39 }
 0x246   :  { %7305 = vmatmul.mubr.msk.f32.gmra.mrb[70].mxu1 %vm1624_vm9, %v8892_v39  ;;  %2375 = vmatprep.mubr.f32.mxu0 %v11217_v26 }
 0x247   :  { %2446 = vmatprep.mubr.f32.mxu1 %v11217_v26 }
 0x249   :  { %7306 = vmatmul.mubr.msk.f32.vlgmr.msra.gmra.mrb[72].mxu0 %vm146_vm0, %v8550_v15 }
 0x24a   :  { %7307 = vmatmul.mubr.msk.f32.vlgmr.msra.gmra.mrb[72].mxu1 %vm146_vm0, %v8550_v15  ;;  %7610 = vmatpush1.bf16.msra.mxu0 %v11246_v62  ;;  %v9086_v62 = vadd.f32 %v8719_v8, %v139_v20  ;;  %v11281_v8 = vld [vmem:[#allocation24_spill] sm:$0xff] }
 0x24b   :  { %7614 = vmatpush1.bf16.msra.mxu1 %v11247_v21  ;;  %7616 = vmatprep.subr.bf16.mxu0 %v11248_v37  ;;  %v9089_v21 = vadd.f32 %v8726_v33, %v139_v20  ;;  %v11277_v37 = vld [vmem:[#allocation20_spill] sm:$0xff]  ;;  %v11282_v33 = vld [vmem:[#allocation25_spill] sm:$0xff] }
 0x24c   :  { %7620 = vmatprep.subr.bf16.mxu1 %v11249_v41  ;;  %2517 = vmatprep.mubr.f32.mxu0 %v11217_v26  ;;  %v9092_v41 = vadd.f32 %v11277_v37, %v139_v20 }
 0x24d   :  { %2588 = vmatprep.mubr.f32.mxu1 %v11217_v26  ;;  %7308 = vmatmul.mubr.msk.f32.vlgmr.msra.gmra.mrb[74].mxu0 %vm146_vm0, %v8550_v15 }
 0x24e   :  { %7309 = vmatmul.mubr.msk.f32.vlgmr.msra.gmra.mrb[74].mxu1 %vm146_vm0, %v8550_v15  ;;  %7618 = vmatpush1.bf16.msra.mxu0 %v11250_v63  ;;  %v11278_v63 = vld [vmem:[#allocation21_spill] sm:$0xff] }
 0x24f   :  { %7622 = vmatpush1.bf16.msra.mxu1 %v11251_v53  ;;  %7624 = vmatprep.subr.bf16.mxu0 %v11252_v5  ;;  %v9095_v53 = vadd.f32 %v11278_v63, %v139_v20  ;;  %v11279_v5 = vld [vmem:[#allocation22_spill] sm:$0xff]  ;;  %v11285_v63 = vld [vmem:[#allocation27_spill] sm:$0xff] }
 0x250   :  { %7628 = vmatprep.subr.bf16.mxu1 %v11253_v6  ;;  %2675 = vmatprep.mubr.f32.mxu0 %v11217_v26 }
 0x251   :  { %2746 = vmatprep.mubr.f32.mxu1 %v11217_v26  ;;  %7310 = vmatmul.mubr.msk.f32.vlgmr.msra.gmra.mrb[76].mxu0 %vm146_vm0, %v8550_v15 }
 0x252   :  { %7311 = vmatmul.mubr.msk.f32.vlgmr.msra.gmra.mrb[76].mxu1 %vm146_vm0, %v8550_v15  ;;  %7626 = vmatpush1.bf16.msra.mxu0 %v11254_v13  ;;  %v11280_v13 = vld [vmem:[#allocation23_spill] sm:$0xff] }
 0x253   :  { %7630 = vmatpush1.bf16.msra.mxu1 %v11255_v4  ;;  %2817 = vmatprep.mubr.f32.mxu0 %v11217_v26 }
 0x254   :  { %2888 = vmatprep.mubr.f32.mxu1 %v11217_v26 }
 0x255   :  { %7312 = vmatmul.mubr.msk.f32.vlgmr.msra.gmra.mrb[78].mxu0 %vm146_vm0, %v8550_v15 }
 0x256   :  { %7313 = vmatmul.mubr.msk.f32.vlgmr.msra.gmra.mrb[78].mxu1 %vm146_vm0, %v8550_v15  ;;  %3007 = vmatprep.mubr.f32.mxu0 %v11217_v26  ;;  %v9017_v15 = vpop.permute.xlu1 %143 }
 0x257   :  { %3084 = vmatprep.mubr.f32.mxu1 %v11217_v26  ;;  %v9035_v25 = vadd.f32 %v11259_v0, %v9017_v15  ;;  %v9039_v9 = vadd.f32 %v11260_v14, %v9017_v15  ;;  %v9045_v51 = vadd.f32 %v11261_v2, %v9017_v15  ;;  %v9049_v47 = vadd.f32 %v11262_v22, %v9017_v15 }
 0x258   :  { %v9069_v11 = vadd.f32 %v11269_v35, %v9017_v15  ;;  %v9073_v10 = vadd.f32 %v11271_v24, %v9017_v15  ;;  %v9079_v23 = vadd.f32 %v11273_v30, %v9017_v15  ;;  %v9083_v1 = vadd.f32 %v11275_v46, %v9017_v15  ;;  %v11283_v24 = vld [vmem:[#allocation26_spill] sm:$0xff] }
 0x259   :  { %v9099_v6 = vadd.f32 %v11279_v5, %v9017_v15  ;;  %v9103_v4 = vadd.f32 %v11280_v13, %v9017_v15  ;;  %v9107_v57 = vadd.f32 %v11281_v8, %v9017_v15  ;;  %v9111_v42 = vadd.f32 %v11282_v33, %v9017_v15  ;;  %v11289_v33 = vld [vmem:[#allocation29_spill] sm:$0xff] }
 0x25a   :  { %11270 = vst [vmem:[#allocation7_spill] sm:$0xff] %v9069_v11  ;;  %11272 = vst [vmem:[#allocation8_spill] sm:$0xff] %v9073_v10  ;;  %v9120_v30 = vadd.f32 %v11283_v24, %v139_v20  ;;  %v9127_v5 = vadd.f32 %v11285_v63, %v139_v20 }
 0x25b   :  { %11274 = vst [vmem:[#allocation9_spill] sm:$0xff] %v9079_v23  ;;  %11276 = vst [vmem:[#allocation10_spill] sm:$0xff] %v9083_v1 }
 0x25c   :  { %11284 = vst [vmem:[#allocation11_spill] sm:$0xff] %v9120_v30  ;;  %11286 = vst [vmem:[#allocation12_spill] sm:$0xff] %v9127_v5 }
 0x2eb   :  { %v1697_v58 = vpop.f32.mrb[56].mxu0 }
 0x2ec   :  { %v1774_v44 = vpop.f32.mrb[56].mxu1  ;;  %v1699_v60 = vpop.f32.mrb[57].mxu0  ;;  %v1939_v0 = vmul.f32 %v1697_v58, %v9022_v3 }
 0x2ed   :  { %v1776_v18 = vpop.f32.mrb[57].mxu1  ;;  %v1941_v61 = vmul.f32 %v1774_v44, %v9028_v38  ;;  %v1940_v43 = vmul.f32 %v1699_v60, %v9025_v50  ;;  %v11287_v44 = vld [vmem:[#allocation28_spill] sm:$0xff] }
 0x2ee   :  { %v1942_v46 = vmul.f32 %v1776_v18, %v9031_v36  ;;  %v9130_v13 = vadd.f32 %v11287_v44, %v139_v20 }
 0x2ef   :  { %v1703_v40 = vpop.f32.mrb[58].mxu0 }
 0x2f0   :  { %v1780_v34 = vpop.f32.mrb[58].mxu1  ;;  %v1705_v49 = vpop.f32.mrb[59].mxu0  ;;  %11288 = vst [vmem:[#allocation13_spill] sm:$0xff] %v9130_v13  ;;  %v1947_v18 = vmul.f32 %v1703_v40, %v9035_v25 }
 0x2f1   :  { %v9009_v28 = vpop.f32.mrb[59].mxu1  ;;  %v1949_v24 = vmul.f32 %v1780_v34, %v9045_v51  ;;  %v1948_v63 = vmul.f32 %v1705_v49, %v9039_v9 }
 0x2f2   :  { %v1950_v40 = vmul.f32 %v9009_v28, %v9049_v47 }
 0x303   :  { %v9011_v48 = vpop.f32.mrb[60].mxu0 }
 0x304   :  { %v9013_v54 = vpop.f32.mrb[60].mxu1  ;;  %v9015_v56 = vpop.f32.mrb[61].mxu0  ;;  %v1943_v34 = vmul.f32 %v9011_v48, %v9052_v59 }
 0x305   :  { %v9019_v31 = vpop.f32.mrb[61].mxu1  ;;  %v1945_v49 = vmul.f32 %v9013_v54, %v9062_v19 }
 0x308   :  { %v9041_v55 = vpop.f32.mrb[62].mxu0 }
 0x309   :  { %v9057_v52 = vpop.f32.mrb[62].mxu1  ;;  %v9059_v27 = vpop.f32.mrb[63].mxu0 }
 0x30a   :  { %v9075_v16 = vpop.f32.mrb[63].mxu1 }
 0x30c   :  { %v2021_v12 = vpop.f32.mrb[64].mxu0 }
 0x30d   :  { %v2263_v14 = vmul.f32 %v2021_v12, %v9086_v62  ;;  %v2098_v2 = vpop.f32.mrb[64].mxu1  ;;  %v2023_v22 = vpop.f32.mrb[65].mxu0 }
 0x30e   :  { %v2265_v32 = vmul.f32 %v2098_v2, %v9089_v21  ;;  %v2264_v45 = vmul.f32 %v2023_v22, %v9092_v41  ;;  %v2100_v35 = vpop.f32.mrb[65].mxu1  ;;  %v9137_v2 = vadd.f32 %v11289_v33, %v139_v20  ;;  %v11291_v20 = vld [vmem:[#allocation30_spill] sm:$0xff] }
 0x30f   :  { %v9123_v37 = vadd.f32 %v2263_v14, %v1939_v0  ;;  %v2266_v58 = vmul.f32 %v2100_v35, %v9095_v53 }
 0x310   :  { %v9132_v60 = vadd.f32 %v2265_v32, %v1941_v61  ;;  %v9134_v12 = vadd.f32 %v2264_v45, %v1940_v43  ;;  %v2027_v8 = vpop.f32.mrb[66].mxu0  ;;  %11290 = vst [vmem:[#allocation14_spill] sm:$0xff] %v9137_v2  ;;  %v9149_v45 = vadd.f32 %v11291_v20, %v9017_v15 }
 0x311   :  { %v9140_v0 = vadd.f32 %v2266_v58, %v1942_v46  ;;  %v2271_v14 = vmul.f32 %v2027_v8, %v9099_v6  ;;  %v2104_v22 = vpop.f32.mrb[66].mxu1  ;;  %v2029_v35 = vpop.f32.mrb[67].mxu0 }
 0x312   :  { %v2273_v61 = vmul.f32 %v2104_v22, %v9103_v4  ;;  %v2272_v43 = vmul.f32 %v2029_v35, %v9107_v57  ;;  %v2106_v32 = vpop.f32.mrb[67].mxu1  ;;  %11292 = vst [vmem:[#allocation15_spill] sm:$0xff] %v9149_v45  ;;  %v1944_v22 = vmul.f32 %v9015_v56, %v9055_v29 }
 0x313   :  { %v9153_v46 = vadd.f32 %v2271_v14, %v1947_v18  ;;  %v2274_v58 = vmul.f32 %v2106_v32, %v9111_v42 }
 0x314   :  { %v9160_v44 = vadd.f32 %v2273_v61, %v1949_v24  ;;  %v9162_v8 = vadd.f32 %v2272_v43, %v1948_v63  ;;  %v2175_v33 = vpop.f32.mrb[68].mxu0  ;;  %v1946_v43 = vmul.f32 %v9019_v31, %v9065_v17 }
 0x315   :  { %v9168_v18 = vadd.f32 %v2274_v58, %v1950_v40  ;;  %v2267_v14 = vmul.f32 %v2175_v33, %v9120_v30  ;;  %v2252_v35 = vpop.f32.mrb[68].mxu1  ;;  %v2177_v48 = vpop.f32.mrb[69].mxu0  ;;  %v11293_v58 = vld [vmem:[#allocation31_spill] sm:$0xff] }
 0x316   :  { %v2269_v24 = vmul.f32 %v2252_v35, %v9127_v5  ;;  %v2268_v63 = vmul.f32 %v2177_v48, %v9130_v13  ;;  %v2254_v61 = vpop.f32.mrb[69].mxu1  ;;  %v9186_v33 = vadd.f32 %v11293_v58, %v9017_v15  ;;  %v11295_v35 = vld [vmem:[#allocation32_spill] sm:$0xff] }
 0x317   :  { %v9179_v32 = vadd.f32 %v2267_v14, %v1943_v34  ;;  %v2270_v20 = vmul.f32 %v2254_v61, %v9137_v2  ;;  %v9190_v48 = vadd.f32 %v11295_v35, %v9017_v15  ;;  %v11297_v34 = vld [vmem:[#allocation33_spill] sm:$0xff]  ;;  %v1951_v61 = vmul.f32 %v9041_v55, %v9069_v11 }
 0x318   :  { %11294 = vst [vmem:[#allocation16_spill] sm:$0xff] %v9186_v33  ;;  %v9192_v54 = vadd.f32 %v2269_v24, %v1945_v49  ;;  %v9194_v28 = vadd.f32 %v2268_v63, %v1944_v22  ;;  %v2181_v31 = vpop.f32.mrb[70].mxu0  ;;  %v9198_v14 = vadd.f32 %v11297_v34, %v9017_v15  ;;  %v1953_v49 = vmul.f32 %v9057_v52, %v9079_v23 }
 0x319   :  { %11296 = vst [vmem:[#allocation17_spill] sm:$0xff] %v9190_v48  ;;  %v9202_v40 = vadd.f32 %v2270_v20, %v1946_v43  ;;  %v2275_v58 = vmul.f32 %v2181_v31, %v9149_v45  ;;  %v2258_v56 = vpop.f32.mrb[70].mxu1  ;;  %v2183_v2 = vpop.f32.mrb[71].mxu0  ;;  %v1952_v22 = vmul.f32 %v9059_v27, %v9073_v10  ;;  %v1954_v55 = vmul.f32 %v9075_v16, %v9083_v1 }
 0x31a   :  { %11298 = vst [vmem:[#allocation18_spill] sm:$0xff] %v9198_v14  ;;  %v2277_v24 = vmul.f32 %v2258_v56, %v9186_v33  ;;  %v2276_v15 = vmul.f32 %v2183_v2, %v9190_v48  ;;  %v2260_v63 = vpop.f32.mrb[71].mxu1 }
 0x31b   :  { %v9213_v43 = vadd.f32 %v2275_v58, %v1951_v61  ;;  %v2278_v20 = vmul.f32 %v2260_v63, %v9198_v14 }
 0x31c   :  { %v9216_v35 = vadd.f32 %v2277_v24, %v1953_v49  ;;  %v9218_v31 = vadd.f32 %v2276_v15, %v1952_v22  ;;  %v2377_v52 = vpop.f32.mrb[72].mxu0 }
 0x31d   :  { %v9222_v34 = vadd.f32 %v2278_v20, %v1954_v55  ;;  %v2379_v56 = vpop.f32.mrb[73].mxu0  ;;  %v2448_v2 = vpop.f32.mrb[72].mxu1 }
 0x31e   :  { %v2450_v16 = vpop.f32.mrb[73].mxu1 }
 0x320   :  { %v2519_v49 = vpop.f32.mrb[74].mxu0 }
 0x321   :  { %v2521_v22 = vpop.f32.mrb[75].mxu0  ;;  %v2590_v24 = vpop.f32.mrb[74].mxu1 }
 0x322   :  { %v2592_v15 = vpop.f32.mrb[75].mxu1 }
 0x324   :  { %v2677_v63 = vpop.f32.mrb[76].mxu0 }
 0x325   :  { %v2895_v27 = vsub.f32 %v2677_v63, %v2377_v52  ;;  %v2748_v55 = vpop.f32.mrb[76].mxu1  ;;  %v2679_v20 = vpop.f32.mrb[77].mxu0 }
 0x326   :  { %v2897_v14 = vsub.f32 %v2748_v55, %v2448_v2  ;;  %v2896_v1 = vsub.f32 %v2679_v20, %v2379_v56  ;;  %v2750_v33 = vpop.f32.mrb[77].mxu1 }
 0x327   :  { %v2903_v10 = vmul.f32 1.442695, %v2895_v27  ;;  %v2898_v48 = vsub.f32 %v2750_v33, %v2450_v16 }
 0x328   :  { %v2907_v23 = vmul.f32 1.442695, %v2897_v14  ;;  %v2905_v45 = vmul.f32 1.442695, %v2896_v1  ;;  %v2819_v11 = vpop.f32.mrb[78].mxu0 }
 0x329   :  { %7924 = vpow2.f32 %v2903_v10  ;;  %v2909_v61 = vmul.f32 1.442695, %v2898_v48  ;;  %v2899_v17 = vsub.f32 %v2819_v11, %v2519_v49  ;;  %v2890_v58 = vpop.f32.mrb[78].mxu1  ;;  %v2821_v13 = vpop.f32.mrb[79].mxu0 }
 0x32a   :  { %7926 = vpow2.f32 %v2907_v23  ;;  %v2901_v5 = vsub.f32 %v2890_v58, %v2590_v24  ;;  %v2900_v30 = vsub.f32 %v2821_v13, %v2521_v22  ;;  %v2892_v29 = vpop.f32.mrb[79].mxu1 }
 0x32b   :  { %7928 = vpow2.f32 %v2905_v45  ;;  %v2911_v52 = vmul.f32 1.442695, %v2899_v17  ;;  %v2902_v63 = vsub.f32 %v2892_v29, %v2592_v15 }
 0x32c   :  { %7930 = vpow2.f32 %v2909_v61  ;;  %v2915_v56 = vmul.f32 1.442695, %v2901_v5  ;;  %v2913_v2 = vmul.f32 1.442695, %v2900_v30 }
 0x32d   :  { %7932 = vpow2.f32 %v2911_v52  ;;  %v2917_v33 = vmul.f32 1.442695, %v2902_v63 }
 0x32e   :  { %7934 = vpow2.f32 %v2915_v56 }
 0x32f   :  { %7936 = vpow2.f32 %v2913_v2 }
 0x330   :  { %7938 = vpow2.f32 %v2917_v33 }
 0x333   :  { %v7925_v10 = vpop.eup %7924 }
 0x334   :  { %v7927_v1 = vpop.eup %7926  ;;  %v2919_v11 = vadd.f32 1.0, %v7925_v10 }
 0x335   :  { %v7929_v48 = vpop.eup %7928  ;;  %v2921_v23 = vadd.f32 1.0, %v7927_v1 }
 0x336   :  { %v7931_v14 = vpop.eup %7930  ;;  %v2920_v27 = vadd.f32 1.0, %v7929_v48  ;;  %7940 = vrcp.f32 %v2919_v11 }
 0x337   :  { %v7933_v13 = vpop.eup %7932  ;;  %v2922_v45 = vadd.f32 1.0, %v7931_v14 }
 0x338   :  { %v7935_v17 = vpop.eup %7934  ;;  %7942 = vrcp.f32 %v2920_v27  ;;  %v2923_v29 = vadd.f32 1.0, %v7933_v13  ;;  %v11300_v27 = vpack.c.bf16 %v9168_v18, %v9140_v0  ;;  %v11302_v0 = vpack.c.bf16 %v9160_v44, %v9132_v60 }
 0x339   :  { %v7937_v5 = vpop.eup %7936  ;;  %7944 = vrcp.f32 %v2922_v45  ;;  %v2925_v16 = vadd.f32 1.0, %v7935_v17  ;;  %v11304_v18 = vpack.c.bf16 %v9222_v34, %v9202_v40  ;;  %v11306_v60 = vpack.c.bf16 %v9216_v35, %v9192_v54 }
 0x33a   :  { %v7939_v30 = vpop.eup %7938  ;;  %7946 = vrcp.f32 %v2921_v23  ;;  %v2924_v61 = vadd.f32 1.0, %v7937_v5  ;;  %v11299_v23 = vpack.c.bf16 %v9162_v8, %v9134_v12  ;;  %v11301_v12 = vpack.c.bf16 %v9153_v46, %v9123_v37 }
 0x33b   :  { %7948 = vrcp.f32 %v2923_v29  ;;  %v2926_v58 = vadd.f32 1.0, %v7939_v30  ;;  %v11303_v8 = vpack.c.bf16 %v9218_v31, %v9194_v28  ;;  %v11305_v37 = vpack.c.bf16 %v9213_v43, %v9179_v32 }
 0x33c   :  { %7950 = vrcp.f32 %v2924_v61 }
 0x33d   :  { %7952 = vrcp.f32 %v2926_v58 }
 0x33e   :  { %7954 = vrcp.f32 %v2925_v16 }
 0x340   :  { %v7941_v49 = vpop.eup %7940 }
 0x341   :  { %v2935_v33 = vsub.f32 1.0, %v7941_v49 }
 0x342   :  { %v7943_v22 = vpop.eup %7942 }
 0x343   :  { %v7945_v24 = vpop.eup %7944  ;;  %2943 = vmatprep.subr.mxu0 %v7943_v22  ;;  %v2936_v56 = vsub.f32 1.0, %v7943_v22 }
 0x344   :  { %v7947_v15 = vpop.eup %7946  ;;  %3020 = vmatprep.subr.mxu1 %v7945_v24  ;;  %2944 = vmatpush1.msra.mxu0 %v7941_v49  ;;  %v2938_v2 = vsub.f32 1.0, %v7945_v24 }
 0x345   :  { %v7949_v55 = vpop.eup %7948  ;;  %3021 = vmatpush1.msra.mxu1 %v7947_v15  ;;  %7314 = vmatmul.mubr.msk.f32.vlgmr.msra.gmra.mrb[80].mxu0 %vm1624_vm9, %v8880_v7  ;;  %v2937_v10 = vsub.f32 1.0, %v7947_v15 }
 0x346   :  { %v7951_v20 = vpop.eup %7950  ;;  %7316 = vmatmul.mubr.msk.f32.vlgmr.msra.gmra.mrb[80].mxu1 %vm1624_vm9, %v8880_v7  ;;  %3013 = vmatprep.mubr.f32.mxu0 %v11217_v26  ;;  %v2939_v48 = vsub.f32 1.0, %v7949_v55 }
 0x347   :  { %v7953_v52 = vpop.eup %7952  ;;  %3097 = vmatprep.subr.mxu0 %v7951_v20  ;;  %3090 = vmatprep.mubr.f32.mxu1 %v11217_v26  ;;  %v2940_v1 = vsub.f32 1.0, %v7951_v20 }
 0x348   :  { %v7955_v63 = vpop.eup %7954  ;;  %3174 = vmatprep.subr.mxu1 %v7953_v52  ;;  %3098 = vmatpush1.msra.mxu0 %v7949_v55  ;;  %v2942_v11 = vsub.f32 1.0, %v7953_v52 }
 0x349   :  { %3175 = vmatpush1.msra.mxu1 %v7955_v63  ;;  %7315 = vmatmul.mubr.msk.f32.gmra.mrb[82].mxu0 %vm1624_vm9, %v8892_v39  ;;  %v2941_v14 = vsub.f32 1.0, %v7955_v63 }
 0x34a   :  { %7317 = vmatmul.mubr.msk.f32.gmra.mrb[82].mxu1 %vm1624_vm9, %v8892_v39  ;;  %3267 = vmatprep.subr.mxu0 %v2936_v56 }
 0x34b   :  { %3344 = vmatprep.subr.mxu1 %v2938_v2  ;;  %3161 = vmatprep.mubr.f32.mxu0 %v11217_v26 }
 0x34c   :  { %3238 = vmatprep.mubr.f32.mxu1 %v11217_v26 }
 0x34d   :  { %7318 = vmatmul.mubr.msk.f32.vlgmr.msra.gmra.mrb[84].mxu0 %vm1624_vm9, %v8880_v7 }
 0x34e   :  { %7320 = vmatmul.mubr.msk.f32.vlgmr.msra.gmra.mrb[84].mxu1 %vm1624_vm9, %v8880_v7  ;;  %3268 = vmatpush1.msra.mxu0 %v2935_v33 }
 0x34f   :  { %3345 = vmatpush1.msra.mxu1 %v2937_v10  ;;  %3421 = vmatprep.subr.mxu0 %v2940_v1 }
 0x350   :  { %3498 = vmatprep.subr.mxu1 %v2942_v11  ;;  %3167 = vmatprep.mubr.f32.mxu0 %v11217_v26 }
 0x351   :  { %3244 = vmatprep.mubr.f32.mxu1 %v11217_v26  ;;  %7319 = vmatmul.mubr.msk.f32.gmra.mrb[86].mxu0 %vm1624_vm9, %v8892_v39 }
 0x352   :  { %7321 = vmatmul.mubr.msk.f32.gmra.mrb[86].mxu1 %vm1624_vm9, %v8892_v39  ;;  %3331 = vmatprep.mubr.f32.mxu0 %v11217_v26 }
 0x353   :  { %3408 = vmatprep.mubr.f32.mxu1 %v11217_v26 }
 0x355   :  { %7322 = vmatmul.mubr.msk.f32.vlgmr.msra.gmra.mrb[88].mxu0 %vm1624_vm9, %v8880_v7 }
 0x356   :  { %7324 = vmatmul.mubr.msk.f32.vlgmr.msra.gmra.mrb[88].mxu1 %vm1624_vm9, %v8880_v7  ;;  %3422 = vmatpush1.msra.mxu0 %v2939_v48 }
 0x357   :  { %3499 = vmatpush1.msra.mxu1 %v2941_v14  ;;  %7632 = vmatprep.subr.bf16.mxu0 %v11299_v23 }
 0x358   :  { %7636 = vmatprep.subr.bf16.mxu1 %v11300_v27  ;;  %3337 = vmatprep.mubr.f32.mxu0 %v11217_v26 }
 0x359   :  { %3414 = vmatprep.mubr.f32.mxu1 %v11217_v26  ;;  %7323 = vmatmul.mubr.msk.f32.gmra.mrb[90].mxu0 %vm1624_vm9, %v8892_v39 }
 0x35a   :  { %7325 = vmatmul.mubr.msk.f32.gmra.mrb[90].mxu1 %vm1624_vm9, %v8892_v39  ;;  %3485 = vmatprep.mubr.f32.mxu0 %v11217_v26 }
 0x35b   :  { %3562 = vmatprep.mubr.f32.mxu1 %v11217_v26 }
 0x35d   :  { %7326 = vmatmul.mubr.msk.f32.vlgmr.msra.gmra.mrb[92].mxu0 %vm1624_vm9, %v8880_v7 }
 0x35e   :  { %7328 = vmatmul.mubr.msk.f32.vlgmr.msra.gmra.mrb[92].mxu1 %vm1624_vm9, %v8880_v7  ;;  %7634 = vmatpush1.bf16.msra.mxu0 %v11301_v12  ;;  %v9298_v7 = vld [vmem:[%s11164_s1 + $0x30] sm:$0xff] }
 0x35f   :  { %7638 = vmatpush1.bf16.msra.mxu1 %v11302_v0  ;;  %7640 = vmatprep.subr.bf16.mxu0 %v11303_v8 }
 0x360   :  { %7644 = vmatprep.subr.bf16.mxu1 %v11304_v18  ;;  %3491 = vmatprep.mubr.f32.mxu0 %v11217_v26 }
 0x361   :  { %3568 = vmatprep.mubr.f32.mxu1 %v11217_v26  ;;  %7327 = vmatmul.mubr.msk.f32.gmra.mrb[94].mxu0 %vm1624_vm9, %v8892_v39 }
 0x362   :  { %7329 = vmatmul.mubr.msk.f32.gmra.mrb[94].mxu1 %vm1624_vm9, %v8892_v39  ;;  %3687 = vmatprep.mubr.f32.mxu0 %v11217_v26  ;;  %v9311_v39 = vld [vmem:[%s11164_s1 + $0x38] sm:$0xff] }
 0x363   :  { %3764 = vmatprep.mubr.f32.mxu1 %v11217_v26 }
 0x365   :  { %7330 = vmatmul.mubr.msk.f32.vlgmr.msra.gmra.mrb[96].mxu0 %vm146_vm0, %v9298_v7 }
 0x366   :  { %7332 = vmatmul.mubr.msk.f32.vlgmr.msra.gmra.mrb[96].mxu1 %vm146_vm0, %v9298_v7  ;;  %7642 = vmatpush1.bf16.msra.mxu0 %v11305_v37 }
 0x367   :  { %7646 = vmatpush1.bf16.msra.mxu1 %v11306_v60  ;;  %3693 = vmatprep.mubr.f32.mxu0 %v11217_v26 }
 0x368   :  { %3770 = vmatprep.mubr.f32.mxu1 %v11217_v26 }
 0x369   :  { %7331 = vmatmul.mubr.msk.f32.gmra.mrb[98].mxu0 %vm146_vm0, %v9311_v39 }
 0x36a   :  { %7333 = vmatmul.mubr.msk.f32.gmra.mrb[98].mxu1 %vm146_vm0, %v9311_v39  ;;  %3841 = vmatprep.mubr.f32.mxu0 %v11217_v26 }
 0x36b   :  { %3918 = vmatprep.mubr.f32.mxu1 %v11217_v26 }
 0x36d   :  { %7334 = vmatmul.mubr.msk.f32.vlgmr.msra.gmra.mrb[100].mxu0 %vm146_vm0, %v9298_v7 }
 0x36e   :  { %7336 = vmatmul.mubr.msk.f32.vlgmr.msra.gmra.mrb[100].mxu1 %vm146_vm0, %v9298_v7  ;;  %3847 = vmatprep.mubr.f32.mxu0 %v11217_v26 }
 0x36f   :  { %3924 = vmatprep.mubr.f32.mxu1 %v11217_v26 }
 0x371   :  { %7335 = vmatmul.mubr.msk.f32.gmra.mrb[102].mxu0 %vm146_vm0, %v9311_v39 }
 0x372   :  { %7337 = vmatmul.mubr.msk.f32.gmra.mrb[102].mxu1 %vm146_vm0, %v9311_v39  ;;  %3995 = vmatprep.mubr.f32.mxu0 %v11217_v26 }
 0x373   :  { %4072 = vmatprep.mubr.f32.mxu1 %v11217_v26 }
 0x418   :  { %v3009_v46 = vpop.f32.mrb[80].mxu0 }
 0x419   :  { %v3086_v44 = vpop.f32.mrb[80].mxu1  ;;  %v3011_v28 = vpop.f32.mrb[81].mxu0  ;;  %v3251_v61 = vmul.f32 %v3009_v46, %v9022_v3 }
 0x41a   :  { %v3088_v54 = vpop.f32.mrb[81].mxu1  ;;  %v3253_v24 = vmul.f32 %v3086_v44, %v9028_v38  ;;  %v3252_v15 = vmul.f32 %v3011_v28, %v9025_v50 }
 0x41b   :  { %v3254_v63 = vmul.f32 %v3088_v54, %v9031_v36  ;;  %v11310_v54 = vld [vmem:[#allocation13_spill] sm:$0xff] }
 0x41c   :  { %v3015_v32 = vpop.f32.mrb[82].mxu0 }
 0x41d   :  { %v3092_v40 = vpop.f32.mrb[82].mxu1  ;;  %v3017_v43 = vpop.f32.mrb[83].mxu0 }
 0x41e   :  { %v3094_v35 = vpop.f32.mrb[83].mxu1 }
 0x420   :  { %v3163_v31 = vpop.f32.mrb[84].mxu0 }
 0x421   :  { %v3240_v34 = vpop.f32.mrb[84].mxu1  ;;  %v3165_v13 = vpop.f32.mrb[85].mxu0 }
 0x422   :  { %v3242_v45 = vpop.f32.mrb[85].mxu1 }
 0x424   :  { %v3169_v17 = vpop.f32.mrb[86].mxu0 }
 0x425   :  { %v9336_v29 = vpop.f32.mrb[86].mxu1  ;;  %v9338_v5 = vpop.f32.mrb[87].mxu0 }
 0x426   :  { %v9340_v30 = vpop.f32.mrb[87].mxu1 }
 0x428   :  { %v3333_v16 = vpop.f32.mrb[88].mxu0 }
 0x429   :  { %v3575_v58 = vmul.f32 %v3333_v16, %v9086_v62  ;;  %v3410_v49 = vpop.f32.mrb[88].mxu1  ;;  %v3335_v22 = vpop.f32.mrb[89].mxu0  ;;  %v3259_v62 = vmul.f32 %v3015_v32, %v9035_v25  ;;  %v3255_v25 = vmul.f32 %v3163_v31, %v9052_v59 }
 0x42a   :  { %v3577_v55 = vmul.f32 %v3410_v49, %v9089_v21  ;;  %v3576_v20 = vmul.f32 %v3335_v22, %v9092_v41  ;;  %v3412_v52 = vpop.f32.mrb[89].mxu1  ;;  %v3261_v21 = vmul.f32 %v3092_v40, %v9045_v51  ;;  %v3260_v41 = vmul.f32 %v3017_v43, %v9039_v9  ;;  %v11307_v51 = vld [vmem:[#allocation5_spill] sm:$0xff]  ;;  %v11311_v40 = vld [vmem:[#allocation6_spill] sm:$0xff] }
 0x42b   :  { %v3591_v56 = vadd.f32 %v3575_v58, %v3251_v61  ;;  %v3578_v2 = vmul.f32 %v3412_v52, %v9095_v53  ;;  %v3262_v53 = vmul.f32 %v3094_v35, %v9049_v47  ;;  %v3256_v18 = vmul.f32 %v3165_v13, %v11307_v51  ;;  %v11309_v47 = vld [vmem:[#allocation12_spill] sm:$0xff]  ;;  %v11312_v35 = vld [vmem:[#allocation14_spill] sm:$0xff]  ;;  %v11313_v58 = vld [vmem:[#allocation7_spill] sm:$0xff] }
 0x42c   :  { %v3593_v33 = vadd.f32 %v3577_v55, %v3253_v24  ;;  %v3592_v3 = vadd.f32 %v3576_v20, %v3252_v15  ;;  %v3339_v10 = vpop.f32.mrb[90].mxu0  ;;  %v3263_v49 = vmul.f32 %v3169_v17, %v11313_v58  ;;  %v11314_v24 = vld [vmem:[#allocation15_spill] sm:$0xff]  ;;  %v11315_v52 = vld [vmem:[#allocation9_spill] sm:$0xff]  ;;  %v11319_v17 = vld [vmem:[#allocation10_spill] sm:$0xff] }
 0x42d   :  { %v3594_v1 = vadd.f32 %v3578_v2, %v3254_v63  ;;  %v3583_v38 = vmul.f32 %v3339_v10, %v9099_v6  ;;  %v3416_v11 = vpop.f32.mrb[90].mxu1  ;;  %v3341_v50 = vpop.f32.mrb[91].mxu0  ;;  %v3257_v6 = vmul.f32 %v3240_v34, %v9062_v19  ;;  %v3258_v19 = vmul.f32 %v3242_v45, %v11311_v40  ;;  %v11316_v63 = vld [vmem:[#allocation8_spill] sm:$0xff]  ;;  %v8023_v40 = vld [vmem:[%s11163_s0 + $0x8] sm:$0xff] }
 0x42e   :  { %v3585_v48 = vmul.f32 %v3416_v11, %v9103_v4  ;;  %v3584_v36 = vmul.f32 %v3341_v50, %v9107_v57  ;;  %v3418_v14 = vpop.f32.mrb[91].mxu1  ;;  %v11308_v4 = vld [vmem:[#allocation11_spill] sm:$0xff]  ;;  %v3265_v45 = vmul.f32 %v9336_v29, %v11315_v52  ;;  %v11317_v2 = vld [vmem:[#allocation16_spill] sm:$0xff]  ;;  %v11320_v11 = vld [vmem:[#allocation18_spill] sm:$0xff] }
 0x42f   :  { %v3599_v23 = vadd.f32 %v3583_v38, %v3259_v62  ;;  %v3586_v27 = vmul.f32 %v3418_v14, %v9111_v42 }
 0x430   :  { %v3601_v12 = vadd.f32 %v3585_v48, %v3261_v21  ;;  %v3600_v0 = vadd.f32 %v3584_v36, %v3260_v41  ;;  %v3487_v8 = vpop.f32.mrb[92].mxu0  ;;  %v9377_v21 = vpop.permute.xlu0 %3609 }
 0x431   :  { %v7649_v9 = vpack.c.bf16 %v3599_v23, %v3591_v56  ;;  %v3602_v37 = vadd.f32 %v3586_v27, %v3262_v53  ;;  %v3579_v60 = vmul.f32 %v3487_v8, %v11308_v4  ;;  %v3564_v57 = vpop.f32.mrb[92].mxu1  ;;  %v3489_v46 = vpop.f32.mrb[93].mxu0  ;;  %v3264_v56 = vmul.f32 %v9338_v5, %v11316_v63 }
 0x432   :  { %v7653_v44 = vpack.c.bf16 %v3601_v12, %v3593_v33  ;;  %v3581_v28 = vmul.f32 %v3564_v57, %v11309_v47  ;;  %v3580_v42 = vmul.f32 %v3489_v46, %v11310_v54  ;;  %v3566_v32 = vpop.f32.mrb[93].mxu1  ;;  %v7647_v59 = vpack.c.bf16 %v3600_v0, %v3592_v3  ;;  %v11318_v3 = vld [vmem:[#allocation17_spill] sm:$0xff]  ;;  %v9387_v0 = vpop.permute.xlu1 %3614 }
 0x433   :  { %v3595_v43 = vadd.f32 %v3579_v60, %v3255_v25  ;;  %v3582_v31 = vmul.f32 %v3566_v32, %v11312_v35  ;;  %v7651_v34 = vpack.c.bf16 %v3602_v37, %v3594_v1  ;;  %v3266_v1 = vmul.f32 %v9340_v30, %v11319_v17  ;;  %v8020_v60 = vld [vmem:[%s11163_s0] sm:$0xff] }
 0x434   :  { %v3597_v13 = vadd.f32 %v3581_v28, %v3257_v6  ;;  %v3596_v16 = vadd.f32 %v3580_v42, %v3256_v18  ;;  %v3493_v61 = vpop.f32.mrb[94].mxu0  ;;  %7648 = vmatprep.subr.bf16.mxu0 %v7647_v59  ;;  %v8021_v28 = vld [vmem:[%s11163_s0 + $0x10] sm:$0xff]  ;;  %v8022_v42 = vld [vmem:[%s11163_s0 + $0x80] sm:$0xff] }
 0x435   :  { %v3598_v22 = vadd.f32 %v3582_v31, %v3258_v19  ;;  %v3587_v15 = vmul.f32 %v3493_v61, %v11314_v24  ;;  %v3570_v55 = vpop.f32.mrb[94].mxu1  ;;  %7652 = vmatprep.subr.bf16.mxu1 %v7651_v34  ;;  %v3495_v20 = vpop.f32.mrb[95].mxu0  ;;  %7650 = vmatpush1.bf16.msra.mxu0 %v7649_v9  ;;  %v8025_v31 = vld [vmem:[%s11163_s0 + $0x90] sm:$0xff] }
 0x436   :  { %v3589_v33 = vmul.f32 %v3570_v55, %v11317_v2  ;;  %v3588_v10 = vmul.f32 %v3495_v20, %v11318_v3  ;;  %v3572_v62 = vpop.f32.mrb[95].mxu1  ;;  %7654 = vmatpush1.bf16.msra.mxu1 %v7653_v44 }
 0x437   :  { %v3603_v38 = vadd.f32 %v3587_v15, %v3263_v49  ;;  %v3590_v50 = vmul.f32 %v3572_v62, %v11320_v11  ;;  %v8027_v49 = vld [vmem:[%s11163_s0 + $0x98] sm:$0xff]  ;;  %v8030_v11 = vld [vmem:[%s11163_s0 + $0x28] sm:$0xff] }
 0x438   :  { %v3605_v41 = vadd.f32 %v3589_v33, %v3265_v45  ;;  %v3604_v48 = vadd.f32 %v3588_v10, %v3264_v56  ;;  %v3689_v29 = vpop.f32.mrb[96].mxu0  ;;  %7338 = vmatmul.mubr.msk.f32.vlgmr.msra.gmra.mrb[104].mxu0 %vm146_vm0, %v9298_v7 }
 0x439   :  { %v7657_v5 = vpack.c.bf16 %v3603_v38, %v3595_v43  ;;  %v3606_v36 = vadd.f32 %v3590_v50, %v3266_v1  ;;  %v3766_v14 = vpop.f32.mrb[96].mxu1  ;;  %7340 = vmatmul.mubr.msk.f32.vlgmr.msra.gmra.mrb[104].mxu1 %vm146_vm0, %v9298_v7  ;;  %v3691_v53 = vpop.f32.mrb[97].mxu0  ;;  %4001 = vmatprep.mubr.f32.mxu0 %v11217_v26  ;;  %v3690_v23 = vadd.f32 %v3689_v29, %v9377_v21  ;;  %v8024_v43 = vld [vmem:[%s11163_s0 + $0x18] sm:$0xff]  ;;  %v8029_v1 = vld [vmem:[%s11163_s0 + $0x30] sm:$0xff] }
 0x43a   :  { %v7661_v30 = vpack.c.bf16 %v3605_v41, %v3597_v13  ;;  %v3768_v27 = vpop.f32.mrb[97].mxu1  ;;  %4078 = vmatprep.mubr.f32.mxu1 %v11217_v26  ;;  %v7655_v25 = vpack.c.bf16 %v3604_v48, %v3596_v16  ;;  %v3767_v6 = vadd.f32 %v3766_v14, %v9377_v21  ;;  %v3692_v8 = vadd.f32 %v3691_v53, %v9377_v21  ;;  %v8026_v13 = vld [vmem:[%s11163_s0 + $0x88] sm:$0xff] }
 0x43b   :  { %v7659_v12 = vpack.c.bf16 %v3606_v36, %v3598_v22  ;;  %v3769_v51 = vadd.f32 %v3768_v27, %v9377_v21  ;;  %v9399_v57 = vadd.f32 %v8020_v60, %v3690_v23  ;;  %v8033_v60 = vld [vmem:[%s11163_s0 + $0xb0] sm:$0xff] }
 0x43c   :  { %v3695_v18 = vpop.f32.mrb[98].mxu0  ;;  %7339 = vmatmul.mubr.msk.f32.gmra.mrb[106].mxu0 %vm146_vm0, %v9311_v39  ;;  %7656 = vmatprep.subr.bf16.mxu0 %v7655_v25  ;;  %v9406_v54 = vadd.f32 %v8021_v28, %v3767_v6  ;;  %v9419_v19 = vadd.f32 %v8023_v40, %v3692_v8  ;;  %v8035_v40 = vld [vmem:[%s11163_s0 + $0xb8] sm:$0xff] }
 0x43d   :  { %v3696_v9 = vadd.f32 %v3695_v18, %v9387_v0  ;;  %v3772_v37 = vpop.f32.mrb[98].mxu1  ;;  %7341 = vmatmul.mubr.msk.f32.gmra.mrb[106].mxu1 %vm146_vm0, %v9311_v39  ;;  %7660 = vmatprep.subr.bf16.mxu1 %v7659_v12  ;;  %v3697_v4 = vpop.f32.mrb[99].mxu0  ;;  %v9424_v35 = vadd.f32 %v8024_v43, %v3769_v51  ;;  %v8032_v18 = vld [vmem:[%s11163_s0 + $0xa0] sm:$0xff] }
 0x43e   :  { %v3773_v46 = vadd.f32 %v3772_v37, %v9387_v0  ;;  %v3698_v44 = vadd.f32 %v3697_v4, %v9387_v0  ;;  %v3774_v47 = vpop.f32.mrb[99].mxu1  ;;  %7658 = vmatpush1.bf16.msra.mxu0 %v7657_v5  ;;  %7662 = vmatpush1.bf16.msra.mxu1 %v7661_v30  ;;  %v8031_v5 = vld [vmem:[%s11163_s0 + $0x38] sm:$0xff] }
 0x43f   :  { %v9411_v32 = vadd.f32 %v8022_v42, %v3696_v9  ;;  %v3775_v59 = vadd.f32 %v3774_v47, %v9387_v0  ;;  %4149 = vmatprep.mubr.f32.mxu0 %v11217_v26  ;;  %4226 = vmatprep.mubr.f32.mxu1 %v11217_v26 }
 0x440   :  { %v9429_v34 = vadd.f32 %v8025_v31, %v3773_v46  ;;  %v9434_v16 = vadd.f32 %v8026_v13, %v3698_v44  ;;  %v3843_v61 = vpop.f32.mrb[100].mxu0  ;;  %v8034_v44 = vld [vmem:[%s11163_s0 + $0xa8] sm:$0xff] }
 0x441   :  { %v4271_v58 = vadd.f32 %v9411_v32, %v9399_v57  ;;  %v9441_v22 = vadd.f32 %v8027_v49, %v3775_v59  ;;  %v3844_v24 = vadd.f32 %v3843_v61, %v9377_v21  ;;  %v3920_v15 = vpop.f32.mrb[100].mxu1  ;;  %7342 = vmatmul.mubr.msk.f32.vlgmr.msra.gmra.mrb[108].mxu0 %vm146_vm0, %v9298_v7  ;;  %7344 = vmatmul.mubr.msk.f32.vlgmr.msra.gmra.mrb[108].mxu1 %vm146_vm0, %v9298_v7  ;;  %v3845_v55 = vpop.f32.mrb[101].mxu0  ;;  %v8028_v7 = vld [vmem:[%s11163_s0 + $0x20] sm:$0xff] }
 0x442   :  { %v4285_v20 = vadd.f32 %v9429_v34, %v9406_v54  ;;  %v4278_v52 = vadd.f32 %v9434_v16, %v9419_v19  ;;  %v3921_v45 = vadd.f32 %v3920_v15, %v9377_v21  ;;  %v3846_v63 = vadd.f32 %v3845_v55, %v9377_v21  ;;  %v3922_v56 = vpop.f32.mrb[101].mxu1  ;;  %4155 = vmatprep.mubr.f32.mxu0 %v11217_v26 }
 0x443   :  { %v4272_v2 = vrot.slane %v4271_v58, 4  ;;  %v4292_v33 = vadd.f32 %v9441_v22, %v9424_v35  ;;  %v9460_v3 = vadd.f32 %v8028_v7, %v3844_v24  ;;  %v3923_v10 = vadd.f32 %v3922_v56, %v9377_v21  ;;  %4232 = vmatprep.mubr.f32.mxu1 %v11217_v26 }
 0x444   :  { %v4286_v62 = vrot.slane %v4285_v20, 4  ;;  %v4279_v17 = vrot.slane %v4278_v52, 4  ;;  %v9467_v38 = vadd.f32 %v8029_v1, %v3921_v45  ;;  %v9472_v50 = vadd.f32 %v8030_v11, %v3846_v63  ;;  %v3849_v41 = vpop.f32.mrb[102].mxu0 }
 0x445   :  { %v4273_v48 = vadd.f32 %v4272_v2, %v4271_v58  ;;  %v4293_v29 = vrot.slane %v4292_v33, 4  ;;  %v9477_v36 = vadd.f32 %v8031_v5, %v3923_v10  ;;  %v3850_v14 = vadd.f32 %v3849_v41, %v9387_v0  ;;  %v3926_v53 = vpop.f32.mrb[102].mxu1  ;;  %7343 = vmatmul.mubr.msk.f32.gmra.mrb[110].mxu0 %vm146_vm0, %v9311_v39  ;;  %7345 = vmatmul.mubr.msk.f32.gmra.mrb[110].mxu1 %vm146_vm0, %v9311_v39  ;;  %v3851_v30 = vpop.f32.mrb[103].mxu0 }
 0x446   :  { %v4287_v23 = vadd.f32 %v4286_v62, %v4285_v20  ;;  %v4280_v27 = vadd.f32 %v4279_v17, %v4278_v52  ;;  %v3927_v25 = vadd.f32 %v3926_v53, %v9387_v0  ;;  %v3852_v6 = vadd.f32 %v3851_v30, %v9387_v0  ;;  %v3928_v12 = vpop.f32.mrb[103].mxu1  ;;  %4836 = vmatprep.mubr.f32.mxu0 %v11217_v26 }
 0x447   :  { %v4274_v8 = vrot.slane %v4273_v48, 2  ;;  %v4294_v51 = vadd.f32 %v4293_v29, %v4292_v33  ;;  %v9490_v9 = vadd.f32 %v8032_v18, %v3850_v14  ;;  %v3929_v39 = vadd.f32 %v3928_v12, %v9387_v0  ;;  %4925 = vmatprep.mubr.f32.mxu1 %v11217_v26 }
 0x448   :  { %v4288_v37 = vrot.slane %v4287_v23, 2  ;;  %v4281_v4 = vrot.slane %v4280_v27, 2  ;;  %v9497_v46 = vadd.f32 %v8033_v60, %v3927_v25  ;;  %v9502_v47 = vadd.f32 %v8034_v44, %v3852_v6 }
 0x449   :  { %v4275_v28 = vadd.f32 %v4274_v8, %v4273_v48  ;;  %v4295_v42 = vrot.slane %v4294_v51, 2  ;;  %v4299_v59 = vadd.f32 %v9490_v9, %v9460_v3  ;;  %v9509_v43 = vadd.f32 %v8035_v40, %v3929_v39 }
 0x44a   :  { %v4289_v31 = vadd.f32 %v4288_v37, %v4287_v23  ;;  %v4282_v13 = vadd.f32 %v4281_v4, %v4280_v27  ;;  %v4313_v61 = vadd.f32 %v9497_v46, %v9467_v38  ;;  %v4306_v58 = vadd.f32 %v9502_v47, %v9472_v50 }
 0x44b   :  { %v4276_v49 = vrot.slane %v4275_v28, 1  ;;  %v4296_v24 = vadd.f32 %v4295_v42, %v4294_v51  ;;  %v4300_v15 = vrot.slane %v4299_v59, 4  ;;  %v4320_v55 = vadd.f32 %v9509_v43, %v9477_v36 }
 0x44c   :  { %v4290_v20 = vrot.slane %v4289_v31, 1  ;;  %v4283_v52 = vrot.slane %v4282_v13, 1  ;;  %v4314_v45 = vrot.slane %v4313_v61, 4  ;;  %v4307_v63 = vrot.slane %v4306_v58, 4 }
 0x44d   :  { %v4277_v56 = vadd.f32 %v4276_v49, %v4275_v28  ;;  %v4297_v2 = vrot.slane %v4296_v24, 1  ;;  %v4301_v33 = vadd.f32 %v4300_v15, %v4299_v59  ;;  %v4321_v7 = vrot.slane %v4320_v55, 4 }
 0x44e   :  { %v4291_v10 = vadd.f32 %v4290_v20, %v4289_v31  ;;  %v4284_v62 = vadd.f32 %v4283_v52, %v4282_v13  ;;  %v4315_v17 = vadd.f32 %v4314_v45, %v4313_v61  ;;  %v4308_v1 = vadd.f32 %v4307_v63, %v4306_v58 }
 0x44f   :  { %v4384_v11 = vmul.f32 0.0625, %v4277_v56  ;;  %v4298_v41 = vadd.f32 %v4297_v2, %v4296_v24  ;;  %v4302_v48 = vrot.slane %v4301_v33, 2  ;;  %v4322_v29 = vadd.f32 %v4321_v7, %v4320_v55 }
 0x450   :  { %v4386_v5 = vmul.f32 0.0625, %v4291_v10  ;;  %v4385_v14 = vmul.f32 0.0625, %v4284_v62  ;;  %v4316_v53 = vrot.slane %v4315_v17, 2  ;;  %v4309_v30 = vrot.slane %v4308_v1, 2 }
 0x451   :  { %v9518_v23 = vsub.f32 %v9399_v57, %v4384_v11  ;;  %v9521_v27 = vsub.f32 %v9411_v32, %v4384_v11  ;;  %v4387_v25 = vmul.f32 0.0625, %v4298_v41  ;;  %v4303_v6 = vadd.f32 %v4302_v48, %v4301_v33 }
 0x452   :  { %v9524_v12 = vsub.f32 %v9406_v54, %v4386_v5  ;;  %v9527_v8 = vsub.f32 %v9429_v34, %v4386_v5  ;;  %v9530_v51 = vsub.f32 %v9419_v19, %v4385_v14  ;;  %v9533_v18 = vsub.f32 %v9434_v16, %v4385_v14 }
 0x453   :  { %v4432_v57 = vmul.f32 %v9518_v23, %v9518_v23  ;;  %v4448_v32 = vmul.f32 %v9521_v27, %v9521_v27  ;;  %v9540_v39 = vsub.f32 %v9424_v35, %v4387_v25  ;;  %v9543_v54 = vsub.f32 %v9441_v22, %v4387_v25 }
 0x454   :  { %v4434_v34 = vmul.f32 %v9524_v12, %v9524_v12  ;;  %v4450_v19 = vmul.f32 %v9527_v8, %v9527_v8  ;;  %v4433_v16 = vmul.f32 %v9530_v51, %v9530_v51  ;;  %v4449_v37 = vmul.f32 %v9533_v18, %v9533_v18 }
 0x455   :  { %v4464_v4 = vadd.f32 %v4448_v32, %v4432_v57  ;;  %v4435_v35 = vmul.f32 %v9540_v39, %v9540_v39  ;;  %v4451_v22 = vmul.f32 %v9543_v54, %v9543_v54  ;;  %v4304_v60 = vrot.slane %v4303_v6, 1 }
 0x456   :  { %v4478_v44 = vadd.f32 %v4450_v19, %v4434_v34  ;;  %v4471_v28 = vadd.f32 %v4449_v37, %v4433_v16  ;;  %v4317_v42 = vadd.f32 %v4316_v53, %v4315_v17  ;;  %v4310_v59 = vadd.f32 %v4309_v30, %v4308_v1 }
 0x457   :  { %v4465_v40 = vrot.slane %v4464_v4, 4  ;;  %v4485_v31 = vadd.f32 %v4451_v22, %v4435_v35  ;;  %v4305_v13 = vadd.f32 %v4304_v60, %v4303_v6  ;;  %v4323_v61 = vrot.slane %v4322_v29, 2 }
 0x458   :  { %v4479_v58 = vrot.slane %v4478_v44, 4  ;;  %v4472_v49 = vrot.slane %v4471_v28, 4  ;;  %v4318_v24 = vrot.slane %v4317_v42, 1  ;;  %v4311_v15 = vrot.slane %v4310_v59, 1 }
 0x459   :  { %v4466_v55 = vadd.f32 %v4465_v40, %v4464_v4  ;;  %v4486_v20 = vrot.slane %v4485_v31, 4  ;;  %v4388_v52 = vmul.f32 0.0625, %v4305_v13  ;;  %v4324_v45 = vadd.f32 %v4323_v61, %v4322_v29 }
 0x45a   :  { %v4480_v63 = vadd.f32 %v4479_v58, %v4478_v44  ;;  %v4473_v56 = vadd.f32 %v4472_v49, %v4471_v28  ;;  %v4319_v2 = vadd.f32 %v4318_v24, %v4317_v42  ;;  %v4312_v33 = vadd.f32 %v4311_v15, %v4310_v59 }
 0x45b   :  { %v4467_v7 = vrot.slane %v4466_v55, 2  ;;  %v4487_v10 = vadd.f32 %v4486_v20, %v4485_v31  ;;  %v9558_v62 = vsub.f32 %v9460_v3, %v4388_v52  ;;  %v9561_v17 = vsub.f32 %v9490_v9, %v4388_v52 }
 0x45c   :  { %v4481_v1 = vrot.slane %v4480_v63, 2  ;;  %v4474_v11 = vrot.slane %v4473_v56, 2  ;;  %v4390_v41 = vmul.f32 0.0625, %v4319_v2  ;;  %v4389_v48 = vmul.f32 0.0625, %v4312_v33 }
 0x45d   :  { %v4468_v5 = vadd.f32 %v4467_v7, %v4466_v55  ;;  %v4488_v14 = vrot.slane %v4487_v10, 2  ;;  %v4436_v29 = vmul.f32 %v9558_v62, %v9558_v62  ;;  %v4452_v53 = vmul.f32 %v9561_v17, %v9561_v17 }
 0x45e   :  { %v4482_v30 = vadd.f32 %v4481_v1, %v4480_v63  ;;  %v4475_v25 = vadd.f32 %v4474_v11, %v4473_v56  ;;  %v9568_v3 = vsub.f32 %v9467_v38, %v4390_v41  ;;  %v9571_v9 = vsub.f32 %v9497_v46, %v4390_v41 }
 0x45f   :  { %v4469_v6 = vrot.slane %v4468_v5, 1  ;;  %v4489_v57 = vadd.f32 %v4488_v14, %v4487_v10  ;;  %v4492_v32 = vadd.f32 %v4452_v53, %v4436_v29  ;;  %v9574_v34 = vsub.f32 %v9472_v50, %v4389_v48 }
 0x460   :  { %v4483_v19 = vrot.slane %v4482_v30, 1  ;;  %v4476_v16 = vrot.slane %v4475_v25, 1  ;;  %v4438_v37 = vmul.f32 %v9568_v3, %v9568_v3  ;;  %v4454_v4 = vmul.f32 %v9571_v9, %v9571_v9 }
 0x461   :  { %v4470_v35 = vadd.f32 %v4469_v6, %v4468_v5  ;;  %v4490_v38 = vrot.slane %v4489_v57, 1  ;;  %v4493_v22 = vrot.slane %v4492_v32, 4  ;;  %v9581_v46 = vsub.f32 %v9502_v47, %v4389_v48 }
 0x462   :  { %v4484_v60 = vadd.f32 %v4483_v19, %v4482_v30  ;;  %v4477_v44 = vadd.f32 %v4476_v16, %v4475_v25  ;;  %v4506_v28 = vadd.f32 %v4454_v4, %v4438_v37  ;;  %v4437_v50 = vmul.f32 %v9574_v34, %v9574_v34 }
 0x463   :  { %v4576_v42 = vmul.f32 0.0625, %v4470_v35  ;;  %v4491_v59 = vadd.f32 %v4490_v38, %v4489_v57  ;;  %v4494_v40 = vadd.f32 %v4493_v22, %v4492_v32  ;;  %v4453_v31 = vmul.f32 %v9581_v46, %v9581_v46  ;;  %v9599_v38 = vpop.permute.xlu0 %4658 }
 0x464   :  { %v4578_v13 = vmul.f32 0.0625, %v4484_v60  ;;  %v4577_v61 = vmul.f32 0.0625, %v4477_v44  ;;  %v4507_v58 = vrot.slane %v4506_v28, 4  ;;  %v4325_v49 = vrot.slane %v4324_v45, 1 }
 0x465   :  { %v4592_v24 = vadd.f32 1e-05, %v4576_v42  ;;  %v4579_v15 = vmul.f32 0.0625, %v4491_v59  ;;  %v4495_v47 = vrot.slane %v4494_v40, 2  ;;  %v4499_v55 = vadd.f32 %v4453_v31, %v4437_v50 }
 0x466   :  { %v4594_v20 = vadd.f32 1e-05, %v4578_v13  ;;  %v4593_v52 = vadd.f32 1e-05, %v4577_v61  ;;  %v4508_v63 = vadd.f32 %v4507_v58, %v4506_v28  ;;  %v4326_v56 = vadd.f32 %v4325_v49, %v4324_v45 }
 0x467   :  { %7956 = vrsqrt.f32 %v4592_v24  ;;  %v4595_v2 = vadd.f32 1e-05, %v4579_v15  ;;  %v4496_v33 = vadd.f32 %v4495_v47, %v4494_v40  ;;  %v4500_v7 = vrot.slane %v4499_v55, 4 }
 0x468   :  { %7958 = vrsqrt.f32 %v4594_v20  ;;  %v4509_v10 = vrot.slane %v4508_v63, 2  ;;  %v4391_v1 = vmul.f32 0.0625, %v4326_v56 }
 0x469   :  { %7960 = vrsqrt.f32 %v4593_v52  ;;  %v4497_v11 = vrot.slane %v4496_v33, 1  ;;  %v4501_v41 = vadd.f32 %v4500_v7, %v4499_v55 }
 0x46a   :  { %7962 = vrsqrt.f32 %v4595_v2  ;;  %v4510_v48 = vadd.f32 %v4509_v10, %v4508_v63  ;;  %v9588_v5 = vsub.f32 %v9477_v36, %v4391_v1  ;;  %v9591_v14 = vsub.f32 %v9509_v43, %v4391_v1  ;;  %v9597_v36 = vpop.permute.xlu1 %4663  ;;  %v9615_v63 = vpop.permute.xlu0 %4700 }
 0x46b   :  { %v4498_v29 = vadd.f32 %v4497_v11, %v4496_v33  ;;  %v4502_v45 = vrot.slane %v4501_v41, 2 }
 0x46c   :  { %v4511_v53 = vrot.slane %v4510_v48, 1  ;;  %v4439_v30 = vmul.f32 %v9588_v5, %v9588_v5  ;;  %v4455_v25 = vmul.f32 %v9591_v14, %v9591_v14 }
 0x46d   :  { %v4580_v6 = vmul.f32 0.0625, %v4498_v29  ;;  %v4503_v57 = vadd.f32 %v4502_v45, %v4501_v41 }
 0x46e   :  { %v4512_v32 = vadd.f32 %v4511_v53, %v4510_v48  ;;  %v4513_v19 = vadd.f32 %v4455_v25, %v4439_v30  ;;  %v9610_v55 = vpop.permute.xlu1 %4705 }
 0x46f   :  { %v4596_v16 = vadd.f32 1e-05, %v4580_v6  ;;  %v4504_v37 = vrot.slane %v4503_v57, 1 }
 0x470   :  { %v4582_v4 = vmul.f32 0.0625, %v4512_v32  ;;  %v4514_v43 = vrot.slane %v4513_v19, 4 }
 0x471   :  { %v7957_v35 = vpop.eup %7956  ;;  %7964 = vrsqrt.f32 %v4596_v16  ;;  %v4505_v22 = vadd.f32 %v4504_v37, %v4503_v57 }
 0x472   :  { %v7959_v60 = vpop.eup %7958  ;;  %v4624_v44 = vmul.f32 %v7957_v35, %v9518_v23  ;;  %v4640_v28 = vmul.f32 %v7957_v35, %v9521_v27  ;;  %v4598_v50 = vadd.f32 1e-05, %v4582_v4  ;;  %v4515_v42 = vadd.f32 %v4514_v43, %v4513_v19  ;;  %v9658_v4 = vld [vmem:[%s11164_s1 + $0x40] sm:$0xff] }
 0x473   :  { %v7961_v59 = vpop.eup %7960  ;;  %v4626_v40 = vmul.f32 %v7959_v60, %v9524_v12  ;;  %v4642_v31 = vmul.f32 %v7959_v60, %v9527_v8  ;;  %v4581_v13 = vmul.f32 0.0625, %v4505_v22 }
 0x474   :  { %v7963_v61 = vpop.eup %7962  ;;  %v4682_v58 = vmul.f32 %v9597_v36, %v4640_v28  ;;  %v4641_v49 = vmul.f32 %v7961_v59, %v9533_v18  ;;  %7966 = vrsqrt.f32 %v4598_v50  ;;  %v4516_v24 = vrot.slane %v4515_v42, 2 }
 0x475   :  { %v4684_v15 = vmul.f32 %v9597_v36, %v4642_v31  ;;  %v4643_v23 = vmul.f32 %v7963_v61, %v9543_v54  ;;  %v4597_v27 = vadd.f32 1e-05, %v4581_v13  ;;  %v4625_v47 = vmul.f32 %v7961_v59, %v9530_v51  ;;  %v9699_v59 = vld [vmem:[%s11164_s1 + $0x50] sm:$0xff] }
 0x476   :  { %v4517_v12 = vadd.f32 %v4516_v24, %v4515_v42  ;;  %v4683_v8 = vmul.f32 %v9597_v36, %v4641_v49  ;;  %v4627_v20 = vmul.f32 %v7963_v61, %v9540_v39  ;;  %v4666_v52 = vmul.f32 %v9599_v38, %v4624_v44  ;;  %v9715_v49 = vld [vmem:[%s11164_s1 + $0x58] sm:$0xff] }
 0x477   :  { %7968 = vrsqrt.f32 %v4597_v27  ;;  %v4667_v18 = vmul.f32 %v9599_v38, %v4625_v47  ;;  %v4685_v56 = vmul.f32 %v9597_v36, %v4643_v23  ;;  %v9620_v54 = vadd.f32 %v9610_v55, %v4682_v58 }
 0x478   :  { %v4518_v51 = vrot.slane %v4517_v12, 1  ;;  %v9623_v2 = vadd.f32 %v9610_v55, %v4683_v8  ;;  %v4669_v33 = vmul.f32 %v9599_v38, %v4627_v20  ;;  %v9627_v39 = vadd.f32 %v9615_v63, %v4666_v52 }
 0x479   :  { %v9630_v7 = vadd.f32 %v9615_v63, %v4667_v18  ;;  %v9633_v10 = vadd.f32 %v9610_v55, %v4685_v56  ;;  %v4668_v1 = vmul.f32 %v9599_v38, %v4626_v40  ;;  %v9637_v11 = vadd.f32 %v9610_v55, %v4684_v15 }
 0x47a   :  { %v4519_v41 = vadd.f32 %v4518_v51, %v4517_v12  ;;  %v9640_v48 = vadd.f32 %v9615_v63, %v4669_v33  ;;  %v7665_v53 = vpack.c.bf16 %v9620_v54, %v9627_v39 }
 0x47b   :  { %11321 = vst [vmem:[#allocation19_spill] sm:$0xff] %v9633_v10  ;;  %11322 = vst [vmem:[#allocation20_spill] sm:$0xff] %v9637_v11  ;;  %v7965_v29 = vpop.eup %7964  ;;  %v7663_v45 = vpack.c.bf16 %v9623_v2, %v9630_v7  ;;  %v9647_v30 = vadd.f32 %v9615_v63, %v4668_v1 }
 0x47c   :  { %11323 = vst [vmem:[#allocation21_spill] sm:$0xff] %v9640_v48  ;;  %v4628_v25 = vmul.f32 %v7965_v29, %v9558_v62  ;;  %v4644_v6 = vmul.f32 %v7965_v29, %v9561_v17  ;;  %v4583_v57 = vmul.f32 0.0625, %v4519_v41  ;;  %v7667_v32 = vpack.c.bf16 %v9633_v10, %v9640_v48 }
 0x47d   :  { %7664 = vmatprep.subr.bf16.mxu0 %v7663_v45  ;;  %v7669_v19 = vpack.c.bf16 %v9637_v11, %v9647_v30 }
 0x47e   :  { %v7967_v16 = vpop.eup %7966  ;;  %v4599_v37 = vadd.f32 1e-05, %v4583_v57  ;;  %7668 = vmatprep.subr.bf16.mxu1 %v7667_v32  ;;  %7666 = vmatpush1.bf16.msra.mxu0 %v7665_v53  ;;  %v4686_v35 = vmul.f32 %v9597_v36, %v4644_v6  ;;  %v4670_v22 = vmul.f32 %v9599_v38, %v4628_v25 }
 0x47f   :  { %v4630_v62 = vmul.f32 %v7967_v16, %v9568_v3  ;;  %v4646_v17 = vmul.f32 %v7967_v16, %v9571_v9  ;;  %7670 = vmatpush1.bf16.msra.mxu1 %v7669_v19  ;;  %v9673_v3 = vld [vmem:[%s11164_s1 + $0x48] sm:$0xff]  ;;  %v8036_v16 = vld [vmem:[%s11163_s0 + $0x40] sm:$0xff] }
 0x480   :  { %7970 = vrsqrt.f32 %v4599_v37  ;;  %v9685_v50 = vadd.f32 %v9610_v55, %v4686_v35  ;;  %v8038_v35 = vld [vmem:[%s11163_s0 + $0x50] sm:$0xff] }
 0x481   :  { %v7969_v43 = vpop.eup %7968  ;;  %7346 = vmatmul.mubr.msk.f32.vlgmr.msra.gmra.mrb[112].mxu0 %vm146_vm0, %v9658_v4  ;;  %v4688_v61 = vmul.f32 %v9597_v36, %v4646_v17  ;;  %v4672_v58 = vmul.f32 %v9599_v38, %v4630_v62  ;;  %v8037_v62 = vld [vmem:[%s11163_s0 + $0xc0] sm:$0xff] }
 0x482   :  { %v4645_v60 = vmul.f32 %v7969_v43, %v9581_v46  ;;  %7350 = vmatmul.mubr.msk.f32.vlgmr.msra.gmra.mrb[112].mxu1 %vm146_vm0, %v9658_v4  ;;  %4842 = vmatprep.mubr.f32.mxu0 %v11217_v26  ;;  %v4629_v9 = vmul.f32 %v7969_v43, %v9574_v34  ;;  %v9682_v46 = vadd.f32 %v9615_v63, %v4670_v22 }
 0x483   :  { %4931 = vmatprep.mubr.f32.mxu1 %v11217_v26  ;;  %11325 = vst [vmem:[#allocation23_spill] sm:$0xff] %v9685_v50  ;;  %v9726_v47 = vadd.f32 %v9615_v63, %v4672_v58  ;;  %v9729_v12 = vadd.f32 %v9610_v55, %v4688_v61 }
 0x484   :  { %v4671_v44 = vmul.f32 %v9599_v38, %v4629_v9  ;;  %v4687_v28 = vmul.f32 %v9597_v36, %v4645_v60  ;;  %11324 = vst [vmem:[#allocation22_spill] sm:$0xff] %v9682_v46  ;;  %v7673_v31 = vpack.c.bf16 %v9685_v50, %v9682_v46  ;;  %v8039_v60 = vld [vmem:[%s11163_s0 + $0x48] sm:$0xff] }
 0x485   :  { %7347 = vmatmul.mubr.msk.f32.gmra.mrb[114].mxu0 %vm146_vm0, %v9673_v3  ;;  %11328 = vst [vmem:[#allocation26_spill] sm:$0xff] %v9726_v47  ;;  %11329 = vst [vmem:[#allocation27_spill] sm:$0xff] %v9729_v12  ;;  %v7677_v20 = vpack.c.bf16 %v9729_v12, %v9726_v47 }
 0x486   :  { %7351 = vmatmul.mubr.msk.f32.gmra.mrb[114].mxu1 %vm146_vm0, %v9673_v3  ;;  %v9690_v34 = vadd.f32 %v9615_v63, %v4671_v44  ;;  %v9693_v42 = vadd.f32 %v9610_v55, %v4687_v28  ;;  %4848 = vmatprep.mubr.f32.mxu0 %v11217_v26  ;;  %v8040_v44 = vld [vmem:[%s11163_s0 + $0xd0] sm:$0xff] }
 0x487   :  { %4937 = vmatprep.mubr.f32.mxu1 %v11217_v26 }
 0x488   :  { %11326 = vst [vmem:[#allocation24_spill] sm:$0xff] %v9690_v34  ;;  %11327 = vst [vmem:[#allocation25_spill] sm:$0xff] %v9693_v42  ;;  %v7671_v40 = vpack.c.bf16 %v9693_v42, %v9690_v34 }
 0x489   :  { %7348 = vmatmul.mubr.msk.f32.gmra.mrb[116].mxu0 %vm146_vm0, %v9699_v59 }
 0x48a   :  { %v7971_v13 = vpop.eup %7970  ;;  %7672 = vmatprep.subr.bf16.mxu0 %v7671_v40  ;;  %7352 = vmatmul.mubr.msk.f32.gmra.mrb[116].mxu1 %vm146_vm0, %v9699_v59  ;;  %v8041_v40 = vld [vmem:[%s11163_s0 + $0xc8] sm:$0xff] }
 0x48b   :  { %v4647_v24 = vmul.f32 %v7971_v13, %v9591_v14  ;;  %v4631_v15 = vmul.f32 %v7971_v13, %v9588_v5  ;;  %7674 = vmatpush1.bf16.msra.mxu0 %v7673_v31  ;;  %4854 = vmatprep.mubr.f32.mxu0 %v11217_v26  ;;  %v8042_v13 = vld [vmem:[%s11163_s0 + $0x58] sm:$0xff] }
 0x48c   :  { %4943 = vmatprep.mubr.f32.mxu1 %v11217_v26 }
 0x48d   :  { %v4673_v23 = vmul.f32 %v9599_v38, %v4631_v15  ;;  %v4689_v27 = vmul.f32 %v9597_v36, %v4647_v24  ;;  %7349 = vmatmul.mubr.msk.f32.gmra.mrb[118].mxu0 %vm146_vm0, %v9715_v49  ;;  %v8043_v24 = vld [vmem:[%s11163_s0 + $0xd8] sm:$0xff] }
 0x48e   :  { %7353 = vmatmul.mubr.msk.f32.gmra.mrb[118].mxu1 %vm146_vm0, %v9715_v49  ;;  %5014 = vmatprep.mubr.f32.mxu0 %v11217_v26 }
 0x48f   :  { %v9735_v5 = vadd.f32 %v9615_v63, %v4673_v23  ;;  %v9738_v14 = vadd.f32 %v9610_v55, %v4689_v27  ;;  %5103 = vmatprep.mubr.f32.mxu1 %v11217_v26 }
 0x491   :  { %11330 = vst [vmem:[#allocation28_spill] sm:$0xff] %v9735_v5  ;;  %11331 = vst [vmem:[#allocation29_spill] sm:$0xff] %v9738_v14  ;;  %v7675_v8 = vpack.c.bf16 %v9738_v14, %v9735_v5  ;;  %7354 = vmatmul.mubr.msk.f32.vlgmr.msra.gmra.mrb[120].mxu0 %vm146_vm0, %v9658_v4 }
 0x492   :  { %5020 = vmatprep.mubr.f32.mxu0 %v11217_v26 }
 0x493   :  { %7676 = vmatprep.subr.bf16.mxu1 %v7675_v8 }
 0x494   :  { %7678 = vmatpush1.bf16.msra.mxu1 %v7677_v20 }
 0x495   :  { %7355 = vmatmul.mubr.msk.f32.gmra.mrb[122].mxu0 %vm146_vm0, %v9673_v3 }
 0x496   :  { %5026 = vmatprep.mubr.f32.mxu0 %v11217_v26 }
 0x497   :  { %7358 = vmatmul.mubr.msk.f32.vlgmr.msra.gmra.mrb[120].mxu1 %vm146_vm0, %v9658_v4 }
 0x498   :  { %5109 = vmatprep.mubr.f32.mxu1 %v11217_v26 }
 0x499   :  { %7356 = vmatmul.mubr.msk.f32.gmra.mrb[124].mxu0 %vm146_vm0, %v9699_v59 }
 0x49a   :  { %5032 = vmatprep.mubr.f32.mxu0 %v11217_v26 }
 0x49b   :  { %7359 = vmatmul.mubr.msk.f32.gmra.mrb[122].mxu1 %vm146_vm0, %v9673_v3 }
 0x49c   :  { %5115 = vmatprep.mubr.f32.mxu1 %v11217_v26 }
 0x49d   :  { %7357 = vmatmul.mubr.msk.f32.gmra.mrb[126].mxu0 %vm146_vm0, %v9715_v49 }
 0x49e   :  { %5192 = vmatprep.mubr.f32.mxu0 %v11217_v26 }
 0x49f   :  { %7360 = vmatmul.mubr.msk.f32.gmra.mrb[124].mxu1 %vm146_vm0, %v9699_v59 }
 0x4a0   :  { %5121 = vmatprep.mubr.f32.mxu1 %v11217_v26 }
 0x4a3   :  { %7361 = vmatmul.mubr.msk.f32.gmra.mrb[126].mxu1 %vm146_vm0, %v9715_v49 }
 0x4a4   :  { %5281 = vmatprep.mubr.f32.mxu1 %v11217_v26 }
 0x50b   :  { %v3997_v52 = vpop.f32.mrb[104].mxu0 }
 0x50c   :  { %v4074_v18 = vpop.f32.mrb[104].mxu1  ;;  %v3999_v56 = vpop.f32.mrb[105].mxu0  ;;  %v3998_v33 = vadd.f32 %v3997_v52, %v9377_v21 }
 0x50d   :  { %v4076_v51 = vpop.f32.mrb[105].mxu1  ;;  %v4075_v1 = vadd.f32 %v4074_v18, %v9377_v21  ;;  %v4000_v41 = vadd.f32 %v3999_v56, %v9377_v21 }
 0x50e   :  { %v4077_v45 = vadd.f32 %v4076_v51, %v9377_v21  ;;  %v9779_v37 = vadd.f32 %v8036_v16, %v3998_v33 }
 0x50f   :  { %v4003_v29 = vpop.f32.mrb[106].mxu0  ;;  %v9790_v22 = vadd.f32 %v8038_v35, %v4075_v1  ;;  %v9795_v9 = vadd.f32 %v8039_v60, %v4000_v41 }
 0x510   :  { %v4004_v53 = vadd.f32 %v4003_v29, %v9387_v0  ;;  %v4080_v25 = vpop.f32.mrb[106].mxu1  ;;  %v4005_v6 = vpop.f32.mrb[107].mxu0  ;;  %v9810_v61 = vadd.f32 %v8042_v13, %v4077_v45 }
 0x511   :  { %v4081_v57 = vadd.f32 %v4080_v25, %v9387_v0  ;;  %v4006_v32 = vadd.f32 %v4005_v6, %v9387_v0  ;;  %v4082_v19 = vpop.f32.mrb[107].mxu1  ;;  %v8044_v25 = vld [vmem:[%s11163_s0 + $0x60] sm:$0xff] }
 0x512   :  { %v9784_v17 = vadd.f32 %v8037_v62, %v4004_v53  ;;  %v4083_v43 = vadd.f32 %v4082_v19, %v9387_v0 }
 0x513   :  { %v9800_v28 = vadd.f32 %v8040_v44, %v4081_v57  ;;  %v9805_v31 = vadd.f32 %v8041_v40, %v4006_v32  ;;  %v8045_v57 = vld [vmem:[%s11163_s0 + $0x70] sm:$0xff] }
 0x514   :  { %v4327_v58 = vadd.f32 %v9784_v17, %v9779_v37  ;;  %v9817_v15 = vadd.f32 %v8043_v24, %v4083_v43  ;;  %v4151_v23 = vpop.f32.mrb[108].mxu0  ;;  %v4228_v27 = vpop.f32.mrb[108].mxu1  ;;  %v8047_v43 = vld [vmem:[%s11163_s0 + $0x78] sm:$0xff] }
 0x515   :  { %v4341_v8 = vadd.f32 %v9800_v28, %v9790_v22  ;;  %v4334_v20 = vadd.f32 %v9805_v31, %v9795_v9  ;;  %v4152_v52 = vadd.f32 %v4151_v23, %v9377_v21  ;;  %v4229_v18 = vadd.f32 %v4228_v27, %v9377_v21  ;;  %v4153_v56 = vpop.f32.mrb[109].mxu0  ;;  %v4230_v51 = vpop.f32.mrb[109].mxu1 }
 0x516   :  { %v4328_v33 = vrot.slane %v4327_v58, 4  ;;  %v4348_v1 = vadd.f32 %v9817_v15, %v9810_v61  ;;  %v4154_v41 = vadd.f32 %v4153_v56, %v9377_v21  ;;  %v4231_v29 = vadd.f32 %v4230_v51, %v9377_v21  ;;  %v8046_v21 = vld [vmem:[%s11163_s0 + $0x68] sm:$0xff] }
 0x517   :  { %v4342_v45 = vrot.slane %v4341_v8, 4  ;;  %v4335_v53 = vrot.slane %v4334_v20, 4  ;;  %v9832_v6 = vadd.f32 %v8044_v25, %v4152_v52  ;;  %v9837_v32 = vadd.f32 %v8045_v57, %v4229_v18  ;;  %v8051_v57 = vld [vmem:[%s11163_s0 + $0xf8] sm:$0xff] }
 0x518   :  { %v4329_v19 = vadd.f32 %v4328_v33, %v4327_v58  ;;  %v4349_v16 = vrot.slane %v4348_v1, 4  ;;  %v9842_v62 = vadd.f32 %v8046_v21, %v4154_v41  ;;  %v9847_v35 = vadd.f32 %v8047_v43, %v4231_v29  ;;  %v4157_v60 = vpop.f32.mrb[110].mxu0  ;;  %v4234_v44 = vpop.f32.mrb[110].mxu1  ;;  %v8048_v29 = vld [vmem:[%s11163_s0 + $0xe0] sm:$0xff] }
 0x519   :  { %v4343_v40 = vadd.f32 %v4342_v45, %v4341_v8  ;;  %v4336_v13 = vadd.f32 %v4335_v53, %v4334_v20  ;;  %v4158_v24 = vadd.f32 %v4157_v60, %v9387_v0  ;;  %v4235_v58 = vadd.f32 %v4234_v44, %v9387_v0  ;;  %v4159_v23 = vpop.f32.mrb[111].mxu0  ;;  %v4236_v27 = vpop.f32.mrb[111].mxu1  ;;  %v8049_v20 = vld [vmem:[%s11163_s0 + $0xf0] sm:$0xff] }
 0x51a   :  { %v4330_v52 = vrot.slane %v4329_v19, 2  ;;  %v4350_v18 = vadd.f32 %v4349_v16, %v4348_v1  ;;  %v4160_v56 = vadd.f32 %v4159_v23, %v9387_v0  ;;  %v4237_v51 = vadd.f32 %v4236_v27, %v9387_v0  ;;  %v8050_v0 = vld [vmem:[%s11163_s0 + $0xe8] sm:$0xff] }
 0x51b   :  { %v4344_v33 = vrot.slane %v4343_v40, 2  ;;  %v4337_v41 = vrot.slane %v4336_v13, 2  ;;  %v9856_v8 = vadd.f32 %v8048_v29, %v4158_v24  ;;  %v9861_v45 = vadd.f32 %v8049_v20, %v4235_v58 }
 0x51c   :  { %v4331_v53 = vadd.f32 %v4330_v52, %v4329_v19  ;;  %v4351_v1 = vrot.slane %v4350_v18, 2  ;;  %v9866_v25 = vadd.f32 %v8050_v0, %v4160_v56  ;;  %v9871_v16 = vadd.f32 %v8051_v57, %v4237_v51 }
 0x51d   :  { %v4345_v21 = vadd.f32 %v4344_v33, %v4343_v40  ;;  %v4338_v43 = vadd.f32 %v4337_v41, %v4336_v13  ;;  %v4355_v60 = vadd.f32 %v9856_v8, %v9832_v6  ;;  %v4369_v19 = vadd.f32 %v9861_v45, %v9837_v32 }
 0x51e   :  { %v4332_v44 = vrot.slane %v4331_v53, 1  ;;  %v4352_v24 = vadd.f32 %v4351_v1, %v4350_v18  ;;  %v4362_v58 = vadd.f32 %v9866_v25, %v9842_v62  ;;  %v4376_v23 = vadd.f32 %v9871_v16, %v9847_v35 }
 0x51f   :  { %v4346_v27 = vrot.slane %v4345_v21, 1  ;;  %v4339_v52 = vrot.slane %v4338_v43, 1  ;;  %v4356_v56 = vrot.slane %v4355_v60, 4  ;;  %v4370_v51 = vrot.slane %v4369_v19, 4 }
 0x520   :  { %v4333_v40 = vadd.f32 %v4332_v44, %v4331_v53  ;;  %v4353_v13 = vrot.slane %v4352_v24, 1  ;;  %v4363_v33 = vrot.slane %v4362_v58, 4  ;;  %v4377_v41 = vrot.slane %v4376_v23, 4 }
 0x521   :  { %v4347_v29 = vadd.f32 %v4346_v27, %v4345_v21  ;;  %v4340_v20 = vadd.f32 %v4339_v52, %v4338_v43  ;;  %v4357_v0 = vadd.f32 %v4356_v56, %v4355_v60  ;;  %v4371_v57 = vadd.f32 %v4370_v51, %v4369_v19 }
 0x522   :  { %v4392_v14 = vmul.f32 0.0625, %v4333_v40  ;;  %v4354_v18 = vadd.f32 %v4353_v13, %v4352_v24  ;;  %v4364_v1 = vadd.f32 %v4363_v33, %v4362_v58  ;;  %v4378_v12 = vadd.f32 %v4377_v41, %v4376_v23 }
 0x523   :  { %v4394_v5 = vmul.f32 0.0625, %v4347_v29  ;;  %v4393_v47 = vmul.f32 0.0625, %v4340_v20  ;;  %v4358_v42 = vrot.slane %v4357_v0, 2  ;;  %v4372_v50 = vrot.slane %v4371_v57, 2 }
 0x524   :  { %v9882_v34 = vsub.f32 %v9779_v37, %v4392_v14  ;;  %v9885_v53 = vsub.f32 %v9784_v17, %v4392_v14  ;;  %v4395_v44 = vmul.f32 0.0625, %v4354_v18  ;;  %v4365_v46 = vrot.slane %v4364_v1, 2 }
 0x525   :  { %v9888_v21 = vsub.f32 %v9790_v22, %v4394_v5  ;;  %v9891_v43 = vsub.f32 %v9800_v28, %v4394_v5  ;;  %v9894_v60 = vsub.f32 %v9795_v9, %v4393_v47  ;;  %v9897_v19 = vsub.f32 %v9805_v31, %v4393_v47 }
 0x526   :  { %v4440_v37 = vmul.f32 %v9882_v34, %v9882_v34  ;;  %v4456_v14 = vmul.f32 %v9885_v53, %v9885_v53  ;;  %v9904_v17 = vsub.f32 %v9810_v61, %v4395_v44  ;;  %v9907_v22 = vsub.f32 %v9817_v15, %v4395_v44 }
 0x527   :  { %v4442_v5 = vmul.f32 %v9888_v21, %v9888_v21  ;;  %v4458_v9 = vmul.f32 %v9891_v43, %v9891_v43  ;;  %v4441_v47 = vmul.f32 %v9894_v60, %v9894_v60  ;;  %v4457_v28 = vmul.f32 %v9897_v19, %v9897_v19 }
 0x528   :  { %v4520_v31 = vadd.f32 %v4456_v14, %v4440_v37  ;;  %v4443_v61 = vmul.f32 %v9904_v17, %v9904_v17  ;;  %v4459_v15 = vmul.f32 %v9907_v22, %v9907_v22  ;;  %v4359_v24 = vadd.f32 %v4358_v42, %v4357_v0 }
 0x529   :  { %v4534_v58 = vadd.f32 %v4458_v9, %v4442_v5  ;;  %v4527_v23 = vadd.f32 %v4457_v28, %v4441_v47  ;;  %v4373_v27 = vadd.f32 %v4372_v50, %v4371_v57  ;;  %v4366_v52 = vadd.f32 %v4365_v46, %v4364_v1 }
 0x52a   :  { %v4521_v56 = vrot.slane %v4520_v31, 4  ;;  %v4541_v51 = vadd.f32 %v4459_v15, %v4443_v61  ;;  %v4360_v40 = vrot.slane %v4359_v24, 1  ;;  %v4379_v13 = vrot.slane %v4378_v12, 2 }
 0x52b   :  { %v4535_v33 = vrot.slane %v4534_v58, 4  ;;  %v4528_v41 = vrot.slane %v4527_v23, 4  ;;  %v4374_v29 = vrot.slane %v4373_v27, 1  ;;  %v4367_v20 = vrot.slane %v4366_v52, 1 }
 0x52c   :  { %v4522_v18 = vadd.f32 %v4521_v56, %v4520_v31  ;;  %v4542_v44 = vrot.slane %v4541_v51, 4  ;;  %v4361_v37 = vadd.f32 %v4360_v40, %v4359_v24  ;;  %v4380_v14 = vadd.f32 %v4379_v13, %v4378_v12 }
 0x52d   :  { %v4536_v10 = vadd.f32 %v4535_v33, %v4534_v58  ;;  %v4529_v11 = vadd.f32 %v4528_v41, %v4527_v23  ;;  %v4375_v48 = vadd.f32 %v4374_v29, %v4373_v27  ;;  %v4368_v42 = vadd.f32 %v4367_v20, %v4366_v52 }
 0x52e   :  { %v4523_v0 = vrot.slane %v4522_v18, 2  ;;  %v4543_v5 = vadd.f32 %v4542_v44, %v4541_v51  ;;  %v4396_v50 = vmul.f32 0.0625, %v4361_v37  ;;  %v4381_v46 = vrot.slane %v4380_v14, 1 }
 0x52f   :  { %v4537_v57 = vrot.slane %v4536_v10, 2  ;;  %v4530_v1 = vrot.slane %v4529_v11, 2  ;;  %v4398_v9 = vmul.f32 0.0625, %v4375_v48  ;;  %v4397_v47 = vmul.f32 0.0625, %v4368_v42 }
 0x530   :  { %v4524_v28 = vadd.f32 %v4523_v0, %v4522_v18  ;;  %v4544_v61 = vrot.slane %v4543_v5, 2  ;;  %v9922_v15 = vsub.f32 %v9832_v6, %v4396_v50  ;;  %v9925_v31 = vsub.f32 %v9856_v8, %v4396_v50 }
 0x531   :  { %v4538_v12 = vadd.f32 %v4537_v57, %v4536_v10  ;;  %v4531_v24 = vadd.f32 %v4530_v1, %v4529_v11  ;;  %v9928_v58 = vsub.f32 %v9837_v32, %v4398_v9  ;;  %v9931_v23 = vsub.f32 %v9861_v45, %v4398_v9 }
 0x532   :  { %v4525_v27 = vrot.slane %v4524_v28, 1  ;;  %v4545_v52 = vadd.f32 %v4544_v61, %v4543_v5  ;;  %v4444_v48 = vmul.f32 %v9922_v15, %v9922_v15  ;;  %v4460_v6 = vmul.f32 %v9925_v31, %v9925_v31 }
 0x533   :  { %v4539_v56 = vrot.slane %v4538_v12, 1  ;;  %v4532_v51 = vrot.slane %v4531_v24, 1  ;;  %v4446_v10 = vmul.f32 %v9928_v58, %v9928_v58  ;;  %v4462_v11 = vmul.f32 %v9931_v23, %v9931_v23 }
 0x534   :  { %v4526_v32 = vadd.f32 %v4525_v27, %v4524_v28  ;;  %v4546_v8 = vrot.slane %v4545_v52, 1  ;;  %v4548_v45 = vadd.f32 %v4460_v6, %v4444_v48  ;;  %v9942_v40 = vsub.f32 %v9842_v62, %v4397_v47 }
 0x535   :  { %v4540_v13 = vadd.f32 %v4539_v56, %v4538_v12  ;;  %v4533_v33 = vadd.f32 %v4532_v51, %v4531_v24  ;;  %v4562_v41 = vadd.f32 %v4462_v11, %v4446_v10  ;;  %v9945_v29 = vsub.f32 %v9866_v25, %v4397_v47 }
 0x536   :  { %v4584_v20 = vmul.f32 0.0625, %v4526_v32  ;;  %v4547_v18 = vadd.f32 %v4546_v8, %v4545_v52  ;;  %v4549_v44 = vrot.slane %v4548_v45, 4  ;;  %v4445_v37 = vmul.f32 %v9942_v40, %v9942_v40 }
 0x537   :  { %v4586_v42 = vmul.f32 0.0625, %v4540_v13  ;;  %v4585_v0 = vmul.f32 0.0625, %v4533_v33  ;;  %v4563_v5 = vrot.slane %v4562_v41, 4  ;;  %v4461_v50 = vmul.f32 %v9945_v29, %v9945_v29 }
 0x538   :  { %v4600_v62 = vadd.f32 1e-05, %v4584_v20  ;;  %v4587_v57 = vmul.f32 0.0625, %v4547_v18  ;;  %v4550_v1 = vadd.f32 %v4549_v44, %v4548_v45  ;;  %v4382_v9 = vadd.f32 %v4381_v46, %v4380_v14 }
 0x539   :  { %v4602_v28 = vadd.f32 1e-05, %v4586_v42  ;;  %v4601_v61 = vadd.f32 1e-05, %v4585_v0  ;;  %v4564_v25 = vadd.f32 %v4563_v5, %v4562_v41  ;;  %v4555_v47 = vadd.f32 %v4461_v50, %v4445_v37 }
 0x53a   :  { %7972 = vrsqrt.f32 %v4600_v62  ;;  %v4603_v12 = vadd.f32 1e-05, %v4587_v57  ;;  %v4551_v24 = vrot.slane %v4550_v1, 2  ;;  %v4399_v27 = vmul.f32 0.0625, %v4382_v9 }
 0x53b   :  { %7974 = vrsqrt.f32 %v4602_v28  ;;  %v4565_v52 = vrot.slane %v4564_v25, 2  ;;  %v4556_v48 = vrot.slane %v4555_v47, 4 }
 0x53c   :  { %7976 = vrsqrt.f32 %v4601_v61  ;;  %v4552_v6 = vadd.f32 %v4551_v24, %v4550_v1  ;;  %v9952_v56 = vsub.f32 %v9847_v35, %v4399_v27  ;;  %v9955_v51 = vsub.f32 %v9871_v16, %v4399_v27 }
 0x53d   :  { %7978 = vrsqrt.f32 %v4603_v12  ;;  %v4566_v14 = vadd.f32 %v4565_v52, %v4564_v25  ;;  %v4557_v46 = vadd.f32 %v4556_v48, %v4555_v47 }
 0x53e   :  { %v4553_v10 = vrot.slane %v4552_v6, 1  ;;  %v4447_v11 = vmul.f32 %v9952_v56, %v9952_v56  ;;  %v4463_v32 = vmul.f32 %v9955_v51, %v9955_v51 }
 0x53f   :  { %v4567_v8 = vrot.slane %v4566_v14, 1  ;;  %v4558_v45 = vrot.slane %v4557_v46, 2 }
 0x540   :  { %v4554_v13 = vadd.f32 %v4553_v10, %v4552_v6  ;;  %v4569_v33 = vadd.f32 %v4463_v32, %v4447_v11 }
 0x541   :  { %v4568_v41 = vadd.f32 %v4567_v8, %v4566_v14  ;;  %v4559_v35 = vadd.f32 %v4558_v45, %v4557_v46 }
 0x542   :  { %v4588_v20 = vmul.f32 0.0625, %v4554_v13  ;;  %v4570_v18 = vrot.slane %v4569_v33, 4 }
 0x543   :  { %v4590_v16 = vmul.f32 0.0625, %v4568_v41  ;;  %v4560_v44 = vrot.slane %v4559_v35, 1 }
 0x544   :  { %v7973_v37 = vpop.eup %7972  ;;  %v4604_v42 = vadd.f32 1e-05, %v4588_v20  ;;  %v4571_v0 = vadd.f32 %v4570_v18, %v4569_v33 }
 0x545   :  { %v7975_v5 = vpop.eup %7974  ;;  %v4632_v50 = vmul.f32 %v7973_v37, %v9882_v34  ;;  %v4648_v62 = vmul.f32 %v7973_v37, %v9885_v53  ;;  %v4606_v57 = vadd.f32 1e-05, %v4590_v16  ;;  %v4561_v1 = vadd.f32 %v4560_v44, %v4559_v35 }
 0x546   :  { %v7977_v9 = vpop.eup %7976  ;;  %v4634_v28 = vmul.f32 %v7975_v5, %v9888_v21  ;;  %v4650_v61 = vmul.f32 %v7975_v5, %v9891_v43  ;;  %7980 = vrsqrt.f32 %v4604_v42  ;;  %v4572_v25 = vrot.slane %v4571_v0, 2 }
 0x547   :  { %v7979_v47 = vpop.eup %7978  ;;  %v4690_v12 = vmul.f32 %v9597_v36, %v4648_v62  ;;  %v4649_v24 = vmul.f32 %v7977_v9, %v9897_v19  ;;  %7982 = vrsqrt.f32 %v4606_v57  ;;  %v4589_v27 = vmul.f32 0.0625, %v4561_v1 }
 0x548   :  { %v4692_v34 = vmul.f32 %v9597_v36, %v4650_v61  ;;  %v4651_v53 = vmul.f32 %v7979_v47, %v9907_v22  ;;  %v4573_v52 = vadd.f32 %v4572_v25, %v4571_v0  ;;  %v4633_v48 = vmul.f32 %v7977_v9, %v9894_v60  ;;  %v10015_v61 = vpop.permute.xlu0 %4742 }
 0x549   :  { %v4605_v6 = vadd.f32 1e-05, %v4589_v27  ;;  %v4691_v21 = vmul.f32 %v9597_v36, %v4649_v24  ;;  %v4635_v43 = vmul.f32 %v7979_v47, %v9904_v17  ;;  %v4674_v14 = vmul.f32 %v9599_v38, %v4632_v50 }
 0x54a   :  { %v4574_v46 = vrot.slane %v4573_v52, 1  ;;  %v4675_v10 = vmul.f32 %v9599_v38, %v4633_v48  ;;  %v4693_v19 = vmul.f32 %v9597_v36, %v4651_v53  ;;  %v9976_v11 = vadd.f32 %v9610_v55, %v4690_v12  ;;  %v10034_v48 = vpop.permute.xlu1 %4747 }
 0x54b   :  { %7984 = vrsqrt.f32 %v4605_v6  ;;  %v9979_v22 = vadd.f32 %v9610_v55, %v4691_v21  ;;  %v4677_v60 = vmul.f32 %v9599_v38, %v4635_v43  ;;  %v9983_v32 = vadd.f32 %v9615_v63, %v4674_v14 }
 0x54c   :  { %v4575_v17 = vadd.f32 %v4574_v46, %v4573_v52  ;;  %v9986_v8 = vadd.f32 %v9615_v63, %v4675_v10  ;;  %v9989_v45 = vadd.f32 %v9610_v55, %v4693_v19  ;;  %v4676_v13 = vmul.f32 %v9599_v38, %v4634_v28 }
 0x54d   :  { %v9993_v33 = vadd.f32 %v9615_v63, %v4677_v60  ;;  %v9996_v41 = vadd.f32 %v9610_v55, %v4692_v34  ;;  %v7681_v44 = vpack.c.bf16 %v9976_v11, %v9983_v32 }
 0x54e   :  { %v4591_v35 = vmul.f32 0.0625, %v4575_v17  ;;  %v7679_v20 = vpack.c.bf16 %v9979_v22, %v9986_v8  ;;  %v10001_v18 = vadd.f32 %v9615_v63, %v4676_v13 }
 0x54f   :  { %v7683_v16 = vpack.c.bf16 %v9989_v45, %v9993_v33 }
 0x550   :  { %v7981_v37 = vpop.eup %7980  ;;  %v4607_v42 = vadd.f32 1e-05, %v4591_v35  ;;  %7680 = vmatprep.subr.bf16.mxu0 %v7679_v20  ;;  %v7685_v0 = vpack.c.bf16 %v9996_v41, %v10001_v18 }
 0x551   :  { %v7983_v5 = vpop.eup %7982  ;;  %v4636_v50 = vmul.f32 %v7981_v37, %v9922_v15  ;;  %v4652_v62 = vmul.f32 %v7981_v37, %v9925_v31  ;;  %7684 = vmatprep.subr.bf16.mxu1 %v7683_v16  ;;  %7682 = vmatpush1.bf16.msra.mxu0 %v7681_v44 }
 0x552   :  { %v4638_v57 = vmul.f32 %v7983_v5, %v9928_v58  ;;  %v4654_v1 = vmul.f32 %v7983_v5, %v9931_v23  ;;  %7986 = vrsqrt.f32 %v4607_v42  ;;  %7686 = vmatpush1.bf16.msra.mxu1 %v7685_v0 }
 0x553   :  { %v4694_v9 = vmul.f32 %v9597_v36, %v4652_v62  ;;  %v4678_v28 = vmul.f32 %v9599_v38, %v4636_v50 }
 0x554   :  { %v4838_v25 = vpop.f32.mrb[112].mxu0  ;;  %7362 = vmatmul.mubr.msk.f32.vlgmr.msra.gmra.mrb[128].mxu0 %vm146_vm0, %v9658_v4  ;;  %v4696_v6 = vmul.f32 %v9597_v36, %v4654_v1  ;;  %v4680_v17 = vmul.f32 %v9599_v38, %v4638_v57 }
 0x555   :  { %v7985_v15 = vpop.eup %7984  ;;  %v4839_v31 = vadd.f32 %v4838_v25, %v10015_v61  ;;  %v4927_v47 = vpop.f32.mrb[112].mxu1  ;;  %7366 = vmatmul.mubr.msk.f32.vlgmr.msra.gmra.mrb[128].mxu1 %vm146_vm0, %v9658_v4  ;;  %5198 = vmatprep.mubr.f32.mxu0 %v11217_v26  ;;  %v10024_v23 = vadd.f32 %v9615_v63, %v4678_v28  ;;  %v10027_v12 = vadd.f32 %v9610_v55, %v4694_v9 }
 0x556   :  { %v4840_v58 = vpop.f32.mrb[113].mxu0  ;;  %v4653_v24 = vmul.f32 %v7985_v15, %v9945_v29  ;;  %v4929_v27 = vpop.f32.mrb[113].mxu1  ;;  %5287 = vmatprep.mubr.f32.mxu1 %v11217_v26  ;;  %v4637_v34 = vmul.f32 %v7985_v15, %v9942_v40  ;;  %v4928_v53 = vadd.f32 %v4927_v47, %v10015_v61 }
 0x557   :  { %v4841_v52 = vadd.f32 %v4840_v58, %v10015_v61  ;;  %v4930_v21 = vadd.f32 %v4929_v27, %v10015_v61  ;;  %v5484_v46 = vmax.f32 %v4839_v31, 0.0  ;;  %v7689_v60 = vpack.c.bf16 %v10027_v12, %v10024_v23  ;;  %v10068_v27 = vpop.permute.xlu0 %4752 }
 0x558   :  { %v4844_v43 = vpop.f32.mrb[114].mxu0  ;;  %7363 = vmatmul.mubr.msk.f32.gmra.mrb[130].mxu0 %vm146_vm0, %v9673_v3  ;;  %v4679_v29 = vmul.f32 %v9599_v38, %v4637_v34  ;;  %v4695_v14 = vmul.f32 %v9597_v36, %v4653_v24  ;;  %v5486_v37 = vmax.f32 %v4928_v53, 0.0 }
 0x559   :  { %v4845_v40 = vadd.f32 %v4844_v43, %v10034_v48  ;;  %v4933_v10 = vpop.f32.mrb[114].mxu1  ;;  %7367 = vmatmul.mubr.msk.f32.gmra.mrb[130].mxu1 %vm146_vm0, %v9673_v3  ;;  %v4846_v19 = vpop.f32.mrb[115].mxu0  ;;  %5204 = vmatprep.mubr.f32.mxu0 %v11217_v26  ;;  %v5485_v42 = vmax.f32 %v4841_v52, 0.0  ;;  %v5487_v62 = vmax.f32 %v4930_v21, 0.0  ;;  %v10071_v52 = vadd.f32 %v9615_v63, %v4680_v17 }
 0x55a   :  { %v4934_v13 = vadd.f32 %v4933_v10, %v10034_v48  ;;  %v10051_v35 = vadd.f32 %v9615_v63, %v4679_v29  ;;  %v10054_v20 = vadd.f32 %v9610_v55, %v4695_v14  ;;  %v4847_v16 = vadd.f32 %v4846_v19, %v10034_v48  ;;  %v4935_v44 = vpop.f32.mrb[115].mxu1  ;;  %5293 = vmatprep.mubr.f32.mxu1 %v11217_v26 }
 0x55b   :  { %v5500_v0 = vmax.f32 %v4845_v40, 0.0  ;;  %v4936_v5 = vadd.f32 %v4935_v44, %v10034_v48 }
 0x55c   :  { %v7987_v50 = vpop.eup %7986  ;;  %v5502_v57 = vmax.f32 %v4934_v13, 0.0  ;;  %v7687_v1 = vpack.c.bf16 %v10054_v20, %v10051_v35  ;;  %v5501_v9 = vmax.f32 %v4847_v16, 0.0  ;;  %v4850_v28 = vpop.f32.mrb[116].mxu0  ;;  %7364 = vmatmul.mubr.msk.f32.gmra.mrb[132].mxu0 %vm146_vm0, %v9699_v59 }
 0x55d   :  { %v4655_v25 = vmul.f32 %v7987_v50, %v9955_v51  ;;  %v7697_v15 = vpack.c.bf16 %v5500_v0, %v5484_v46  ;;  %v4639_v31 = vmul.f32 %v7987_v50, %v9952_v56  ;;  %v5503_v47 = vmax.f32 %v4936_v5, 0.0  ;;  %v4939_v58 = vpop.f32.mrb[116].mxu1  ;;  %7368 = vmatmul.mubr.msk.f32.gmra.mrb[132].mxu1 %vm146_vm0, %v9699_v59  ;;  %v4852_v24 = vpop.f32.mrb[117].mxu0  ;;  %5210 = vmatprep.mubr.f32.mxu0 %v11217_v26 }
 0x55e   :  { %v7705_v34 = vpack.c.bf16 %v5502_v57, %v5486_v37  ;;  %7688 = vmatprep.subr.bf16.mxu0 %v7687_v1  ;;  %v7695_v53 = vpack.c.bf16 %v5501_v9, %v5485_v42  ;;  %v10074_v51 = vadd.f32 %v9610_v55, %v4696_v6  ;;  %v4941_v56 = vpop.f32.mrb[117].mxu1  ;;  %v4851_v14 = vadd.f32 %v4850_v28, %v10068_v27  ;;  %v10079_v46 = vpop.permute.xlu1 %4757 }
 0x55f   :  { %v4681_v21 = vmul.f32 %v9599_v38, %v4639_v31  ;;  %v4697_v43 = vmul.f32 %v9597_v36, %v4655_v25  ;;  %v7703_v29 = vpack.c.bf16 %v5503_v47, %v5487_v62  ;;  %7690 = vmatpush1.bf16.msra.mxu0 %v7689_v60  ;;  %v4940_v40 = vadd.f32 %v4939_v58, %v10068_v27 }
 0x560   :  { %11332 = vst [vmem:[#allocation30_spill] sm:$0xff] %v10074_v51  ;;  %v4853_v10 = vadd.f32 %v4852_v24, %v10068_v27  ;;  %v4942_v19 = vadd.f32 %v4941_v56, %v10068_v27  ;;  %5299 = vmatprep.mubr.f32.mxu1 %v11217_v26  ;;  %v4856_v6 = vpop.f32.mrb[118].mxu0  ;;  %7365 = vmatmul.mubr.msk.f32.gmra.mrb[134].mxu0 %vm146_vm0, %v9715_v49  ;;  %v5516_v42 = vmax.f32 %v4851_v14, 0.0 }
 0x561   :  { %v10088_v36 = vadd.f32 %v9615_v63, %v4681_v21  ;;  %v10091_v38 = vadd.f32 %v9610_v55, %v4697_v43  ;;  %v4857_v60 = vadd.f32 %v4856_v6, %v10079_v46  ;;  %v4945_v17 = vpop.f32.mrb[118].mxu1  ;;  %7369 = vmatmul.mubr.msk.f32.gmra.mrb[134].mxu1 %vm146_vm0, %v9715_v49  ;;  %7696 = vmatprep.subr.bf16.mxu0 %v7695_v53  ;;  %v4858_v13 = vpop.f32.mrb[119].mxu0  ;;  %v5518_v50 = vmax.f32 %v4940_v40, 0.0 }
 0x562   :  { %v7693_v16 = vpack.c.bf16 %v10074_v51, %v10071_v52  ;;  %v4946_v44 = vadd.f32 %v4945_v17, %v10079_v46  ;;  %v4859_v37 = vadd.f32 %v4858_v13, %v10079_v46  ;;  %v4947_v63 = vpop.f32.mrb[119].mxu1  ;;  %5370 = vmatprep.mubr.f32.mxu0 %v11217_v26  ;;  %5459 = vmatprep.mubr.f32.mxu1 %v11217_v26  ;;  %v5517_v62 = vmax.f32 %v4853_v10, 0.0 }
 0x563   :  { %11333 = vst [vmem:[#allocation31_spill] sm:$0xff] %v10091_v38  ;;  %v7691_v55 = vpack.c.bf16 %v10091_v38, %v10088_v36  ;;  %v5532_v0 = vmax.f32 %v4857_v60, 0.0  ;;  %v4948_v5 = vadd.f32 %v4947_v63, %v10079_v46  ;;  %v5519_v28 = vmax.f32 %v4942_v19, 0.0 }
 0x564   :  { %v5534_v57 = vmax.f32 %v4946_v44, 0.0  ;;  %v5533_v1 = vmax.f32 %v4859_v37, 0.0  ;;  %v5016_v9 = vpop.f32.mrb[120].mxu0  ;;  %7370 = vmatmul.mubr.msk.f32.vlgmr.msra.gmra.mrb[136].mxu0 %vm146_vm0, %v9658_v4 }
 0x565   :  { %7692 = vmatprep.subr.bf16.mxu1 %v7691_v55  ;;  %v7701_v25 = vpack.c.bf16 %v5532_v0, %v5516_v42  ;;  %v5535_v31 = vmax.f32 %v4948_v5, 0.0  ;;  %7698 = vmatpush1.bf16.msra.mxu0 %v7697_v15  ;;  %v5018_v47 = vpop.f32.mrb[121].mxu0  ;;  %v5017_v56 = vadd.f32 %v5016_v9, %v10015_v61 }
 0x566   :  { %7694 = vmatpush1.bf16.msra.mxu1 %v7693_v16  ;;  %v7709_v58 = vpack.c.bf16 %v5534_v57, %v5518_v50  ;;  %v7699_v24 = vpack.c.bf16 %v5533_v1, %v5517_v62  ;;  %5376 = vmatprep.mubr.f32.mxu0 %v11217_v26  ;;  %v5019_v21 = vadd.f32 %v5018_v47, %v10015_v61 }
 0x567   :  { %7704 = vmatprep.subr.bf16.mxu1 %v7703_v29  ;;  %v7707_v53 = vpack.c.bf16 %v5535_v31, %v5519_v28  ;;  %v5488_v10 = vmax.f32 %v5017_v56, 0.0  ;;  %v10139_v28 = vld [vmem:[%s11165_s2] sm:$0xff] }
 0x568   :  { %v5022_v43 = vpop.f32.mrb[122].mxu0  ;;  %7371 = vmatmul.mubr.msk.f32.gmra.mrb[138].mxu0 %vm146_vm0, %v9673_v3  ;;  %7700 = vmatprep.subr.bf16.mxu0 %v7699_v24  ;;  %v5489_v60 = vmax.f32 %v5019_v21, 0.0 }
 0x569   :  { %7374 = vmatmul.mubr.msk.f32.vlgmr.msra.gmra.mrb[136].mxu1 %vm146_vm0, %v9658_v4  ;;  %v5023_v15 = vadd.f32 %v5022_v43, %v10034_v48  ;;  %v5024_v14 = vpop.f32.mrb[123].mxu0  ;;  %7702 = vmatpush1.bf16.msra.mxu0 %v7701_v25 }
 0x56a   :  { %v5105_v40 = vpop.f32.mrb[120].mxu1  ;;  %7706 = vmatpush1.bf16.msra.mxu1 %v7705_v34  ;;  %5465 = vmatprep.mubr.f32.mxu1 %v11217_v26  ;;  %v5025_v29 = vadd.f32 %v5024_v14, %v10034_v48 }
 0x56b   :  { %v5107_v19 = vpop.f32.mrb[121].mxu1  ;;  %v5504_v6 = vmax.f32 %v5023_v15, 0.0  ;;  %7708 = vmatprep.subr.bf16.mxu1 %v7707_v53  ;;  %5382 = vmatprep.mubr.f32.mxu0 %v11217_v26  ;;  %v5106_v4 = vadd.f32 %v5105_v40, %v10015_v61 }
 0x56c   :  { %v5505_v17 = vmax.f32 %v5025_v29, 0.0  ;;  %v5028_v13 = vpop.f32.mrb[124].mxu0  ;;  %7372 = vmatmul.mubr.msk.f32.gmra.mrb[140].mxu0 %vm146_vm0, %v9699_v59  ;;  %v5108_v44 = vadd.f32 %v5107_v19, %v10015_v61  ;;  %v10151_v29 = vld [vmem:[%s11165_s2 + $0x8] sm:$0xff] }
 0x56d   :  { %v7713_v16 = vpack.c.bf16 %v5504_v6, %v5488_v10  ;;  %7375 = vmatmul.mubr.msk.f32.gmra.mrb[138].mxu1 %vm146_vm0, %v9673_v3  ;;  %v5030_v34 = vpop.f32.mrb[125].mxu0  ;;  %5388 = vmatprep.mubr.f32.mxu0 %v11217_v26  ;;  %v5029_v0 = vadd.f32 %v5028_v13, %v10068_v27  ;;  %v5490_v62 = vmax.f32 %v5106_v4, 0.0 }
 0x56e   :  { %v5111_v37 = vpop.f32.mrb[122].mxu1  ;;  %v7711_v63 = vpack.c.bf16 %v5505_v17, %v5489_v60  ;;  %7710 = vmatpush1.bf16.msra.mxu1 %v7709_v58  ;;  %5471 = vmatprep.mubr.f32.mxu1 %v11217_v26  ;;  %v5031_v50 = vadd.f32 %v5030_v34, %v10068_v27  ;;  %v5491_v25 = vmax.f32 %v5108_v44, 0.0 }
 0x56f   :  { %v5112_v55 = vadd.f32 %v5111_v37, %v10034_v48  ;;  %v5113_v42 = vpop.f32.mrb[123].mxu1 }
 0x570   :  { %v5114_v5 = vadd.f32 %v5113_v42, %v10034_v48  ;;  %v5034_v3 = vpop.f32.mrb[126].mxu0  ;;  %7373 = vmatmul.mubr.msk.f32.gmra.mrb[142].mxu0 %vm146_vm0, %v9715_v49  ;;  %7712 = vmatprep.subr.bf16.mxu0 %v7711_v63  ;;  %v5521_v43 = vmax.f32 %v5031_v50, 0.0 }
 0x571   :  { %v5506_v57 = vmax.f32 %v5112_v55, 0.0  ;;  %7376 = vmatmul.mubr.msk.f32.gmra.mrb[140].mxu1 %vm146_vm0, %v9699_v59  ;;  %v5035_v1 = vadd.f32 %v5034_v3, %v10079_v46  ;;  %v5036_v9 = vpop.f32.mrb[127].mxu0  ;;  %5629 = vmatprep.mubr.f32.mxu0 %v11217_v26  ;;  %v5520_v59 = vmax.f32 %v5029_v0, 0.0 }
 0x572   :  { %v5507_v31 = vmax.f32 %v5114_v5, 0.0  ;;  %v5117_v47 = vpop.f32.mrb[124].mxu1  ;;  %5477 = vmatprep.mubr.f32.mxu1 %v11217_v26  ;;  %v5037_v58 = vadd.f32 %v5036_v9, %v10079_v46 }
 0x573   :  { %v7721_v24 = vpack.c.bf16 %v5506_v57, %v5490_v62  ;;  %v5119_v53 = vpop.f32.mrb[125].mxu1  ;;  %v5536_v56 = vmax.f32 %v5035_v1, 0.0  ;;  %v5118_v14 = vadd.f32 %v5117_v47, %v10068_v27 }
 0x574   :  { %v7719_v21 = vpack.c.bf16 %v5507_v31, %v5491_v25  ;;  %v5537_v15 = vmax.f32 %v5037_v58, 0.0  ;;  %7378 = vmatmul.mubr.msk.f32.vlgmr.msra.gmra.mrb[144].mxu0 %vm5558_vm11, %v10139_v28  ;;  %v5120_v10 = vadd.f32 %v5119_v53, %v10068_v27 }
 0x575   :  { %v7717_v40 = vpack.c.bf16 %v5536_v56, %v5520_v59  ;;  %7377 = vmatmul.mubr.msk.f32.gmra.mrb[142].mxu1 %vm146_vm0, %v9715_v49  ;;  %7714 = vmatpush1.bf16.msra.mxu0 %v7713_v16  ;;  %v5522_v13 = vmax.f32 %v5118_v14, 0.0 }
 0x576   :  { %v5123_v19 = vpop.f32.mrb[126].mxu1  ;;  %7720 = vmatprep.subr.bf16.mxu1 %v7719_v21  ;;  %v7715_v6 = vpack.c.bf16 %v5537_v15, %v5521_v43  ;;  %5706 = vmatprep.mubr.f32.mxu1 %v11217_v26  ;;  %v5523_v16 = vmax.f32 %v5120_v10, 0.0 }
 0x577   :  { %v5124_v60 = vadd.f32 %v5123_v19, %v10079_v46  ;;  %v5125_v17 = vpop.f32.mrb[127].mxu1  ;;  %5635 = vmatprep.mubr.f32.mxu0 %v11217_v26 }
 0x578   :  { %v5126_v49 = vadd.f32 %v5125_v17, %v10079_v46  ;;  %7379 = vmatmul.mubr.msk.f32.gmra.mrb[146].mxu0 %vm5558_vm11, %v10151_v29  ;;  %7716 = vmatprep.subr.bf16.mxu0 %v7715_v6 }
 0x579   :  { %v5538_v4 = vmax.f32 %v5124_v60, 0.0  ;;  %7380 = vmatmul.mubr.msk.f32.vlgmr.msra.gmra.mrb[144].mxu1 %vm5558_vm11, %v10139_v28  ;;  %7718 = vmatpush1.bf16.msra.mxu0 %v7717_v40 }
 0x57a   :  { %v5539_v34 = vmax.f32 %v5126_v49, 0.0  ;;  %7722 = vmatpush1.bf16.msra.mxu1 %v7721_v24  ;;  %5712 = vmatprep.mubr.f32.mxu1 %v11217_v26 }
 0x57b   :  { %v7725_v44 = vpack.c.bf16 %v5538_v4, %v5522_v13  ;;  %5783 = vmatprep.mubr.f32.mxu0 %v11217_v26 }
 0x57c   :  { %v7723_v37 = vpack.c.bf16 %v5539_v34, %v5523_v16  ;;  %7382 = vmatmul.mubr.msk.f32.vlgmr.msra.gmra.mrb[148].mxu0 %vm5558_vm11, %v10139_v28 }
 0x57d   :  { %7381 = vmatmul.mubr.msk.f32.gmra.mrb[146].mxu1 %vm5558_vm11, %v10151_v29  ;;  %5789 = vmatprep.mubr.f32.mxu0 %v11217_v26 }
 0x57e   :  { %7724 = vmatprep.subr.bf16.mxu1 %v7723_v37  ;;  %5860 = vmatprep.mubr.f32.mxu1 %v11217_v26 }
 0x57f   :  { %7726 = vmatpush1.bf16.msra.mxu1 %v7725_v44 }
 0x580   :  { %7383 = vmatmul.mubr.msk.f32.gmra.mrb[150].mxu0 %vm5558_vm11, %v10151_v29 }
 0x581   :  { %5937 = vmatprep.mubr.f32.mxu0 %v11217_v26 }
 0x582   :  { %7384 = vmatmul.mubr.msk.f32.vlgmr.msra.gmra.mrb[148].mxu1 %vm5558_vm11, %v10139_v28 }
 0x583   :  { %5866 = vmatprep.mubr.f32.mxu1 %v11217_v26 }
 0x586   :  { %7385 = vmatmul.mubr.msk.f32.gmra.mrb[150].mxu1 %vm5558_vm11, %v10151_v29 }
 0x587   :  { %6014 = vmatprep.mubr.f32.mxu1 %v11217_v26 }
 0x627   :  { %v5194_v63 = vpop.f32.mrb[128].mxu0 }
 0x628   :  { %v5283_v55 = vpop.f32.mrb[128].mxu1  ;;  %v5196_v42 = vpop.f32.mrb[129].mxu0  ;;  %v5195_v5 = vadd.f32 %v5194_v63, %v10015_v61 }
 0x629   :  { %v5285_v0 = vpop.f32.mrb[129].mxu1  ;;  %v5284_v50 = vadd.f32 %v5283_v55, %v10015_v61  ;;  %v5197_v3 = vadd.f32 %v5196_v42, %v10015_v61 }
 0x62a   :  { %v5286_v57 = vadd.f32 %v5285_v0, %v10015_v61  ;;  %v5492_v24 = vmax.f32 %v5195_v5, 0.0 }
 0x62b   :  { %v5200_v62 = vpop.f32.mrb[130].mxu0  ;;  %v5494_v56 = vmax.f32 %v5284_v50, 0.0  ;;  %v5493_v21 = vmax.f32 %v5197_v3, 0.0 }
 0x62c   :  { %v5201_v1 = vadd.f32 %v5200_v62, %v10034_v48  ;;  %v5289_v9 = vpop.f32.mrb[130].mxu1  ;;  %v5202_v25 = vpop.f32.mrb[131].mxu0  ;;  %v5495_v40 = vmax.f32 %v5286_v57, 0.0 }
 0x62d   :  { %v5290_v31 = vadd.f32 %v5289_v9, %v10034_v48  ;;  %v5203_v47 = vadd.f32 %v5202_v25, %v10034_v48  ;;  %v5291_v58 = vpop.f32.mrb[131].mxu1 }
 0x62e   :  { %v5508_v59 = vmax.f32 %v5201_v1, 0.0  ;;  %v5292_v53 = vadd.f32 %v5291_v58, %v10034_v48 }
 0x62f   :  { %v5510_v43 = vmax.f32 %v5290_v31, 0.0  ;;  %v5509_v15 = vmax.f32 %v5203_v47, 0.0  ;;  %v5206_v14 = vpop.f32.mrb[132].mxu0 }
 0x630   :  { %v7729_v10 = vpack.c.bf16 %v5508_v59, %v5492_v24  ;;  %v5511_v19 = vmax.f32 %v5292_v53, 0.0  ;;  %v5295_v6 = vpop.f32.mrb[132].mxu1  ;;  %v5208_v60 = vpop.f32.mrb[133].mxu0  ;;  %v5207_v16 = vadd.f32 %v5206_v14, %v10068_v27 }
 0x631   :  { %v7737_v17 = vpack.c.bf16 %v5510_v43, %v5494_v56  ;;  %v7727_v49 = vpack.c.bf16 %v5509_v15, %v5493_v21  ;;  %v5297_v13 = vpop.f32.mrb[133].mxu1  ;;  %v5296_v34 = vadd.f32 %v5295_v6, %v10068_v27  ;;  %v5209_v44 = vadd.f32 %v5208_v60, %v10068_v27 }
 0x632   :  { %v7735_v4 = vpack.c.bf16 %v5511_v19, %v5495_v40  ;;  %v5298_v63 = vadd.f32 %v5297_v13, %v10068_v27  ;;  %v5524_v62 = vmax.f32 %v5207_v16, 0.0 }
 0x633   :  { %v5212_v37 = vpop.f32.mrb[134].mxu0  ;;  %7728 = vmatprep.subr.bf16.mxu0 %v7727_v49  ;;  %v5526_v9 = vmax.f32 %v5296_v34, 0.0  ;;  %v5525_v25 = vmax.f32 %v5209_v44, 0.0 }
 0x634   :  { %v5213_v55 = vadd.f32 %v5212_v37, %v10079_v46  ;;  %v5301_v42 = vpop.f32.mrb[134].mxu1  ;;  %7736 = vmatprep.subr.bf16.mxu1 %v7735_v4  ;;  %v5214_v0 = vpop.f32.mrb[135].mxu0  ;;  %7730 = vmatpush1.bf16.msra.mxu0 %v7729_v10  ;;  %v5527_v24 = vmax.f32 %v5298_v63, 0.0 }
 0x635   :  { %v5302_v5 = vadd.f32 %v5301_v42, %v10079_v46  ;;  %v5215_v50 = vadd.f32 %v5214_v0, %v10079_v46  ;;  %v5303_v3 = vpop.f32.mrb[135].mxu1  ;;  %7738 = vmatpush1.bf16.msra.mxu1 %v7737_v17 }
 0x636   :  { %v5540_v57 = vmax.f32 %v5213_v55, 0.0  ;;  %v5304_v1 = vadd.f32 %v5303_v3, %v10079_v46 }
 0x637   :  { %v5542_v31 = vmax.f32 %v5302_v5, 0.0  ;;  %v5541_v47 = vmax.f32 %v5215_v50, 0.0  ;;  %v5372_v58 = vpop.f32.mrb[136].mxu0 }
 0x638   :  { %v7733_v59 = vpack.c.bf16 %v5540_v57, %v5524_v62  ;;  %v5543_v53 = vmax.f32 %v5304_v1, 0.0  ;;  %v5374_v56 = vpop.f32.mrb[137].mxu0  ;;  %v5373_v14 = vadd.f32 %v5372_v58, %v10015_v61 }
 0x639   :  { %v7741_v21 = vpack.c.bf16 %v5542_v31, %v5526_v9  ;;  %v7731_v43 = vpack.c.bf16 %v5541_v47, %v5525_v25  ;;  %v5375_v40 = vadd.f32 %v5374_v56, %v10015_v61 }
 0x63a   :  { %v7739_v15 = vpack.c.bf16 %v5543_v53, %v5527_v24  ;;  %v5496_v13 = vmax.f32 %v5373_v14, 0.0 }
 0x63b   :  { %v5378_v10 = vpop.f32.mrb[138].mxu0  ;;  %7732 = vmatprep.subr.bf16.mxu0 %v7731_v43  ;;  %v5497_v34 = vmax.f32 %v5375_v40, 0.0 }
 0x63c   :  { %v5461_v19 = vpop.f32.mrb[136].mxu1  ;;  %v5379_v6 = vadd.f32 %v5378_v10, %v10034_v48  ;;  %7740 = vmatprep.subr.bf16.mxu1 %v7739_v15  ;;  %v5380_v60 = vpop.f32.mrb[139].mxu0  ;;  %7734 = vmatpush1.bf16.msra.mxu0 %v7733_v59 }
 0x63d   :  { %v5463_v17 = vpop.f32.mrb[137].mxu1  ;;  %v5381_v49 = vadd.f32 %v5380_v60, %v10034_v48  ;;  %7742 = vmatpush1.bf16.msra.mxu1 %v7741_v21  ;;  %v5462_v16 = vadd.f32 %v5461_v19, %v10015_v61 }
 0x63e   :  { %v5512_v4 = vmax.f32 %v5379_v6, 0.0  ;;  %v5464_v63 = vadd.f32 %v5463_v17, %v10015_v61 }
 0x63f   :  { %v5513_v44 = vmax.f32 %v5381_v49, 0.0  ;;  %v5384_v37 = vpop.f32.mrb[140].mxu0  ;;  %7386 = vmatmul.mubr.msk.f32.vlgmr.msra.gmra.mrb[152].mxu0 %vm5558_vm11, %v10139_v28  ;;  %v5498_v1 = vmax.f32 %v5462_v16, 0.0 }
 0x640   :  { %v7745_v55 = vpack.c.bf16 %v5512_v4, %v5496_v13  ;;  %v5467_v42 = vpop.f32.mrb[138].mxu1  ;;  %7388 = vmatmul.mubr.msk.f32.vlgmr.msra.gmra.mrb[152].mxu1 %vm5558_vm11, %v10139_v28  ;;  %v5386_v0 = vpop.f32.mrb[141].mxu0  ;;  %5943 = vmatprep.mubr.f32.mxu0 %v11217_v26  ;;  %v5385_v57 = vadd.f32 %v5384_v37, %v10068_v27  ;;  %v5499_v31 = vmax.f32 %v5464_v63, 0.0 }
 0x641   :  { %v5468_v5 = vadd.f32 %v5467_v42, %v10034_v48  ;;  %v7743_v50 = vpack.c.bf16 %v5513_v44, %v5497_v34  ;;  %v5469_v3 = vpop.f32.mrb[139].mxu1  ;;  %6020 = vmatprep.mubr.f32.mxu1 %v11217_v26  ;;  %v5387_v9 = vadd.f32 %v5386_v0, %v10068_v27  ;;  %v10221_v13 = vpop.permute.xlu0 %5550 }
 0x642   :  { %v5470_v62 = vadd.f32 %v5469_v3, %v10034_v48  ;;  %v5528_v43 = vmax.f32 %v5385_v57, 0.0  ;;  %v10226_v63 = vpop.permute.xlu1 %5555 }
 0x643   :  { %v5514_v61 = vmax.f32 %v5468_v5, 0.0  ;;  %v5390_v25 = vpop.f32.mrb[142].mxu0  ;;  %7387 = vmatmul.mubr.msk.f32.gmra.mrb[154].mxu0 %vm5558_vm11, %v10151_v29  ;;  %7744 = vmatprep.subr.bf16.mxu0 %v7743_v50  ;;  %v5529_v40 = vmax.f32 %v5387_v9, 0.0 }
 0x644   :  { %v5515_v47 = vmax.f32 %v5470_v62, 0.0  ;;  %v5473_v58 = vpop.f32.mrb[140].mxu1  ;;  %v5391_v24 = vadd.f32 %v5390_v25, %v10079_v46  ;;  %7389 = vmatmul.mubr.msk.f32.gmra.mrb[154].mxu1 %vm5558_vm11, %v10151_v29  ;;  %v5392_v48 = vpop.f32.mrb[143].mxu0  ;;  %7746 = vmatpush1.bf16.msra.mxu0 %v7745_v55 }
 0x645   :  { %v7753_v59 = vpack.c.bf16 %v5514_v61, %v5498_v1  ;;  %v5475_v53 = vpop.f32.mrb[141].mxu1  ;;  %v5393_v56 = vadd.f32 %v5392_v48, %v10079_v46  ;;  %6091 = vmatprep.mubr.f32.mxu0 %v11217_v26  ;;  %6168 = vmatprep.mubr.f32.mxu1 %v11217_v26  ;;  %v5474_v14 = vadd.f32 %v5473_v58, %v10068_v27 }
 0x646   :  { %v7751_v21 = vpack.c.bf16 %v5515_v47, %v5499_v31  ;;  %v5544_v15 = vmax.f32 %v5391_v24, 0.0  ;;  %v5476_v6 = vadd.f32 %v5475_v53, %v10068_v27 }
 0x647   :  { %v5545_v10 = vmax.f32 %v5393_v56, 0.0  ;;  %v5631_v19 = vpop.f32.mrb[144].mxu0  ;;  %v5530_v55 = vmax.f32 %v5474_v14, 0.0 }
 0x648   :  { %v7749_v60 = vpack.c.bf16 %v5544_v15, %v5528_v43  ;;  %v5479_v17 = vpop.f32.mrb[142].mxu1  ;;  %7752 = vmatprep.subr.bf16.mxu1 %v7751_v21  ;;  %v5633_v49 = vpop.f32.mrb[145].mxu0  ;;  %v5632_v37 = vadd.f32 %v5631_v19, %v10221_v13  ;;  %v5531_v5 = vmax.f32 %v5476_v6, 0.0  ;;  %v11335_v6 = vld [vmem:[#allocation20_spill] sm:$0xff] }
 0x649   :  { %v5480_v4 = vadd.f32 %v5479_v17, %v10079_v46  ;;  %v7747_v16 = vpack.c.bf16 %v5545_v10, %v5529_v40  ;;  %v5481_v34 = vpop.f32.mrb[143].mxu1  ;;  %7754 = vmatpush1.bf16.msra.mxu1 %v7753_v59  ;;  %v5634_v27 = vadd.f32 %v5633_v49, %v10221_v13  ;;  %v11334_v10 = vld [vmem:[#allocation21_spill] sm:$0xff] }
 0x64a   :  { %v5482_v44 = vadd.f32 %v5481_v34, %v10079_v46  ;;  %v10232_v25 = vadd.f32 %v5632_v37, %v9627_v39 }
 0x64b   :  { %v5546_v42 = vmax.f32 %v5480_v4, 0.0  ;;  %v5637_v0 = vpop.f32.mrb[146].mxu0  ;;  %7748 = vmatprep.subr.bf16.mxu0 %v7747_v16  ;;  %v10239_v58 = vadd.f32 %v5634_v27, %v9630_v7  ;;  %v11336_v16 = vld [vmem:[#allocation19_spill] sm:$0xff] }
 0x64c   :  { %v5547_v50 = vmax.f32 %v5482_v44, 0.0  ;;  %v5708_v3 = vpop.f32.mrb[144].mxu1  ;;  %v5638_v62 = vadd.f32 %v5637_v0, %v10226_v63  ;;  %v5639_v57 = vpop.f32.mrb[147].mxu0  ;;  %7750 = vmatpush1.bf16.msra.mxu0 %v7749_v60  ;;  %v11337_v44 = vld [vmem:[#allocation22_spill] sm:$0xff] }
 0x64d   :  { %v7757_v1 = vpack.c.bf16 %v5546_v42, %v5530_v55  ;;  %v5710_v61 = vpop.f32.mrb[145].mxu1  ;;  %v5640_v46 = vadd.f32 %v5639_v57, %v10226_v63  ;;  %v5709_v47 = vadd.f32 %v5708_v3, %v10221_v13 }
 0x64e   :  { %v7755_v9 = vpack.c.bf16 %v5547_v50, %v5531_v5  ;;  %v10235_v31 = vadd.f32 %v5638_v62, %v9620_v54  ;;  %v5711_v24 = vadd.f32 %v5710_v61, %v10221_v13  ;;  %v11338_v5 = vld [vmem:[#allocation24_spill] sm:$0xff]  ;;  %v11339_v61 = vld [vmem:[#allocation23_spill] sm:$0xff] }
 0x64f   :  { %v10243_v48 = vadd.f32 %v5640_v46, %v9623_v2  ;;  %v5785_v59 = vpop.f32.mrb[148].mxu0  ;;  %7390 = vmatmul.mubr.msk.f32.vlgmr.msra.gmra.mrb[156].mxu0 %vm5558_vm11, %v10139_v28  ;;  %v10257_v40 = vadd.f32 %v5709_v47, %v9647_v30 }
 0x650   :  { %v6213_v39 = vadd.f32 %v10235_v31, %v10232_v25  ;;  %v5714_v53 = vpop.f32.mrb[146].mxu1  ;;  %7756 = vmatprep.subr.bf16.mxu1 %v7755_v9  ;;  %v5786_v54 = vadd.f32 %v5785_v59, %v10221_v13  ;;  %v5787_v56 = vpop.f32.mrb[149].mxu0  ;;  %6097 = vmatprep.mubr.f32.mxu0 %v11217_v26  ;;  %v10260_v19 = vadd.f32 %v5711_v24, %v11334_v10  ;;  %v11340_v59 = vld [vmem:[#allocation25_spill] sm:$0xff] }
 0x651   :  { %v5715_v7 = vadd.f32 %v5714_v53, %v10226_v63  ;;  %v6220_v2 = vadd.f32 %v10243_v48, %v10239_v58  ;;  %v5716_v21 = vpop.f32.mrb[147].mxu1  ;;  %7758 = vmatpush1.bf16.msra.mxu1 %v7757_v1  ;;  %v5788_v43 = vadd.f32 %v5787_v56, %v10221_v13 }
 0x652   :  { %v6214_v15 = vrot.slane %v6213_v39, 4  ;;  %v5717_v14 = vadd.f32 %v5716_v21, %v10226_v63  ;;  %v10271_v37 = vadd.f32 %v5786_v54, %v11337_v44  ;;  %v11341_v54 = vld [vmem:[#allocation26_spill] sm:$0xff] }
 0x653   :  { %v10263_v60 = vadd.f32 %v5715_v7, %v11335_v6  ;;  %v6221_v17 = vrot.slane %v6220_v2, 4  ;;  %v5791_v49 = vpop.f32.mrb[150].mxu0  ;;  %7391 = vmatmul.mubr.msk.f32.gmra.mrb[158].mxu0 %vm5558_vm11, %v10151_v29  ;;  %v10279_v50 = vadd.f32 %v5788_v43, %v11338_v5  ;;  %v11342_v43 = vld [vmem:[#allocation28_spill] sm:$0xff]  ;;  %v11343_v5 = vld [vmem:[#allocation27_spill] sm:$0xff] }
 0x654   :  { %v6215_v4 = vadd.f32 %v6214_v15, %v6213_v39  ;;  %v10268_v34 = vadd.f32 %v5717_v14, %v11336_v16  ;;  %7392 = vmatmul.mubr.msk.f32.vlgmr.msra.gmra.mrb[156].mxu1 %vm5558_vm11, %v10139_v28  ;;  %v5792_v30 = vadd.f32 %v5791_v49, %v10226_v63  ;;  %v5793_v55 = vpop.f32.mrb[151].mxu0 }
 0x655   :  { %v6227_v42 = vadd.f32 %v10263_v60, %v10257_v40  ;;  %v6222_v27 = vadd.f32 %v6221_v17, %v6220_v2  ;;  %v5862_v0 = vpop.f32.mrb[148].mxu1  ;;  %6174 = vmatprep.mubr.f32.mxu1 %v11217_v26  ;;  %v5794_v3 = vadd.f32 %v5793_v55, %v10226_v63 }
 0x656   :  { %v6216_v62 = vrot.slane %v6215_v4, 2  ;;  %v6234_v57 = vadd.f32 %v10268_v34, %v10260_v19  ;;  %v5863_v28 = vadd.f32 %v5862_v0, %v10221_v13  ;;  %v5864_v1 = vpop.f32.mrb[149].mxu1  ;;  %v10287_v46 = vadd.f32 %v5792_v30, %v11339_v61  ;;  %v11344_v61 = vld [vmem:[#allocation29_spill] sm:$0xff] }
 0x657   :  { %v6228_v9 = vrot.slane %v6227_v42, 4  ;;  %v6223_v47 = vrot.slane %v6222_v27, 2  ;;  %v5865_v24 = vadd.f32 %v5864_v1, %v10221_v13  ;;  %v10291_v39 = vadd.f32 %v5794_v3, %v11340_v59 }
 0x658   :  { %v6217_v26 = vadd.f32 %v6216_v62, %v6215_v4  ;;  %v6235_v53 = vrot.slane %v6234_v57, 4  ;;  %v10294_v56 = vadd.f32 %v5863_v28, %v11341_v54  ;;  %v6241_v7 = vadd.f32 %v10287_v46, %v10271_v37  ;;  %7393 = vmatmul.mubr.msk.f32.gmra.mrb[158].mxu1 %vm5558_vm11, %v10151_v29 }
 0x659   :  { %v6229_v2 = vadd.f32 %v6228_v9, %v6227_v42  ;;  %v6224_v21 = vadd.f32 %v6223_v47, %v6222_v27  ;;  %v10301_v15 = vadd.f32 %v5865_v24, %v11342_v43  ;;  %v5868_v14 = vpop.f32.mrb[150].mxu1  ;;  %v6248_v10 = vadd.f32 %v10291_v39, %v10279_v50 }
 0x65a   :  { %v6218_v6 = vrot.slane %v6217_v26, 1  ;;  %v6236_v17 = vadd.f32 %v6235_v53, %v6234_v57  ;;  %v6242_v49 = vrot.slane %v6241_v7, 4  ;;  %v5869_v4 = vadd.f32 %v5868_v14, %v10226_v63  ;;  %v5870_v16 = vpop.f32.mrb[151].mxu1 }
 0x65b   :  { %v6230_v44 = vrot.slane %v6229_v2, 2  ;;  %v6225_v30 = vrot.slane %v6224_v21, 1  ;;  %v6249_v55 = vrot.slane %v6248_v10, 4  ;;  %v5871_v29 = vadd.f32 %v5870_v16, %v10226_v63 }
 0x65c   :  { %v6219_v42 = vadd.f32 %v6218_v6, %v6217_v26  ;;  %v6237_v27 = vrot.slane %v6236_v17, 2  ;;  %v6243_v0 = vadd.f32 %v6242_v49, %v6241_v7  ;;  %v10308_v3 = vadd.f32 %v5869_v4, %v11343_v5 }
 0x65d   :  { %v6231_v62 = vadd.f32 %v6230_v44, %v6229_v2  ;;  %v6226_v28 = vadd.f32 %v6225_v30, %v6224_v21  ;;  %v6250_v1 = vadd.f32 %v6249_v55, %v6248_v10  ;;  %v10311_v57 = vadd.f32 %v5871_v29, %v11344_v61 }
 0x65e   :  { %v6325_v9 = vmul.f32 0.0625, %v6219_v42  ;;  %v6238_v47 = vadd.f32 %v6237_v27, %v6236_v17  ;;  %v6244_v24 = vrot.slane %v6243_v0, 2  ;;  %v6255_v59 = vadd.f32 %v10308_v3, %v10294_v56 }
 0x65f   :  { %v6232_v53 = vrot.slane %v6231_v62, 1  ;;  %v6326_v54 = vmul.f32 0.0625, %v6226_v28  ;;  %v6251_v26 = vrot.slane %v6250_v1, 2  ;;  %v6262_v7 = vadd.f32 %v10311_v57, %v10301_v15 }
 0x660   :  { %v10318_v43 = vsub.f32 %v10232_v25, %v6325_v9  ;;  %v10321_v2 = vsub.f32 %v10235_v31, %v6325_v9  ;;  %v6239_v21 = vrot.slane %v6238_v47, 1  ;;  %v6245_v14 = vadd.f32 %v6244_v24, %v6243_v0 }
 0x661   :  { %v6233_v10 = vadd.f32 %v6232_v53, %v6231_v62  ;;  %v10324_v6 = vsub.f32 %v10239_v58, %v6326_v54  ;;  %v10327_v17 = vsub.f32 %v10243_v48, %v6326_v54  ;;  %v6256_v49 = vrot.slane %v6255_v59, 4 }
 0x662   :  { %v6373_v4 = vmul.f32 %v10318_v43, %v10318_v43  ;;  %v6389_v25 = vmul.f32 %v10321_v2, %v10321_v2  ;;  %v6240_v16 = vadd.f32 %v6239_v21, %v6238_v47  ;;  %v6246_v44 = vrot.slane %v6245_v14, 1 }
 0x663   :  { %v6327_v31 = vmul.f32 0.0625, %v6233_v10  ;;  %v6374_v30 = vmul.f32 %v10324_v6, %v10324_v6  ;;  %v6390_v58 = vmul.f32 %v10327_v17, %v10327_v17  ;;  %v6257_v55 = vadd.f32 %v6256_v49, %v6255_v59 }
 0x664   :  { %v6405_v29 = vadd.f32 %v6389_v25, %v6373_v4  ;;  %v6328_v48 = vmul.f32 0.0625, %v6240_v16  ;;  %v6247_v42 = vadd.f32 %v6246_v44, %v6245_v14  ;;  %v6252_v27 = vadd.f32 %v6251_v26, %v6250_v1 }
 0x665   :  { %v10338_v0 = vsub.f32 %v10257_v40, %v6327_v31  ;;  %v10341_v5 = vsub.f32 %v10263_v60, %v6327_v31  ;;  %v6412_v62 = vadd.f32 %v6390_v58, %v6374_v30  ;;  %v6258_v28 = vrot.slane %v6257_v55, 2 }
 0x666   :  { %v6406_v61 = vrot.slane %v6405_v29, 4  ;;  %v10344_v9 = vsub.f32 %v10260_v19, %v6328_v48  ;;  %v10347_v47 = vsub.f32 %v10268_v34, %v6328_v48  ;;  %v6329_v24 = vmul.f32 0.0625, %v6247_v42 }
 0x667   :  { %v6375_v59 = vmul.f32 %v10338_v0, %v10338_v0  ;;  %v6391_v40 = vmul.f32 %v10341_v5, %v10341_v5  ;;  %v6413_v1 = vrot.slane %v6412_v62, 4  ;;  %v6259_v53 = vadd.f32 %v6258_v28, %v6257_v55 }
 0x668   :  { %v6407_v60 = vadd.f32 %v6406_v61, %v6405_v29  ;;  %v6376_v54 = vmul.f32 %v10344_v9, %v10344_v9  ;;  %v6392_v19 = vmul.f32 %v10347_v47, %v10347_v47  ;;  %v10358_v26 = vsub.f32 %v10271_v37, %v6329_v24 }
 0x669   :  { %v6419_v34 = vadd.f32 %v6391_v40, %v6375_v59  ;;  %v6414_v21 = vadd.f32 %v6413_v1, %v6412_v62  ;;  %v10361_v14 = vsub.f32 %v10287_v46, %v6329_v24  ;;  %v6260_v10 = vrot.slane %v6259_v53, 1 }
 0x66a   :  { %v6408_v49 = vrot.slane %v6407_v60, 2  ;;  %v6426_v4 = vadd.f32 %v6392_v19, %v6376_v54  ;;  %v6377_v25 = vmul.f32 %v10358_v26, %v10358_v26  ;;  %v6253_v16 = vrot.slane %v6252_v27, 1 }
 0x66b   :  { %v6420_v44 = vrot.slane %v6419_v34, 4  ;;  %v6415_v31 = vrot.slane %v6414_v21, 2  ;;  %v6393_v30 = vmul.f32 %v10361_v14, %v10361_v14  ;;  %v6261_v58 = vadd.f32 %v6260_v10, %v6259_v53 }
 0x66c   :  { %v6409_v37 = vadd.f32 %v6408_v49, %v6407_v60  ;;  %v6427_v55 = vrot.slane %v6426_v4, 4  ;;  %v6254_v29 = vadd.f32 %v6253_v16, %v6252_v27  ;;  %v6263_v48 = vrot.slane %v6262_v7, 4 }
 0x66d   :  { %v6421_v42 = vadd.f32 %v6420_v44, %v6419_v34  ;;  %v6416_v46 = vadd.f32 %v6415_v31, %v6414_v21  ;;  %v6433_v62 = vadd.f32 %v6393_v30, %v6377_v25  ;;  %v6331_v28 = vmul.f32 0.0625, %v6261_v58 }
 0x66e   :  { %v6410_v61 = vrot.slane %v6409_v37, 1  ;;  %v6428_v24 = vadd.f32 %v6427_v55, %v6426_v4  ;;  %v6330_v59 = vmul.f32 0.0625, %v6254_v29  ;;  %v6264_v40 = vadd.f32 %v6263_v48, %v6262_v7 }
 0x66f   :  { %v6422_v1 = vrot.slane %v6421_v42, 2  ;;  %v6417_v54 = vrot.slane %v6416_v46, 1  ;;  %v6434_v19 = vrot.slane %v6433_v62, 4  ;;  %v10368_v38 = vsub.f32 %v10294_v56, %v6331_v28 }
 0x670   :  { %v6411_v51 = vadd.f32 %v6410_v61, %v6409_v37  ;;  %v6429_v53 = vrot.slane %v6428_v24, 2  ;;  %v10371_v60 = vsub.f32 %v10308_v3, %v6331_v28  ;;  %v10374_v27 = vsub.f32 %v10279_v50, %v6330_v59 }
 0x671   :  { %v6423_v34 = vadd.f32 %v6422_v1, %v6421_v42  ;;  %v6418_v21 = vadd.f32 %v6417_v54, %v6416_v46  ;;  %v6435_v10 = vadd.f32 %v6434_v19, %v6433_v62  ;;  %v6379_v7 = vmul.f32 %v10368_v38, %v10368_v38 }
 0x672   :  { %v6517_v49 = vmul.f32 0.0625, %v6411_v51  ;;  %v6430_v4 = vadd.f32 %v6429_v53, %v6428_v24  ;;  %v6395_v56 = vmul.f32 %v10371_v60, %v10371_v60  ;;  %v10381_v25 = vsub.f32 %v10291_v39, %v6330_v59 }
 0x673   :  { %v6424_v16 = vrot.slane %v6423_v34, 1  ;;  %v6518_v3 = vmul.f32 0.0625, %v6418_v21  ;;  %v6436_v44 = vrot.slane %v6435_v10, 2  ;;  %v6378_v50 = vmul.f32 %v10374_v27, %v10374_v27 }
 0x674   :  { %v6533_v31 = vadd.f32 1e-05, %v6517_v49  ;;  %v6431_v30 = vrot.slane %v6430_v4, 1  ;;  %v6447_v58 = vadd.f32 %v6395_v56, %v6379_v7  ;;  %v6394_v37 = vmul.f32 %v10381_v25, %v10381_v25 }
 0x675   :  { %v6425_v51 = vadd.f32 %v6424_v16, %v6423_v34  ;;  %v6534_v55 = vadd.f32 1e-05, %v6518_v3  ;;  %v6437_v29 = vadd.f32 %v6436_v44, %v6435_v10  ;;  %v6265_v48 = vrot.slane %v6264_v40, 2  ;;  %v10387_v44 = vpop.permute.xlu1 %6604 }
 0x676   :  { %7988 = vrsqrt.f32 %v6533_v31  ;;  %v6432_v42 = vadd.f32 %v6431_v30, %v6430_v4  ;;  %v6448_v39 = vrot.slane %v6447_v58, 4  ;;  %v6440_v46 = vadd.f32 %v6394_v37, %v6378_v50 }
 0x677   :  { %v6519_v62 = vmul.f32 0.0625, %v6425_v51  ;;  %7990 = vrsqrt.f32 %v6534_v55  ;;  %v6438_v28 = vrot.slane %v6437_v29, 1  ;;  %v6266_v61 = vadd.f32 %v6265_v48, %v6264_v40  ;;  %v10389_v40 = vpop.permute.xlu0 %6599 }
 0x678   :  { %v6520_v24 = vmul.f32 0.0625, %v6432_v42  ;;  %v6449_v59 = vadd.f32 %v6448_v39, %v6447_v58  ;;  %v6441_v1 = vrot.slane %v6440_v46, 4 }
 0x679   :  { %v6535_v54 = vadd.f32 1e-05, %v6519_v62  ;;  %v6439_v19 = vadd.f32 %v6438_v28, %v6437_v29  ;;  %v6267_v53 = vrot.slane %v6266_v61, 1 }
 0x67a   :  { %v6536_v21 = vadd.f32 1e-05, %v6520_v24  ;;  %v6450_v7 = vrot.slane %v6449_v59, 2  ;;  %v6442_v34 = vadd.f32 %v6441_v1, %v6440_v46 }
 0x67b   :  { %7992 = vrsqrt.f32 %v6535_v54  ;;  %v6521_v10 = vmul.f32 0.0625, %v6439_v19  ;;  %v6268_v49 = vadd.f32 %v6267_v53, %v6266_v61 }
 0x67c   :  { %7994 = vrsqrt.f32 %v6536_v21  ;;  %v6451_v4 = vadd.f32 %v6450_v7, %v6449_v59  ;;  %v6443_v56 = vrot.slane %v6442_v34, 2 }
 0x67d   :  { %v6537_v16 = vadd.f32 1e-05, %v6521_v10  ;;  %v6332_v3 = vmul.f32 0.0625, %v6268_v49 }
 0x67e   :  { %v6452_v50 = vrot.slane %v6451_v4, 1  ;;  %v6444_v31 = vadd.f32 %v6443_v56, %v6442_v34 }
 0x67f   :  { %7996 = vrsqrt.f32 %v6537_v16  ;;  %v10392_v30 = vsub.f32 %v10301_v15, %v6332_v3  ;;  %v10395_v58 = vsub.f32 %v10311_v57, %v6332_v3 }
 0x680   :  { %v7989_v37 = vpop.eup %7988  ;;  %v6453_v51 = vadd.f32 %v6452_v50, %v6451_v4  ;;  %v6445_v55 = vrot.slane %v6444_v31, 1 }
 0x681   :  { %v7991_v29 = vpop.eup %7990  ;;  %v6565_v48 = vmul.f32 %v7989_v37, %v10318_v43  ;;  %v6581_v42 = vmul.f32 %v7989_v37, %v10321_v2  ;;  %v6380_v39 = vmul.f32 %v10392_v30, %v10392_v30  ;;  %v6396_v46 = vmul.f32 %v10395_v58, %v10395_v58  ;;  %v10407_v43 = vpop.permute.xlu1 %6646 }
 0x682   :  { %v6566_v15 = vmul.f32 %v7991_v29, %v10324_v6  ;;  %v6582_v62 = vmul.f32 %v7991_v29, %v10327_v17  ;;  %v6523_v57 = vmul.f32 0.0625, %v6453_v51  ;;  %v6446_v28 = vadd.f32 %v6445_v55, %v6444_v31  ;;  %v10409_v2 = vpop.permute.xlu0 %6641 }
 0x683   :  { %v6607_v61 = vmul.f32 %v10389_v40, %v6565_v48  ;;  %v6623_v24 = vmul.f32 %v10387_v44, %v6581_v42  ;;  %v6454_v59 = vadd.f32 %v6396_v46, %v6380_v39 }
 0x684   :  { %v6608_v1 = vmul.f32 %v10389_v40, %v6566_v15  ;;  %v6624_v54 = vmul.f32 %v10387_v44, %v6582_v62  ;;  %v6539_v19 = vadd.f32 1e-05, %v6523_v57  ;;  %v6522_v53 = vmul.f32 0.0625, %v6446_v28 }
 0x685   :  { %v7993_v6 = vpop.eup %7992  ;;  %v6649_v17 = vadd.f32 %v10409_v2, %v6607_v61  ;;  %v6665_v21 = vadd.f32 %v10407_v43, %v6623_v24  ;;  %v6455_v7 = vrot.slane %v6454_v59, 4 }
 0x686   :  { %v7995_v34 = vpop.eup %7994  ;;  %v6567_v10 = vmul.f32 %v7993_v6, %v10338_v0  ;;  %v6583_v49 = vmul.f32 %v7993_v6, %v10341_v5  ;;  %v6666_v4 = vadd.f32 %v10407_v43, %v6624_v54  ;;  %7998 = vrsqrt.f32 %v6539_v19 }
 0x687   :  { %v10418_v56 = vadd.f32 %v6665_v21, %v6649_v17  ;;  %v6568_v16 = vmul.f32 %v7995_v34, %v10344_v9  ;;  %v6584_v3 = vmul.f32 %v7995_v34, %v10347_v47  ;;  %v6538_v50 = vadd.f32 1e-05, %v6522_v53 }
 0x688   :  { %v6609_v31 = vmul.f32 %v10389_v40, %v6567_v10  ;;  %v6625_v37 = vmul.f32 %v10387_v44, %v6583_v49  ;;  %v6456_v51 = vadd.f32 %v6455_v7, %v6454_v59  ;;  %v6650_v55 = vadd.f32 %v10409_v2, %v6608_v1 }
 0x689   :  { %v7997_v0 = vpop.eup %7996  ;;  %v6610_v5 = vmul.f32 %v10389_v40, %v6568_v16  ;;  %v6626_v29 = vmul.f32 %v10387_v44, %v6584_v3  ;;  %8000 = vrsqrt.f32 %v6538_v50 }
 0x68a   :  { %v6651_v48 = vadd.f32 %v10409_v2, %v6609_v31  ;;  %v6667_v9 = vadd.f32 %v10407_v43, %v6625_v37  ;;  %v6569_v47 = vmul.f32 %v7997_v0, %v10358_v26  ;;  %v6585_v42 = vmul.f32 %v7997_v0, %v10361_v14 }
 0x68b   :  { %v6668_v39 = vadd.f32 %v10407_v43, %v6626_v29  ;;  %v6457_v46 = vrot.slane %v6456_v51, 2  ;;  %v10432_v15 = vadd.f32 %v6666_v4, %v6650_v55  ;;  %v6652_v62 = vadd.f32 %v10409_v2, %v6610_v5 }
 0x68c   :  { %v10435_v57 = vadd.f32 %v6667_v9, %v6651_v48  ;;  %v6611_v28 = vmul.f32 %v10389_v40, %v6569_v47  ;;  %v6627_v61 = vmul.f32 %v10387_v44, %v6585_v42  ;;  %v6818_v42 = vld [vmem:[%s11167_s4 + $0x80] sm:$0xff] }
 0x68d   :  { %v6458_v24 = vadd.f32 %v6457_v46, %v6456_v51  ;;  %v10439_v59 = vadd.f32 %v6668_v39, %v6652_v62  ;;  %v6851_v46 = vld [vmem:[%s11167_s4 + $0x188] sm:$0xff]  ;;  %v6802_v62 = vld [vmem:[%s11167_s4] sm:$0xff] }
 0x68e   :  { %v6653_v26 = vadd.f32 %v10409_v2, %v6611_v28  ;;  %v6669_v14 = vadd.f32 %v10407_v43, %v6627_v61  ;;  %v6803_v28 = vld [vmem:[%s11167_s4 + $0x8] sm:$0xff] }
 0x68f   :  { %v6459_v1 = vrot.slane %v6458_v24, 1 }
 0x690   :  { %v7999_v54 = vpop.eup %7998  ;;  %v10443_v19 = vadd.f32 %v6669_v14, %v6653_v26  ;;  %v6834_v26 = vld [vmem:[%s11167_s4 + $0x100] sm:$0xff]  ;;  %v6835_v14 = vld [vmem:[%s11167_s4 + $0x108] sm:$0xff] }
 0x691   :  { %v6571_v53 = vmul.f32 %v7999_v54, %v10368_v38  ;;  %v6587_v6 = vmul.f32 %v7999_v54, %v10371_v60  ;;  %v6460_v17 = vadd.f32 %v6459_v1, %v6458_v24  ;;  %v7761_v24 = vpack.c.bf16 %v6803_v28, %v6802_v62  ;;  %v6820_v54 = vld [vmem:[%s11167_s4 + $0x90] sm:$0xff]  ;;  %v6809_v28 = vld [vmem:[%s11167_s4 + $0x38] sm:$0xff] }
 0x692   :  { %v7793_v1 = vpack.c.bf16 %v6835_v14, %v6834_v26  ;;  %v6808_v62 = vld [vmem:[%s11167_s4 + $0x30] sm:$0xff]  ;;  %v6841_v14 = vld [vmem:[%s11167_s4 + $0x138] sm:$0xff] }
 0x693   :  { %v8001_v21 = vpop.eup %8000  ;;  %v6613_v7 = vmul.f32 %v10389_v40, %v6571_v53  ;;  %v6629_v34 = vmul.f32 %v10387_v44, %v6587_v6  ;;  %v6524_v10 = vmul.f32 0.0625, %v6460_v17  ;;  %v6821_v53 = vld [vmem:[%s11167_s4 + $0x98] sm:$0xff]  ;;  %v6852_v6 = vld [vmem:[%s11167_s4 + $0x190] sm:$0xff] }
 0x694   :  { %v6570_v49 = vmul.f32 %v8001_v21, %v10374_v27  ;;  %v6586_v4 = vmul.f32 %v8001_v21, %v10381_v25  ;;  %v7763_v17 = vpack.c.bf16 %v6821_v53, %v6820_v54  ;;  %v6853_v21 = vld [vmem:[%s11167_s4 + $0x198] sm:$0xff]  ;;  %v6840_v26 = vld [vmem:[%s11167_s4 + $0x130] sm:$0xff]  ;;  %v6826_v54 = vld [vmem:[%s11167_s4 + $0xc0] sm:$0xff] }
 0x695   :  { %v6655_v16 = vadd.f32 %v10409_v2, %v6613_v7  ;;  %v6671_v3 = vadd.f32 %v10407_v43, %v6629_v34  ;;  %v6540_v50 = vadd.f32 1e-05, %v6524_v10  ;;  %v6804_v7 = vld [vmem:[%s11167_s4 + $0x10] sm:$0xff]  ;;  %v6805_v34 = vld [vmem:[%s11167_s4 + $0x18] sm:$0xff]  ;;  %v7795_v10 = vpack.c.bf16 %v6853_v21, %v6852_v6  ;;  %v6827_v53 = vld [vmem:[%s11167_s4 + $0xc8] sm:$0xff] }
 0x696   :  { %v6612_v38 = vmul.f32 %v10389_v40, %v6570_v49  ;;  %v6628_v60 = vmul.f32 %v10387_v44, %v6586_v4  ;;  %v7765_v49 = vpack.c.bf16 %v6805_v34, %v6804_v7  ;;  %v6836_v4 = vld [vmem:[%s11167_s4 + $0x110] sm:$0xff]  ;;  %v6858_v6 = vld [vmem:[%s11167_s4 + $0x1c0] sm:$0xff]  ;;  %v6859_v21 = vld [vmem:[%s11167_s4 + $0x1c8] sm:$0xff] }
 0x697   :  { %v10455_v31 = vadd.f32 %v6671_v3, %v6655_v16  ;;  %8002 = vrsqrt.f32 %v6540_v50  ;;  %v6837_v16 = vld [vmem:[%s11167_s4 + $0x118] sm:$0xff]  ;;  %v6822_v50 = vld [vmem:[%s11167_s4 + $0xa0] sm:$0xff]  ;;  %v6811_v34 = vld [vmem:[%s11167_s4 + $0x48] sm:$0xff] }
 0x698   :  { %v6670_v37 = vadd.f32 %v10407_v43, %v6628_v60  ;;  %v6654_v51 = vadd.f32 %v10409_v2, %v6612_v38  ;;  %v7797_v3 = vpack.c.bf16 %v6837_v16, %v6836_v4  ;;  %v6823_v38 = vld [vmem:[%s11167_s4 + $0xa8] sm:$0xff]  ;;  %v6854_v60 = vld [vmem:[%s11167_s4 + $0x1a0] sm:$0xff] }
 0x699   :  { %v6810_v7 = vld [vmem:[%s11167_s4 + $0x40] sm:$0xff]  ;;  %v6843_v16 = vld [vmem:[%s11167_s4 + $0x148] sm:$0xff] }
 0x69a   :  { %v10459_v55 = vadd.f32 %v6670_v37, %v6654_v51  ;;  %v7767_v37 = vpack.c.bf16 %v6823_v38, %v6822_v50  ;;  %v6855_v51 = vld [vmem:[%s11167_s4 + $0x1a8] sm:$0xff]  ;;  %v6842_v4 = vld [vmem:[%s11167_s4 + $0x140] sm:$0xff]  ;;  %v6828_v50 = vld [vmem:[%s11167_s4 + $0xd0] sm:$0xff] }
 0x69b   :  { %v6829_v38 = vld [vmem:[%s11167_s4 + $0xd8] sm:$0xff] }
 0x6a1   :  { %v8003_v27 = vpop.eup %8002 }
 0x6a2   :  { %v6572_v25 = vmul.f32 %v8003_v27, %v10392_v30  ;;  %v6588_v0 = vmul.f32 %v8003_v27, %v10395_v58  ;;  %v6819_v30 = vld [vmem:[%s11167_s4 + $0x88] sm:$0xff]  ;;  %v6850_v58 = vld [vmem:[%s11167_s4 + $0x180] sm:$0xff] }
 0x6a3   :  { %v7759_v39 = vpack.c.bf16 %v6819_v30, %v6818_v42  ;;  %v7791_v61 = vpack.c.bf16 %v6851_v46, %v6850_v58  ;;  %v6806_v27 = vld [vmem:[%s11167_s4 + $0x20] sm:$0xff]  ;;  %v6824_v42 = vld [vmem:[%s11167_s4 + $0xb0] sm:$0xff]  ;;  %v6825_v30 = vld [vmem:[%s11167_s4 + $0xb8] sm:$0xff] }
 0x6a4   :  { %v6614_v5 = vmul.f32 %v10389_v40, %v6572_v25  ;;  %v6630_v29 = vmul.f32 %v10387_v44, %v6588_v0  ;;  %v6807_v25 = vld [vmem:[%s11167_s4 + $0x28] sm:$0xff]  ;;  %v7799_v0 = vpack.c.bf16 %v6855_v51, %v6854_v60  ;;  %v6856_v58 = vld [vmem:[%s11167_s4 + $0x1b0] sm:$0xff]  ;;  %v6857_v46 = vld [vmem:[%s11167_s4 + $0x1b8] sm:$0xff] }
 0x6a5   :  { %7760 = vmatprep.subr.bf16.mxu0 %v7759_v39  ;;  %7792 = vmatprep.subr.bf16.mxu1 %v7791_v61  ;;  %v7771_v39 = vpack.c.bf16 %v6825_v30, %v6824_v42  ;;  %v7803_v61 = vpack.c.bf16 %v6857_v46, %v6856_v58  ;;  %v6860_v60 = vld [vmem:[%s11167_s4 + $0x1d0] sm:$0xff]  ;;  %v6861_v51 = vld [vmem:[%s11167_s4 + $0x1d8] sm:$0xff]  ;;  %v6830_v42 = vld [vmem:[%s11167_s4 + $0xe0] sm:$0xff] }
 0x6a6   :  { %v6672_v48 = vadd.f32 %v10407_v43, %v6630_v29  ;;  %v6656_v9 = vadd.f32 %v10409_v2, %v6614_v5  ;;  %7762 = vmatpush3.bf16.msra.mxu0 %v7761_v24  ;;  %7794 = vmatpush3.bf16.msra.mxu1 %v7793_v1  ;;  %v7769_v5 = vpack.c.bf16 %v6807_v25, %v6806_v27  ;;  %v6838_v29 = vld [vmem:[%s11167_s4 + $0x120] sm:$0xff]  ;;  %v6812_v27 = vld [vmem:[%s11167_s4 + $0x50] sm:$0xff]  ;;  %v6813_v25 = vld [vmem:[%s11167_s4 + $0x58] sm:$0xff] }
 0x6a7   :  { %7764 = vmatprep.subr.bf16.mxu0 %v7763_v17  ;;  %7796 = vmatprep.subr.bf16.mxu1 %v7795_v10  ;;  %v7773_v24 = vpack.c.bf16 %v6809_v28, %v6808_v62  ;;  %v7805_v1 = vpack.c.bf16 %v6841_v14, %v6840_v26  ;;  %v7775_v17 = vpack.c.bf16 %v6827_v53, %v6826_v54  ;;  %v6831_v30 = vld [vmem:[%s11167_s4 + $0xe8] sm:$0xff]  ;;  %v6862_v58 = vld [vmem:[%s11167_s4 + $0x1e0] sm:$0xff]  ;;  %v6832_v54 = vld [vmem:[%s11167_s4 + $0xf0] sm:$0xff] }
 0x6a8   :  { %v10467_v47 = vadd.f32 %v6672_v48, %v6656_v9  ;;  %v6839_v48 = vld [vmem:[%s11167_s4 + $0x128] sm:$0xff]  ;;  %v7807_v10 = vpack.c.bf16 %v6859_v21, %v6858_v6  ;;  %v6814_v62 = vld [vmem:[%s11167_s4 + $0x60] sm:$0xff]  ;;  %v6833_v53 = vld [vmem:[%s11167_s4 + $0xf8] sm:$0xff] }
 0x6a9   :  { %v7801_v9 = vpack.c.bf16 %v6839_v48, %v6838_v29  ;;  %v6844_v29 = vld [vmem:[%s11167_s4 + $0x150] sm:$0xff]  ;;  %v6845_v48 = vld [vmem:[%s11167_s4 + $0x158] sm:$0xff]  ;;  %v6863_v46 = vld [vmem:[%s11167_s4 + $0x1e8] sm:$0xff] }
 0x6aa   :  { %7766 = vmatpush3.bf16.msra.mxu0 %v7765_v49  ;;  %7798 = vmatpush3.bf16.msra.mxu1 %v7797_v3  ;;  %v7777_v49 = vpack.c.bf16 %v6811_v34, %v6810_v7  ;;  %v7809_v3 = vpack.c.bf16 %v6843_v16, %v6842_v4  ;;  %v6815_v28 = vld [vmem:[%s11167_s4 + $0x68] sm:$0xff]  ;;  %v6846_v26 = vld [vmem:[%s11167_s4 + $0x160] sm:$0xff]  ;;  %v6864_v6 = vld [vmem:[%s11167_s4 + $0x1f0] sm:$0xff] }
 0x6ab   :  { %7768 = vmatprep.subr.bf16.mxu0 %v7767_v37  ;;  %7800 = vmatprep.subr.bf16.mxu1 %v7799_v0  ;;  %v7779_v37 = vpack.c.bf16 %v6829_v38, %v6828_v50  ;;  %v7811_v0 = vpack.c.bf16 %v6861_v51, %v6860_v60  ;;  %v6847_v14 = vld [vmem:[%s11167_s4 + $0x168] sm:$0xff]  ;;  %v6865_v21 = vld [vmem:[%s11167_s4 + $0x1f8] sm:$0xff]  ;;  %v6816_v7 = vld [vmem:[%s11167_s4 + $0x70] sm:$0xff] }
 0x6ac   :  { %v6817_v34 = vld [vmem:[%s11167_s4 + $0x78] sm:$0xff]  ;;  %v6848_v4 = vld [vmem:[%s11167_s4 + $0x170] sm:$0xff]  ;;  %v6883_v38 = vld [vmem:[%s11167_s4 + $0x288] sm:$0xff] }
 0x6ad   :  { %v6849_v16 = vld [vmem:[%s11167_s4 + $0x178] sm:$0xff]  ;;  %v6914_v60 = vld [vmem:[%s11167_s4 + $0x380] sm:$0xff] }
 0x6ae   :  { %7770 = vmatpush3.bf16.msra.mxu0 %v7769_v5  ;;  %7802 = vmatpush3.bf16.msra.mxu1 %v7801_v9  ;;  %v7781_v5 = vpack.c.bf16 %v6813_v25, %v6812_v27  ;;  %v7813_v9 = vpack.c.bf16 %v6845_v48, %v6844_v29  ;;  %v7821_v50 = vpack.c.bf16 %v6849_v16, %v6848_v4  ;;  %v6682_v48 = vrot.slane %v10418_v56, 4 }
 0x6af   :  { %7772 = vmatprep.subr.bf16.mxu0 %v7771_v39  ;;  %7804 = vmatprep.subr.bf16.mxu1 %v7803_v61  ;;  %v7783_v39 = vpack.c.bf16 %v6831_v30, %v6830_v42  ;;  %v7815_v61 = vpack.c.bf16 %v6863_v46, %v6862_v58 }
 0x6b2   :  { %7774 = vmatpush3.bf16.msra.mxu0 %v7773_v24  ;;  %7806 = vmatpush3.bf16.msra.mxu1 %v7805_v1  ;;  %v7785_v24 = vpack.c.bf16 %v6815_v28, %v6814_v62  ;;  %v7817_v1 = vpack.c.bf16 %v6847_v14, %v6846_v26 }
 0x6b3   :  { %7776 = vmatprep.subr.bf16.mxu0 %v7775_v17  ;;  %7808 = vmatprep.subr.bf16.mxu1 %v7807_v10  ;;  %v7787_v17 = vpack.c.bf16 %v6833_v53, %v6832_v54  ;;  %v7819_v10 = vpack.c.bf16 %v6865_v21, %v6864_v6  ;;  %v6683_v53 = vadd.f32 %v6682_v48, %v10418_v56 }
 0x6b6   :  { %7778 = vmatpush3.bf16.msra.mxu0 %v7777_v49  ;;  %7810 = vmatpush3.bf16.msra.mxu1 %v7809_v3  ;;  %v7789_v49 = vpack.c.bf16 %v6817_v34, %v6816_v7  ;;  %v6882_v3 = vld [vmem:[%s11167_s4 + $0x280] sm:$0xff]  ;;  %v6689_v34 = vrot.slane %v10432_v15, 4 }
 0x6b7   :  { %7780 = vmatprep.subr.bf16.mxu0 %v7779_v37  ;;  %7812 = vmatprep.subr.bf16.mxu1 %v7811_v0  ;;  %v6915_v37 = vld [vmem:[%s11167_s4 + $0x388] sm:$0xff]  ;;  %v7823_v51 = vpack.c.bf16 %v6883_v38, %v6882_v3 }
 0x6b8   :  { %v7855_v27 = vpack.c.bf16 %v6915_v37, %v6914_v60  ;;  %v10718_v37 = vadd.f32 %v6689_v34, %v10432_v15 }
 0x6ba   :  { %7782 = vmatpush3.bf16.msra.mxu0 %v7781_v5  ;;  %7814 = vmatpush3.bf16.msra.mxu1 %v7813_v9 }
 0x6bb   :  { %7784 = vmatprep.subr.bf16.mxu0 %v7783_v39  ;;  %7816 = vmatprep.subr.bf16.mxu1 %v7815_v61 }
 0x6be   :  { %7786 = vmatpush3.bf16.msra.mxu0 %v7785_v24  ;;  %7818 = vmatpush3.bf16.msra.mxu1 %v7817_v1 }
 0x6bf   :  { %7788 = vmatprep.subr.bf16.mxu0 %v7787_v17  ;;  %7820 = vmatprep.subr.bf16.mxu1 %v7819_v10 }
 0x6c2   :  { %7790 = vmatpush3.bf16.msra.mxu0 %v7789_v49  ;;  %7822 = vmatpush3.bf16.msra.mxu1 %v7821_v50  ;;  %v6684_v49 = vrot.slane %v6683_v53, 2 }
 0x6c3   :  { %7824 = vmatprep.subr.bf16.mxu0 %v7823_v51  ;;  %7856 = vmatprep.subr.bf16.mxu1 %v7855_v27  ;;  %v6703_v51 = vrot.slane %v10439_v59, 4 }
 0x712   :  { %v5939_v25 = vpop.f32.mrb[152].mxu0 }
 0x713   :  { %v6016_v0 = vpop.f32.mrb[152].mxu1  ;;  %v5941_v5 = vpop.f32.mrb[153].mxu0  ;;  %v5940_v9 = vadd.f32 %v5939_v25, %v10221_v13 }
 0x714   :  { %v6018_v29 = vpop.f32.mrb[153].mxu1  ;;  %v6017_v42 = vadd.f32 %v6016_v0, %v10221_v13  ;;  %v5942_v30 = vadd.f32 %v5941_v5, %v10221_v13  ;;  %v10721_v5 = vadd.f32 %v6684_v49, %v6683_v53 }
 0x715   :  { %v6019_v39 = vadd.f32 %v6018_v29, %v10221_v13  ;;  %v10682_v14 = vadd.f32 %v5940_v9, %v9983_v32 }
 0x716   :  { %v5945_v58 = vpop.f32.mrb[154].mxu0  ;;  %v10690_v6 = vadd.f32 %v6017_v42, %v10001_v18  ;;  %v10693_v17 = vadd.f32 %v5942_v30, %v9986_v8 }
 0x717   :  { %v5946_v46 = vadd.f32 %v5945_v58, %v10226_v63  ;;  %v6022_v62 = vpop.f32.mrb[154].mxu1  ;;  %v5947_v28 = vpop.f32.mrb[155].mxu0  ;;  %v10702_v32 = vadd.f32 %v6019_v39, %v9993_v33 }
 0x718   :  { %v6023_v61 = vadd.f32 %v6022_v62, %v10226_v63  ;;  %v5948_v24 = vadd.f32 %v5947_v28, %v10226_v63  ;;  %v6024_v26 = vpop.f32.mrb[155].mxu1  ;;  %v6691_v28 = vrot.slane %v10718_v37, 2 }
 0x719   :  { %v10685_v1 = vadd.f32 %v5946_v46, %v9976_v11  ;;  %v6025_v54 = vadd.f32 %v6024_v26, %v10226_v63 }
 0x71a   :  { %v10696_v21 = vadd.f32 %v6023_v61, %v9996_v41  ;;  %v10699_v7 = vadd.f32 %v5948_v24, %v9979_v22  ;;  %v10730_v61 = vadd.f32 %v6703_v51, %v10439_v59 }
 0x71b   :  { %v6269_v11 = vadd.f32 %v10685_v1, %v10682_v14  ;;  %v10707_v56 = vadd.f32 %v6025_v54, %v9989_v45  ;;  %v6696_v45 = vrot.slane %v10435_v57, 4 }
 0x71c   :  { %v6283_v18 = vadd.f32 %v10696_v21, %v10690_v6  ;;  %v6276_v8 = vadd.f32 %v10699_v7, %v10693_v17 }
 0x71d   :  { %v6270_v41 = vrot.slane %v6269_v11, 4  ;;  %v6290_v22 = vadd.f32 %v10707_v56, %v10702_v32  ;;  %v10726_v46 = vadd.f32 %v6696_v45, %v10435_v57 }
 0x71e   :  { %v6284_v33 = vrot.slane %v6283_v18, 4  ;;  %v6277_v10 = vrot.slane %v6276_v8, 4 }
 0x71f   :  { %v6271_v4 = vadd.f32 %v6270_v41, %v6269_v11  ;;  %v6291_v16 = vrot.slane %v6290_v22, 4  ;;  %v6686_v11 = vrot.slane %v10721_v5, 1 }
 0x720   :  { %v6285_v3 = vadd.f32 %v6284_v33, %v6283_v18  ;;  %v6278_v50 = vadd.f32 %v6277_v10, %v6276_v8 }
 0x721   :  { %v6272_v38 = vrot.slane %v6271_v4, 2  ;;  %v6292_v60 = vadd.f32 %v6291_v16, %v6290_v22 }
 0x722   :  { %v6286_v27 = vrot.slane %v6285_v3, 2  ;;  %v6279_v25 = vrot.slane %v6278_v50, 2  ;;  %v6093_v0 = vpop.f32.mrb[156].mxu0 }
 0x723   :  { %v6273_v29 = vadd.f32 %v6272_v38, %v6271_v4  ;;  %v6293_v48 = vrot.slane %v6292_v60, 2  ;;  %v6094_v9 = vadd.f32 %v6093_v0, %v10221_v13  ;;  %v6095_v42 = vpop.f32.mrb[157].mxu0 }
 0x724   :  { %v6287_v30 = vadd.f32 %v6286_v27, %v6285_v3  ;;  %v6280_v58 = vadd.f32 %v6279_v25, %v6278_v50  ;;  %v6096_v39 = vadd.f32 %v6095_v42, %v10221_v13 }
 0x725   :  { %v6274_v15 = vrot.slane %v6273_v29, 1  ;;  %v6294_v62 = vadd.f32 %v6293_v48, %v6292_v60  ;;  %v10733_v54 = vadd.f32 %v6094_v9, %v10024_v23 }
 0x726   :  { %v6288_v24 = vrot.slane %v6287_v30, 1  ;;  %v6281_v26 = vrot.slane %v6280_v58, 1  ;;  %v6099_v53 = vpop.f32.mrb[158].mxu0  ;;  %v10737_v57 = vadd.f32 %v6096_v39, %v10051_v35 }
 0x727   :  { %v6275_v18 = vadd.f32 %v6274_v15, %v6273_v29  ;;  %v6295_v8 = vrot.slane %v6294_v62, 1  ;;  %v6170_v41 = vpop.f32.mrb[156].mxu1  ;;  %v6100_v22 = vadd.f32 %v6099_v53, %v10226_v63  ;;  %v6101_v34 = vpop.f32.mrb[159].mxu0 }
 0x728   :  { %v6289_v33 = vadd.f32 %v6288_v24, %v6287_v30  ;;  %v6282_v59 = vadd.f32 %v6281_v26, %v6280_v58  ;;  %v6171_v10 = vadd.f32 %v6170_v41, %v10221_v13  ;;  %v6172_v49 = vpop.f32.mrb[157].mxu1  ;;  %v6102_v23 = vadd.f32 %v6101_v34, %v10226_v63 }
 0x729   :  { %v6333_v4 = vmul.f32 0.0625, %v6275_v18  ;;  %v6296_v16 = vadd.f32 %v6295_v8, %v6294_v62  ;;  %v6173_v45 = vadd.f32 %v6172_v49, %v10221_v13  ;;  %v10744_v3 = vadd.f32 %v6100_v22, %v10027_v12  ;;  %v11345_v22 = vld [vmem:[#allocation30_spill] sm:$0xff] }
 0x72a   :  { %v6335_v50 = vmul.f32 0.0625, %v6289_v33  ;;  %v6334_v35 = vmul.f32 0.0625, %v6282_v59  ;;  %v10747_v38 = vadd.f32 %v6171_v10, %v10071_v52  ;;  %v10750_v60 = vadd.f32 %v6102_v23, %v10054_v20  ;;  %v11346_v23 = vld [vmem:[#allocation31_spill] sm:$0xff] }
 0x72b   :  { %v10753_v51 = vsub.f32 %v10682_v14, %v6333_v4  ;;  %v10756_v27 = vsub.f32 %v10685_v1, %v6333_v4  ;;  %v6336_v25 = vmul.f32 0.0625, %v6296_v16  ;;  %v10759_v13 = vadd.f32 %v6173_v45, %v10088_v36  ;;  %v6176_v12 = vpop.f32.mrb[158].mxu1 }
 0x72c   :  { %v10762_v0 = vsub.f32 %v10690_v6, %v6335_v50  ;;  %v10765_v52 = vsub.f32 %v10696_v21, %v6335_v50  ;;  %v10768_v20 = vsub.f32 %v10693_v17, %v6334_v35  ;;  %v10771_v14 = vsub.f32 %v10699_v7, %v6334_v35  ;;  %v6178_v29 = vpop.f32.mrb[159].mxu1 }
 0x72d   :  { %v6381_v1 = vmul.f32 %v10753_v51, %v10753_v51  ;;  %v6397_v36 = vmul.f32 %v10756_v27, %v10756_v27  ;;  %v10778_v48 = vsub.f32 %v10702_v32, %v6336_v25  ;;  %v10781_v6 = vsub.f32 %v10707_v56, %v6336_v25 }
 0x72e   :  { %v6383_v17 = vmul.f32 %v10762_v0, %v10762_v0  ;;  %v6399_v21 = vmul.f32 %v10765_v52, %v10765_v52  ;;  %v6382_v7 = vmul.f32 %v10768_v20, %v10768_v20  ;;  %v6398_v9 = vmul.f32 %v10771_v14, %v10771_v14 }
 0x72f   :  { %v6461_v42 = vadd.f32 %v6397_v36, %v6381_v1  ;;  %v6384_v32 = vmul.f32 %v10778_v48, %v10778_v48  ;;  %v6400_v56 = vmul.f32 %v10781_v6, %v10781_v6  ;;  %v6297_v30 = vadd.f32 %v10744_v3, %v10733_v54 }
 0x730   :  { %v6475_v58 = vadd.f32 %v6399_v21, %v6383_v17  ;;  %v6468_v39 = vadd.f32 %v6398_v9, %v6382_v7  ;;  %v6177_v15 = vadd.f32 %v6176_v12, %v10226_v63  ;;  %v6304_v62 = vadd.f32 %v10750_v60, %v10737_v57 }
 0x731   :  { %v6462_v24 = vrot.slane %v6461_v42, 4  ;;  %v6482_v26 = vadd.f32 %v6400_v56, %v6384_v32  ;;  %v6298_v53 = vrot.slane %v6297_v30, 4  ;;  %v6179_v18 = vadd.f32 %v6178_v29, %v10226_v63 }
 0x732   :  { %v6476_v8 = vrot.slane %v6475_v58, 4  ;;  %v6469_v41 = vrot.slane %v6468_v39, 4  ;;  %v10802_v34 = vadd.f32 %v6177_v15, %v11345_v22  ;;  %v6305_v33 = vrot.slane %v6304_v62, 4 }
 0x733   :  { %v6463_v59 = vadd.f32 %v6462_v24, %v6461_v42  ;;  %v6483_v10 = vrot.slane %v6482_v26, 4  ;;  %v6299_v49 = vadd.f32 %v6298_v53, %v6297_v30  ;;  %v10805_v4 = vadd.f32 %v6179_v18, %v11346_v23 }
 0x734   :  { %v6477_v16 = vadd.f32 %v6476_v8, %v6475_v58  ;;  %v6470_v45 = vadd.f32 %v6469_v41, %v6468_v39  ;;  %v6311_v50 = vadd.f32 %v10802_v34, %v10747_v38  ;;  %v6306_v35 = vadd.f32 %v6305_v33, %v6304_v62 }
 0x735   :  { %v6464_v25 = vrot.slane %v6463_v59, 2  ;;  %v6484_v63 = vadd.f32 %v6483_v10, %v6482_v26  ;;  %v6300_v12 = vrot.slane %v6299_v49, 2  ;;  %v6318_v29 = vadd.f32 %v10805_v4, %v10759_v13 }
 0x736   :  { %v6478_v1 = vrot.slane %v6477_v16, 2  ;;  %v6471_v36 = vrot.slane %v6470_v45, 2  ;;  %v6312_v17 = vrot.slane %v6311_v50, 4  ;;  %v6307_v21 = vrot.slane %v6306_v35, 2 }
 0x737   :  { %v6465_v7 = vadd.f32 %v6464_v25, %v6463_v59  ;;  %v6485_v9 = vrot.slane %v6484_v63, 2  ;;  %v6301_v42 = vadd.f32 %v6300_v12, %v6299_v49  ;;  %v6319_v32 = vrot.slane %v6318_v29, 4 }
 0x738   :  { %v6479_v56 = vadd.f32 %v6478_v1, %v6477_v16  ;;  %v6472_v30 = vadd.f32 %v6471_v36, %v6470_v45  ;;  %v6313_v58 = vadd.f32 %v6312_v17, %v6311_v50  ;;  %v6308_v39 = vadd.f32 %v6307_v21, %v6306_v35 }
 0x739   :  { %v6466_v15 = vrot.slane %v6465_v7, 1  ;;  %v6486_v62 = vadd.f32 %v6485_v9, %v6484_v63  ;;  %v6302_v24 = vrot.slane %v6301_v42, 1  ;;  %v6320_v26 = vadd.f32 %v6319_v32, %v6318_v29 }
 0x73a   :  { %v6480_v53 = vrot.slane %v6479_v56, 1  ;;  %v6473_v18 = vrot.slane %v6472_v30, 1  ;;  %v6314_v8 = vrot.slane %v6313_v58, 2  ;;  %v6309_v41 = vrot.slane %v6308_v39, 1 }
 0x73b   :  { %v6467_v22 = vadd.f32 %v6466_v15, %v6465_v7  ;;  %v6487_v33 = vrot.slane %v6486_v62, 1  ;;  %v6303_v10 = vadd.f32 %v6302_v24, %v6301_v42  ;;  %v6321_v23 = vrot.slane %v6320_v26, 2 }
 0x73c   :  { %v6481_v59 = vadd.f32 %v6480_v53, %v6479_v56  ;;  %v6474_v25 = vadd.f32 %v6473_v18, %v6472_v30  ;;  %v6315_v49 = vadd.f32 %v6314_v8, %v6313_v58  ;;  %v6310_v12 = vadd.f32 %v6309_v41, %v6308_v39 }
 0x73d   :  { %v6525_v16 = vmul.f32 0.0625, %v6467_v22  ;;  %v6488_v45 = vadd.f32 %v6487_v33, %v6486_v62  ;;  %v6337_v50 = vmul.f32 0.0625, %v6303_v10  ;;  %v6322_v35 = vadd.f32 %v6321_v23, %v6320_v26 }
 0x73e   :  { %v6527_v1 = vmul.f32 0.0625, %v6481_v59  ;;  %v6526_v63 = vmul.f32 0.0625, %v6474_v25  ;;  %v6316_v36 = vrot.slane %v6315_v49, 1  ;;  %v6338_v29 = vmul.f32 0.0625, %v6310_v12 }
 0x73f   :  { %v6541_v17 = vadd.f32 1e-05, %v6525_v16  ;;  %v6528_v21 = vmul.f32 0.0625, %v6488_v45  ;;  %v10812_v9 = vsub.f32 %v10733_v54, %v6337_v50  ;;  %v10815_v7 = vsub.f32 %v10744_v3, %v6337_v50 }
 0x740   :  { %v6543_v42 = vadd.f32 1e-05, %v6527_v1  ;;  %v6542_v32 = vadd.f32 1e-05, %v6526_v63  ;;  %v6317_v56 = vadd.f32 %v6316_v36, %v6315_v49  ;;  %v10818_v30 = vsub.f32 %v10737_v57, %v6338_v29 }
 0x741   :  { %8004 = vrsqrt.f32 %v6541_v17  ;;  %v6544_v58 = vadd.f32 1e-05, %v6528_v21  ;;  %v6385_v39 = vmul.f32 %v10812_v9, %v10812_v9  ;;  %v6401_v15 = vmul.f32 %v10815_v7, %v10815_v7 }
 0x742   :  { %8006 = vrsqrt.f32 %v6543_v42  ;;  %v6339_v54 = vmul.f32 0.0625, %v6317_v56  ;;  %v10825_v62 = vsub.f32 %v10750_v60, %v6338_v29  ;;  %v6386_v3 = vmul.f32 %v10818_v30, %v10818_v30 }
 0x743   :  { %8008 = vrsqrt.f32 %v6542_v32  ;;  %v6489_v24 = vadd.f32 %v6401_v15, %v6385_v39  ;;  %v6323_v57 = vrot.slane %v6322_v35, 1  ;;  %v6705_v26 = vrot.slane %v10730_v61, 2 }
 0x744   :  { %8010 = vrsqrt.f32 %v6544_v58  ;;  %v10831_v53 = vsub.f32 %v10747_v38, %v6339_v54  ;;  %v10834_v18 = vsub.f32 %v10802_v34, %v6339_v54  ;;  %v6402_v8 = vmul.f32 %v10825_v62, %v10825_v62 }
 0x745   :  { %v6490_v60 = vrot.slane %v6489_v24, 4  ;;  %v6324_v41 = vadd.f32 %v6323_v57, %v6322_v35  ;;  %v10841_v22 = vadd.f32 %v6691_v28, %v10718_v37  ;;  %v6698_v33 = vrot.slane %v10726_v46, 2 }
 0x746   :  { %v6387_v10 = vmul.f32 %v10831_v53, %v10831_v53  ;;  %v6403_v38 = vmul.f32 %v10834_v18, %v10834_v18  ;;  %v6496_v34 = vadd.f32 %v6402_v8, %v6386_v3  ;;  %v6710_v23 = vrot.slane %v10443_v19, 4 }
 0x747   :  { %v6491_v59 = vadd.f32 %v6490_v60, %v6489_v24  ;;  %v6340_v25 = vmul.f32 0.0625, %v6324_v41  ;;  %v10850_v49 = vadd.f32 %v6705_v26, %v10730_v61  ;;  %v10855_v37 = vadd.f32 %v6686_v11, %v10721_v5 }
 0x748   :  { %v6503_v12 = vadd.f32 %v6403_v38, %v6387_v10  ;;  %v6497_v16 = vrot.slane %v6496_v34, 4  ;;  %v6693_v35 = vrot.slane %v10841_v22, 1  ;;  %v10865_v61 = vadd.f32 %v6698_v33, %v10726_v46 }
 0x749   :  { %v6492_v28 = vrot.slane %v6491_v59, 2  ;;  %v10858_v45 = vsub.f32 %v10759_v13, %v6340_v25  ;;  %v10861_v50 = vsub.f32 %v10805_v4, %v6340_v25  ;;  %v10868_v36 = vadd.f32 %v6710_v23, %v10443_v19 }
 0x74a   :  { %v6504_v1 = vrot.slane %v6503_v12, 4  ;;  %v6498_v63 = vadd.f32 %v6497_v16, %v6496_v34  ;;  %v6707_v4 = vrot.slane %v10850_v49, 1 }
 0x74b   :  { %v8005_v29 = vpop.eup %8004  ;;  %v6493_v5 = vadd.f32 %v6492_v28, %v6491_v59  ;;  %v6388_v11 = vmul.f32 %v10858_v45, %v10858_v45  ;;  %v6404_v13 = vmul.f32 %v10861_v50, %v10861_v50 }
 0x74c   :  { %v8007_v17 = vpop.eup %8006  ;;  %v6573_v21 = vmul.f32 %v8005_v29, %v10753_v51  ;;  %v6589_v42 = vmul.f32 %v8005_v29, %v10756_v27  ;;  %v6505_v46 = vadd.f32 %v6504_v1, %v6503_v12  ;;  %v6499_v32 = vrot.slane %v6498_v63, 2 }
 0x74d   :  { %v8009_v56 = vpop.eup %8008  ;;  %v6575_v19 = vmul.f32 %v8007_v17, %v10762_v0  ;;  %v6591_v58 = vmul.f32 %v8007_v17, %v10765_v52  ;;  %v6494_v39 = vrot.slane %v6493_v5, 1  ;;  %v6510_v15 = vadd.f32 %v6404_v13, %v6388_v11 }
 0x74e   :  { %v8011_v54 = vpop.eup %8010  ;;  %v6615_v3 = vmul.f32 %v10389_v40, %v6573_v21  ;;  %v6631_v24 = vmul.f32 %v10387_v44, %v6589_v42  ;;  %v6574_v57 = vmul.f32 %v8009_v56, %v10768_v20  ;;  %v6590_v51 = vmul.f32 %v8009_v56, %v10771_v14 }
 0x74f   :  { %v6617_v27 = vmul.f32 %v10389_v40, %v6575_v19  ;;  %v6633_v26 = vmul.f32 %v10387_v44, %v6591_v58  ;;  %v6576_v8 = vmul.f32 %v8011_v54, %v10778_v48  ;;  %v6592_v0 = vmul.f32 %v8011_v54, %v10781_v6 }
 0x750   :  { %v6657_v52 = vadd.f32 %v10409_v2, %v6615_v3  ;;  %v6673_v60 = vadd.f32 %v10407_v43, %v6631_v24  ;;  %v6616_v41 = vmul.f32 %v10389_v40, %v6574_v57  ;;  %v6632_v33 = vmul.f32 %v10387_v44, %v6590_v51 }
 0x751   :  { %v6659_v20 = vadd.f32 %v10409_v2, %v6617_v27  ;;  %v6675_v14 = vadd.f32 %v10407_v43, %v6633_v26  ;;  %v6618_v10 = vmul.f32 %v10389_v40, %v6576_v8  ;;  %v6634_v38 = vmul.f32 %v10387_v44, %v6592_v0 }
 0x752   :  { %v6737_v34 = vadd.f32 %v6673_v60, %v6657_v52  ;;  %v6674_v48 = vadd.f32 %v10407_v43, %v6632_v33  ;;  %v6495_v6 = vadd.f32 %v6494_v39, %v6493_v5  ;;  %v6506_v23 = vrot.slane %v6505_v46, 2 }
 0x753   :  { %v6751_v59 = vadd.f32 %v6675_v14, %v6659_v20  ;;  %v6676_v25 = vadd.f32 %v10407_v43, %v6634_v38  ;;  %v6500_v12 = vadd.f32 %v6499_v32, %v6498_v63  ;;  %v6511_v16 = vrot.slane %v6510_v15, 4 }
 0x754   :  { %v6738_v28 = vrot.slane %v6737_v34, 4  ;;  %v6529_v1 = vmul.f32 0.0625, %v6495_v6  ;;  %v6507_v29 = vadd.f32 %v6506_v23, %v6505_v46  ;;  %v6658_v11 = vadd.f32 %v10409_v2, %v6616_v41 }
 0x755   :  { %v6752_v13 = vrot.slane %v6751_v59, 4  ;;  %v6501_v17 = vrot.slane %v6500_v12, 1  ;;  %v6512_v21 = vadd.f32 %v6511_v16, %v6510_v15  ;;  %v6660_v42 = vadd.f32 %v10409_v2, %v6618_v10 }
 0x756   :  { %v6545_v56 = vadd.f32 1e-05, %v6529_v1  ;;  %v6508_v19 = vrot.slane %v6507_v29, 1  ;;  %v6744_v58 = vadd.f32 %v6674_v48, %v6658_v11  ;;  %v6739_v5 = vadd.f32 %v6738_v28, %v6737_v34  ;;  %v6867_v11 = vld [vmem:[%s11167_s4 + $0x208] sm:$0xff] }
 0x757   :  { %v6502_v39 = vadd.f32 %v6501_v17, %v6500_v12  ;;  %v6513_v54 = vrot.slane %v6512_v21, 2  ;;  %v6758_v3 = vadd.f32 %v6676_v25, %v6660_v42  ;;  %v6753_v24 = vadd.f32 %v6752_v13, %v6751_v59 }
 0x758   :  { %8012 = vrsqrt.f32 %v6545_v56  ;;  %v6509_v63 = vadd.f32 %v6508_v19, %v6507_v29  ;;  %v6745_v32 = vrot.slane %v6744_v58, 4  ;;  %v6740_v57 = vrot.slane %v6739_v5, 2  ;;  %v6866_v29 = vld [vmem:[%s11167_s4 + $0x200] sm:$0xff] }
 0x759   :  { %v6530_v46 = vmul.f32 0.0625, %v6502_v39  ;;  %v6514_v51 = vadd.f32 %v6513_v54, %v6512_v21  ;;  %v6759_v27 = vrot.slane %v6758_v3, 4  ;;  %v6754_v26 = vrot.slane %v6753_v24, 2 }
 0x75a   :  { %v6531_v8 = vmul.f32 0.0625, %v6509_v63  ;;  %v6746_v15 = vadd.f32 %v6745_v32, %v6744_v58  ;;  %v6741_v0 = vadd.f32 %v6740_v57, %v6739_v5  ;;  %v6700_v52 = vrot.slane %v10865_v61, 1 }
 0x75b   :  { %v6546_v60 = vadd.f32 1e-05, %v6530_v46  ;;  %v6515_v41 = vrot.slane %v6514_v51, 1  ;;  %v6760_v33 = vadd.f32 %v6759_v27, %v6758_v3  ;;  %v6755_v20 = vadd.f32 %v6754_v26, %v6753_v24  ;;  %v6869_v27 = vld [vmem:[%s11167_s4 + $0x218] sm:$0xff] }
 0x75c   :  { %v6547_v14 = vadd.f32 1e-05, %v6531_v8  ;;  %v6747_v10 = vrot.slane %v6746_v15, 2  ;;  %v6742_v38 = vrot.slane %v6741_v0, 1  ;;  %v6712_v25 = vrot.slane %v10868_v36, 2 }
 0x75d   :  { %8014 = vrsqrt.f32 %v6546_v60  ;;  %v6516_v34 = vadd.f32 %v6515_v41, %v6514_v51  ;;  %v6761_v48 = vrot.slane %v6760_v33, 2  ;;  %v6756_v6 = vrot.slane %v6755_v20, 1  ;;  %v6868_v51 = vld [vmem:[%s11167_s4 + $0x210] sm:$0xff] }
 0x75e   :  { %8016 = vrsqrt.f32 %v6547_v14  ;;  %v6748_v23 = vadd.f32 %v6747_v10, %v6746_v15  ;;  %v6743_v59 = vadd.f32 %v6742_v38, %v6741_v0  ;;  %v6701_v28 = vadd.f32 %v6700_v52, %v10865_v61  ;;  %v6898_v61 = vld [vmem:[%s11167_s4 + $0x300] sm:$0xff]  ;;  %v6919_v10 = vld [vmem:[%s11167_s4 + $0x3a8] sm:$0xff] }
 0x75f   :  { %v6532_v12 = vmul.f32 0.0625, %v6516_v34  ;;  %v6762_v16 = vadd.f32 %v6761_v48, %v6760_v33  ;;  %v6757_v1 = vadd.f32 %v6756_v6, %v6755_v20  ;;  %v6694_v13 = vadd.f32 %v6693_v35, %v10841_v22  ;;  %v6899_v22 = vld [vmem:[%s11167_s4 + $0x308] sm:$0xff]  ;;  %v6885_v35 = vld [vmem:[%s11167_s4 + $0x298] sm:$0xff]  ;;  %v6886_v33 = vld [vmem:[%s11167_s4 + $0x2a0] sm:$0xff] }
 0x760   :  { %v6749_v17 = vrot.slane %v6748_v23, 1  ;;  %v6794_v21 = vsel %vm6793_vm12, %v10855_v37, %v6743_v59  ;;  %v6724_v42 = vrot.slane %v10455_v31, 4  ;;  %v6708_v19 = vadd.f32 %v6707_v4, %v10850_v49  ;;  %v6884_v37 = vld [vmem:[%s11167_s4 + $0x290] sm:$0xff]  ;;  %v6917_v4 = vld [vmem:[%s11167_s4 + $0x398] sm:$0xff]  ;;  %v6887_v20 = vld [vmem:[%s11167_s4 + $0x2a8] sm:$0xff] }
 0x761   :  { %v6548_v56 = vadd.f32 1e-05, %v6532_v12  ;;  %v6763_v58 = vrot.slane %v6762_v16, 1  ;;  %v6796_v5 = vsel %vm6793_vm12, %v6701_v28, %v6757_v1  ;;  %v7825_v3 = vpack.c.bf16 %v6867_v11, %v6866_v29  ;;  %v6916_v49 = vld [vmem:[%s11167_s4 + $0x390] sm:$0xff]  ;;  %v6918_v14 = vld [vmem:[%s11167_s4 + $0x3a0] sm:$0xff]  ;;  %v6903_v11 = vld [vmem:[%s11167_s4 + $0x328] sm:$0xff] }
 0x762   :  { %v8013_v39 = vpop.eup %8012  ;;  %v6750_v54 = vadd.f32 %v6749_v17, %v6748_v23  ;;  %v6717_v24 = vrot.slane %v10459_v55, 4  ;;  %v10938_v63 = vadd.f32 %v6712_v25, %v10868_v36  ;;  %v7857_v8 = vpack.c.bf16 %v6899_v22, %v6898_v61  ;;  %v6870_v59 = vld [vmem:[%s11167_s4 + $0x220] sm:$0xff]  ;;  %v6871_v25 = vld [vmem:[%s11167_s4 + $0x228] sm:$0xff]  ;;  %v6888_v61 = vld [vmem:[%s11167_s4 + $0x2b0] sm:$0xff] }
 0x763   :  { %v6577_v32 = vmul.f32 %v8013_v39, %v10812_v9  ;;  %v6593_v57 = vmul.f32 %v8013_v39, %v10815_v7  ;;  %8018 = vrsqrt.f32 %v6548_v56  ;;  %v6764_v46 = vadd.f32 %v6763_v58, %v6762_v16  ;;  %v6900_v9 = vld [vmem:[%s11167_s4 + $0x310] sm:$0xff]  ;;  %v6901_v7 = vld [vmem:[%s11167_s4 + $0x318] sm:$0xff]  ;;  %v6902_v29 = vld [vmem:[%s11167_s4 + $0x320] sm:$0xff] }
 0x764   :  { %v6795_v26 = vsel %vm6793_vm12, %v6694_v13, %v6750_v54  ;;  %v7827_v15 = vpack.c.bf16 %v6885_v35, %v6884_v37  ;;  %v10956_v36 = vadd.f32 %v6724_v42, %v10455_v31  ;;  %v7859_v41 = vpack.c.bf16 %v6917_v4, %v6916_v49  ;;  %v6889_v42 = vld [vmem:[%s11167_s4 + $0x2b8] sm:$0xff]  ;;  %v6872_v39 = vld [vmem:[%s11167_s4 + $0x230] sm:$0xff] }
 0x765   :  { %v6619_v0 = vmul.f32 %v10389_v40, %v6577_v32  ;;  %v6635_v52 = vmul.f32 %v10387_v44, %v6593_v57  ;;  %6999 = vmatprep.mubr.f32.mxu0 %v6795_v26  ;;  %v6797_v60 = vsel %vm6793_vm12, %v6708_v19, %v6764_v46  ;;  %v7829_v31 = vpack.c.bf16 %v6869_v27, %v6868_v51  ;;  %v6873_v4 = vld [vmem:[%s11167_s4 + $0x238] sm:$0xff] }
 0x766   :  { %7069 = vmatprep.mubr.f32.mxu1 %v6797_v60  ;;  %7000 = vmatmul.mubr.f32.vlgmr.msra.gmra.mrb[160].mxu0 %v6794_v21  ;;  %v10974_v38 = vadd.f32 %v6717_v24, %v10459_v55  ;;  %v7861_v23 = vpack.c.bf16 %v6901_v7, %v6900_v9  ;;  %v6714_v12 = vrot.slane %v10938_v63, 1  ;;  %v7831_v1 = vpack.c.bf16 %v6887_v20, %v6886_v33  ;;  %v6904_v24 = vld [vmem:[%s11167_s4 + $0x330] sm:$0xff]  ;;  %v6905_v32 = vld [vmem:[%s11167_s4 + $0x338] sm:$0xff]  ;;  %v6891_v9 = vld [vmem:[%s11167_s4 + $0x2c8] sm:$0xff] }
 0x767   :  { %v8015_v34 = vpop.eup %8014  ;;  %v6661_v48 = vadd.f32 %v10409_v2, %v6619_v0  ;;  %v6677_v6 = vadd.f32 %v10407_v43, %v6635_v52  ;;  %7070 = vmatmul.mubr.f32.vlgmr.msra.gmra.mrb[160].mxu1 %v6796_v5  ;;  %7826 = vmatpush3.bf16.msra.mxu0 %v7825_v3  ;;  %v6726_v13 = vrot.slane %v10956_v36, 2  ;;  %v7833_v58 = vpack.c.bf16 %v6871_v25, %v6870_v59  ;;  %v6923_v33 = vld [vmem:[%s11167_s4 + $0x3c8] sm:$0xff]  ;;  %v6906_v59 = vld [vmem:[%s11167_s4 + $0x340] sm:$0xff]  ;;  %v6892_v25 = vld [vmem:[%s11167_s4 + $0x2d0] sm:$0xff] }
 0x768   :  { %v8017_v55 = vpop.eup %8016  ;;  %v6578_v16 = vmul.f32 %v8015_v34, %v10818_v30  ;;  %v6594_v28 = vmul.f32 %v8015_v34, %v10825_v62  ;;  %7858 = vmatpush3.bf16.msra.mxu1 %v7857_v8  ;;  %7828 = vmatprep.subr.bf16.mxu0 %v7827_v15  ;;  %v7863_v62 = vpack.c.bf16 %v6919_v10, %v6918_v14  ;;  %v6731_v5 = vrot.slane %v10467_v47, 4  ;;  %v6890_v15 = vld [vmem:[%s11167_s4 + $0x2c0] sm:$0xff] }
 0x769   :  { %v6765_v17 = vadd.f32 %v6677_v6, %v6661_v48  ;;  %v6579_v21 = vmul.f32 %v8017_v55, %v10831_v53  ;;  %v6595_v30 = vmul.f32 %v8017_v55, %v10834_v18  ;;  %7860 = vmatprep.subr.bf16.mxu1 %v7859_v41  ;;  %v6920_v53 = vld [vmem:[%s11167_s4 + $0x3b0] sm:$0xff]  ;;  %v6921_v18 = vld [vmem:[%s11167_s4 + $0x3b8] sm:$0xff]  ;;  %v7865_v35 = vpack.c.bf16 %v6903_v11, %v6902_v29  ;;  %v6922_v41 = vld [vmem:[%s11167_s4 + $0x3c0] sm:$0xff] }
 0x76a   :  { %v6620_v56 = vmul.f32 %v10389_v40, %v6578_v16  ;;  %v6636_v19 = vmul.f32 %v10387_v44, %v6594_v28  ;;  %v7835_v49 = vpack.c.bf16 %v6889_v42, %v6888_v61  ;;  %v6719_v46 = vrot.slane %v10974_v38, 2  ;;  %v6893_v55 = vld [vmem:[%s11167_s4 + $0x2d8] sm:$0xff] }
 0x76b   :  { %v6621_v22 = vmul.f32 %v10389_v40, %v6579_v21  ;;  %v6637_v37 = vmul.f32 %v10387_v44, %v6595_v30  ;;  %7830 = vmatpush3.bf16.msra.mxu0 %v7829_v31  ;;  %v6766_v54 = vrot.slane %v6765_v17, 4  ;;  %v7867_v8 = vpack.c.bf16 %v6921_v18, %v6920_v53  ;;  %v6924_v30 = vld [vmem:[%s11167_s4 + $0x3d0] sm:$0xff] }
 0x76c   :  { %v6678_v3 = vadd.f32 %v10407_v43, %v6636_v19  ;;  %7862 = vmatpush3.bf16.msra.mxu1 %v7861_v23  ;;  %7832 = vmatprep.subr.bf16.mxu0 %v7831_v1  ;;  %v6662_v57 = vadd.f32 %v10409_v2, %v6620_v56  ;;  %v6732_v20 = vadd.f32 %v6731_v5, %v10467_v47  ;;  %v6874_v23 = vld [vmem:[%s11167_s4 + $0x240] sm:$0xff]  ;;  %v6875_v47 = vld [vmem:[%s11167_s4 + $0x248] sm:$0xff]  ;;  %v6908_v53 = vld [vmem:[%s11167_s4 + $0x350] sm:$0xff] }
 0x76d   :  { %v8019_v51 = vpop.eup %8018  ;;  %v6663_v27 = vadd.f32 %v10409_v2, %v6621_v22  ;;  %v6679_v26 = vadd.f32 %v10407_v43, %v6637_v37  ;;  %7864 = vmatprep.subr.bf16.mxu1 %v7863_v62  ;;  %v6767_v7 = vadd.f32 %v6766_v54, %v6765_v17  ;;  %v7837_v14 = vpack.c.bf16 %v6873_v4, %v6872_v39  ;;  %v6925_v62 = vld [vmem:[%s11167_s4 + $0x3d8] sm:$0xff]  ;;  %v6894_v22 = vld [vmem:[%s11167_s4 + $0x2e0] sm:$0xff]  ;;  %v6895_v37 = vld [vmem:[%s11167_s4 + $0x2e8] sm:$0xff] }
 0x76e   :  { %v6580_v0 = vmul.f32 %v8019_v51, %v10858_v45  ;;  %v6596_v52 = vmul.f32 %v8019_v51, %v10861_v50  ;;  %v6772_v60 = vadd.f32 %v6678_v3, %v6662_v57  ;;  %v7869_v10 = vpack.c.bf16 %v6905_v32, %v6904_v24  ;;  %v6909_v5 = vld [vmem:[%s11167_s4 + $0x358] sm:$0xff]  ;;  %v6926_v24 = vld [vmem:[%s11167_s4 + $0x3e0] sm:$0xff]  ;;  %v6927_v32 = vld [vmem:[%s11167_s4 + $0x3e8] sm:$0xff] }
 0x76f   :  { %v6779_v31 = vadd.f32 %v6679_v26, %v6663_v27  ;;  %7834 = vmatpush3.bf16.msra.mxu0 %v7833_v58  ;;  %v6768_v34 = vrot.slane %v6767_v7, 2  ;;  %v7839_v48 = vpack.c.bf16 %v6891_v9, %v6890_v15  ;;  %v11068_v28 = vadd.f32 %v6726_v13, %v10956_v36  ;;  %v6877_v58 = vld [vmem:[%s11167_s4 + $0x258] sm:$0xff] }
 0x770   :  { %v6622_v45 = vmul.f32 %v10389_v40, %v6580_v0  ;;  %v6638_v50 = vmul.f32 %v10387_v44, %v6596_v52  ;;  %7866 = vmatpush3.bf16.msra.mxu1 %v7865_v35  ;;  %7836 = vmatprep.subr.bf16.mxu0 %v7835_v49  ;;  %v6773_v6 = vrot.slane %v6772_v60, 4  ;;  %v7871_v40 = vpack.c.bf16 %v6923_v33, %v6922_v41  ;;  %v6907_v44 = vld [vmem:[%s11167_s4 + $0x348] sm:$0xff]  ;;  %v6910_v0 = vld [vmem:[%s11167_s4 + $0x360] sm:$0xff]  ;;  %v6896_v41 = vld [vmem:[%s11167_s4 + $0x2f0] sm:$0xff] }
 0x771   :  { %7868 = vmatprep.subr.bf16.mxu1 %v7867_v8  ;;  %v6769_v16 = vadd.f32 %v6768_v34, %v6767_v7  ;;  %v6780_v1 = vrot.slane %v6779_v31, 4  ;;  %v6720_v11 = vadd.f32 %v6719_v46, %v10974_v38  ;;  %v6733_v61 = vrot.slane %v6732_v20, 2  ;;  %v6879_v7 = vld [vmem:[%s11167_s4 + $0x268] sm:$0xff]  ;;  %v6897_v33 = vld [vmem:[%s11167_s4 + $0x2f8] sm:$0xff]  ;;  %v6928_v34 = vld [vmem:[%s11167_s4 + $0x3f0] sm:$0xff] }
 0x772   :  { %v6680_v29 = vadd.f32 %v10407_v43, %v6638_v50  ;;  %v6774_v17 = vadd.f32 %v6773_v6, %v6772_v60  ;;  %v6664_v21 = vadd.f32 %v10409_v2, %v6622_v45  ;;  %v7841_v36 = vpack.c.bf16 %v6875_v47, %v6874_v23  ;;  %v6876_v2 = vld [vmem:[%s11167_s4 + $0x250] sm:$0xff]  ;;  %v6911_v52 = vld [vmem:[%s11167_s4 + $0x368] sm:$0xff]  ;;  %v6929_v45 = vld [vmem:[%s11167_s4 + $0x3f8] sm:$0xff] }
 0x773   :  { %7838 = vmatpush3.bf16.msra.mxu0 %v7837_v14  ;;  %v6770_v13 = vrot.slane %v6769_v16, 1  ;;  %v6781_v42 = vadd.f32 %v6780_v1, %v6779_v31  ;;  %v7873_v56 = vpack.c.bf16 %v6907_v44, %v6906_v59  ;;  %v7843_v19 = vpack.c.bf16 %v6893_v55, %v6892_v25  ;;  %v6880_v25 = vld [vmem:[%s11167_s4 + $0x270] sm:$0xff]  ;;  %v6881_v55 = vld [vmem:[%s11167_s4 + $0x278] sm:$0xff] }
 0x774   :  { %7870 = vmatpush3.bf16.msra.mxu1 %v7869_v10  ;;  %7840 = vmatprep.subr.bf16.mxu0 %v7839_v48  ;;  %v6775_v43 = vrot.slane %v6774_v17, 2  ;;  %v6786_v38 = vadd.f32 %v6680_v29, %v6664_v21  ;;  %v7875_v18 = vpack.c.bf16 %v6925_v62, %v6924_v30  ;;  %v6715_v35 = vadd.f32 %v6714_v12, %v10938_v63  ;;  %v6878_v63 = vld [vmem:[%s11167_s4 + $0x260] sm:$0xff]  ;;  %v6913_v1 = vld [vmem:[%s11167_s4 + $0x378] sm:$0xff] }
 0x775   :  { %7872 = vmatprep.subr.bf16.mxu1 %v7871_v40  ;;  %v6771_v39 = vadd.f32 %v6770_v13, %v6769_v16  ;;  %v6782_v54 = vrot.slane %v6781_v42, 2  ;;  %v6721_v3 = vrot.slane %v6720_v11, 1  ;;  %v6728_v57 = vrot.slane %v11068_v28, 1 }
 0x776   :  { %v6776_v49 = vadd.f32 %v6775_v43, %v6774_v17  ;;  %v6787_v4 = vrot.slane %v6786_v38, 4  ;;  %v6734_v46 = vadd.f32 %v6733_v61, %v6732_v20  ;;  %v7845_v51 = vpack.c.bf16 %v6877_v58, %v6876_v2 }
 0x777   :  { %7842 = vmatpush3.bf16.msra.mxu0 %v7841_v36  ;;  %v6798_v12 = vsel %vm6793_vm12, %v6715_v35, %v6771_v39  ;;  %v6783_v27 = vadd.f32 %v6782_v54, %v6781_v42  ;;  %v7877_v15 = vpack.c.bf16 %v6909_v5, %v6908_v53  ;;  %v7847_v9 = vpack.c.bf16 %v6895_v37, %v6894_v22  ;;  %v7394_v42 = vld [vmem:[%s11167_s4 + $0x400] ss:$0 sm:$0xff] }
 0x778   :  { %v6777_v26 = vrot.slane %v6776_v49, 1  ;;  %v6788_v8 = vadd.f32 %v6787_v4, %v6786_v38  ;;  %7874 = vmatpush3.bf16.msra.mxu1 %v7873_v56  ;;  %7844 = vmatprep.subr.bf16.mxu0 %v7843_v19  ;;  %v7879_v60 = vpack.c.bf16 %v6927_v32, %v6926_v24  ;;  %v6722_v31 = vadd.f32 %v6721_v3, %v6720_v11 }
 0x779   :  { %7876 = vmatprep.subr.bf16.mxu1 %v7875_v18  ;;  %v6784_v20 = vrot.slane %v6783_v27, 1  ;;  %v7849_v50 = vpack.c.bf16 %v6879_v7, %v6878_v63  ;;  %v7881_v48 = vpack.c.bf16 %v6911_v52, %v6910_v0  ;;  %v6729_v6 = vadd.f32 %v6728_v57, %v11068_v28  ;;  %v6912_v28 = vld [vmem:[%s11167_s4 + $0x370] sm:$0xff]  ;;  %s8052_s4 = scalar_lea.vmem %s7224_s10, 32 }
 0x77a   :  { %v6778_v14 = vadd.f32 %v6777_v26, %v6776_v49  ;;  %v6789_v10 = vrot.slane %v6788_v8, 2  ;;  %v6735_v59 = vrot.slane %v6734_v46, 1  ;;  %v7851_v44 = vpack.c.bf16 %v6897_v33, %v6896_v41  ;;  %p8053_p0 = scmp.ne.s32.totalorder %s7224_s10, %s8052_s4  ;;  %p8058_p2 = scmp.lt.s32.totalorder %s8052_s4, %s8052_s4 }
 0x77b   :  { %7846 = vmatpush3.bf16.msra.mxu0 %v7845_v51  ;;  %v6785_v23 = vadd.f32 %v6784_v20, %v6783_v27  ;;  %v7883_v16 = vpack.c.bf16 %v6929_v45, %v6928_v34  ;;  %v7853_v17 = vpack.c.bf16 %v6881_v55, %v6880_v25  ;;  %v7885_v62 = vpack.c.bf16 %v6913_v1, %v6912_v28 }
 0x77c   :  { %v6799_v47 = vsel %vm6793_vm12, %v6722_v31, %v6778_v14  ;;  %v6790_v40 = vadd.f32 %v6789_v10, %v6788_v8  ;;  %7878 = vmatpush3.bf16.msra.mxu1 %v7877_v15  ;;  %7848 = vmatprep.subr.bf16.mxu0 %v7847_v9  ;;  %v6736_v21 = vadd.f32 %v6735_v59, %v6734_v46  ;;  %p8059_p3 = por %p8058_p2, %p8057_p1 }
 0x77d   :  { %7139 = vmatprep.mubr.f32.mxu0 %v6799_v47  ;;  %7880 = vmatprep.subr.bf16.mxu1 %v7879_v60  ;;  %v6800_v29 = vsel %vm6793_vm12, %v6729_v6, %v6785_v23 }
 0x77e   :  { %v6791_v11 = vrot.slane %v6790_v40, 1  ;;  %p8060_p4 = pnand %p8059_p3, %p8053_p0 }
 0x77f   :  { %7850 = vmatpush3.bf16.msra.mxu0 %v7849_v50 }
 0x780   :  { %v6792_v30 = vadd.f32 %v6791_v11, %v6790_v40  ;;  %7882 = vmatpush3.bf16.msra.mxu1 %v7881_v48  ;;  %7852 = vmatprep.subr.bf16.mxu0 %v7851_v44 }
 0x781   :  { %7884 = vmatprep.subr.bf16.mxu1 %v7883_v16 }
 0x782   :  { %v6801_v61 = vsel %vm6793_vm12, %v6736_v21, %v6792_v30 }
 0x783   :  { %7209 = vmatprep.mubr.f32.mxu1 %v6801_v61  ;;  %7854 = vmatpush3.bf16.msra.mxu0 %v7853_v17 }
 0x784   :  { %7886 = vmatpush3.bf16.msra.mxu1 %v7885_v62 }
 0x786   :  { %7140 = vmatmul.mubr.f32.vlgmr.msra.gmra.mrb[162].mxu0 %v6798_v12 }
 0x787   :  { %7210 = vmatmul.mubr.f32.vlgmr.msra.gmra.mrb[162].mxu1 %v6800_v29 }
 0x839   :  { %v7427_v36 = vpop.f32.mrb[160].mxu0 }
 0x83a   :  { %v7462_v13 = vpop.f32.mrb[160].mxu1  ;;  %v7428_v43 = vpop.f32.mrb[161].mxu0 }
 0x83b   :  { %v7429_v38 = vadd.f32 %v7428_v43, %v7427_v36  ;;  %v7463_v56 = vpop.f32.mrb[161].mxu1 }
 0x83c   :  { %v7464_v19 = vadd.f32 %v7463_v56, %v7462_v13 }
 0x83d   :  { %v7002_v2 = vadd.f32 %v7429_v38, %v7394_v42 }
 0x83f   :  { %v7072_v58 = vadd.f32 %v7464_v19, %v7002_v2 }
 0x859   :  { %v7497_v53 = vpop.f32.mrb[162].mxu0 }
 0x85a   :  { %v7532_v18 = vpop.f32.mrb[162].mxu1  ;;  %v7498_v5 = vpop.f32.mrb[163].mxu0 }
 0x85b   :  { %v7499_v22 = vadd.f32 %v7498_v5, %v7497_v53  ;;  %v7533_v37 = vpop.f32.mrb[163].mxu1 }
 0x85c   :  { %v7534_v35 = vadd.f32 %v7533_v37, %v7532_v18 }
 0x85d   :  { %v7142_v39 = vadd.f32 %v7499_v22, %v7072_v58 }
 0x85f   :  { %v7212_v54 = vadd.f32 %v7534_v35, %v7142_v39 }
 0x861   :  { %7216 = vst.msk [vmem:[#allocation2] sm:$0x3] %vm7215_vm13, %v7212_v54 }
 0x862   :  { %8063 = shalt.err (!%p8060_p4)
}
 0x863   :  { %s8064_s12 = scalar_lea.hbm %s11168_s5, 32 }
 0x864   :  { %p8065_p5 = scmp.ne.s32.totalorder %s11168_s5, %s8064_s12  ;;  %p8068_p6 = scmp.lt.u32.totalorder %s8064_s12, %s11168_s5 }
 0x866   :  { %p8070_p7 = pnand %p8068_p6, %p8065_p5 }
 0x868   :  { %8073 = shalt.err (!%p8070_p7)
}
 0x869   :  { %7226 = dma.vmem_to_hbm [thread:$0]  %s7224_s10, 32, %s11168_s5, [#allocation3]  }
 0x86a   :  { %8074 = dma.done.wait [#allocation3], 32  }
 0x86b   :  { %8075 = vsyncadd [#allocation3], 4294967264 }
 0x86c   :  { %7230 = vsyncpa [#allocation3], 1 }

</bundles_post_ra>
